<compile_context>
chip_gen: v6e
topology: v6e:2x2x1
jax: 0.10.0
libtpu: 0.0.40
codegen_flags: <defaults>
</compile_context>

<pallas_src>
import functools

import jax
import jax.numpy as jnp
from jax.experimental import pallas as pl
from jax.experimental.pallas import tpu as pltpu


def _round_up(x, m):
    return (x + m - 1) // m * m


def _silu(x):
    # x * sigmoid(x) == x * 0.5 * (tanh(x/2) + 1): one EUP transcendental, exact math.
    return x * (0.5 * jnp.tanh(0.5 * x) + 0.5)


# ---------------- fused Pallas kernel (B images per program) ----------------

def _resblock_kernel(x0_ref, w0s_ref, b0_ref, bbp_ref, w1_ref, b1_ref,
                     o_ref, y0p_ref, *, H0, W0):
    B = x0_ref.shape[0]
    HW = H0 * W0
    cp = o_ref.shape[-1]                       # lane-padded channel count (multiple of 128)

    # Zero the conv1 scratch ONCE; the interior is fully overwritten every step so the
    # 1-wide halo ring stays zero across grid iterations (scratch persists).
    @pl.when(pl.program_id(0) == 0)
    def _():
        y0p_ref[...] = jnp.zeros(y0p_ref.shape, y0p_ref.dtype)

    # ---- conv0 (all 9 taps K-packed) + strided 1x1 shortcut in ONE MXU dot ----
    #   (B*HW, K0p) @ (K0p, 2*cp): columns [:cp] = conv0, columns [cp:] = shortcut.
    lhs = x0_ref[...].reshape(B * HW, x0_ref.shape[-1])
    fused = jnp.dot(lhs, w0s_ref[...], preferred_element_type=jnp.float32)

    y0 = _silu(fused[:, :cp] + b0_ref[...])    # (B*HW, cp) f32

    # Stage SiLU(conv0) into the spatially padded VMEM scratch for conv1 (never hits HBM).
    y0p_ref[:, 1:1 + H0, 1:1 + W0, :] = (
        y0.reshape(B, H0, W0, cp).astype(y0p_ref.dtype))

    # Accumulator starts from the shortcut plus both remaining biases.
    acc = fused[:, cp:] + bbp_ref[...] + b1_ref[...]

    # ---- conv1 (3x3, stride 1): 9 accumulated K=cp dots on the resident padded y0 ----
    # TODO(synk): when the real Cout < 128, lane-pack the 9 taps into one K=9*Cout dot
    #             (needs in-kernel lane-offset packing); also check whether each strided
    #             slice+reshape below materializes a VMEM copy and, if ld/st-bound,
    #             switch to per-row contiguous dots.
    for dy in range(3):
        for dx in range(3):
            q = y0p_ref[:, dy:dy + H0, dx:dx + W0, :].reshape(B * HW, cp)
            acc = acc + jnp.dot(q, w1_ref[dy * 3 + dx],
                                preferred_element_type=jnp.float32)

    o_ref[...] = _silu(acc).reshape(B, HW, cp).astype(o_ref.dtype)


# ---------------- wrapper (layout / packing glue only) ----------------

def residual_block_pallas(x_nchw, params, *, stride, compute_dtype=jnp.bfloat16,
                          out_dtype=jnp.float32):
    w0, b0, w1, b1, wbp, bbp = params                    # torch layouts: OIHW / (O,)
    N, Cin, H, W = x_nchw.shape
    Cout = w0.shape[0]
    s = stride
    H0 = (H - 1) // s + 1
    W0 = (W - 1) // s + 1
    HW = H0 * W0

    LANE = 128
    K0 = 9 * Cin
    K0p = _round_up(K0, LANE)
    Cp = _round_up(Cout, LANE)

    # Images per grid step: fill the dot M dimension / amortize per-step overhead.
    B = 1
    for cand in range(1, N + 1):
        if N % cand == 0 and cand * HW <= 512:
            B = cand

    x = jnp.transpose(x_nchw, (0, 2, 3, 1))              # NHWC
    xp = jnp.pad(x, ((0, 0), (1, 1), (1, 1), (0, 0)))    # conv padding = 1

    # K-pack the 9 conv0 taps along the contraction dim. For small Cin, 9*Cin <= 128,
    # so the packed, lane-padded operand is no bigger than one lane-padded copy of the
    # input while turning conv0 into a single K=128 MXU push.
    # TODO(synk): for Cin >= 128 skip the packing and use per-tap K=Cin dots on a
    #             phase-packed block instead (no replication, K already lane-dense).
    taps = []
    for dy in range(3):
        for dx in range(3):
            taps.append(xp[:, dy:dy + (H0 - 1) * s + 1:s,
                           dx:dx + (W0 - 1) * s + 1:s, :])     # (N, H0, W0, Cin)
    x0 = jnp.concatenate(taps, axis=-1).reshape(N, HW, K0)
    x0 = jnp.pad(x0, ((0, 0), (0, 0), (0, K0p - K0))).astype(compute_dtype)

    # conv0 weights (taps stacked along K) fused with the 1x1 shortcut as extra output
    # columns: the shortcut samples are exactly conv0's tap-(1,1) input samples.
    w0m = jnp.transpose(w0, (2, 3, 1, 0)).reshape(K0, Cout)     # (9*Cin, Cout)
    w0s = jnp.zeros((K0p, 2 * Cp), jnp.float32)
    w0s = w0s.at[:K0, :Cout].set(w0m)
    w0s = w0s.at[4 * Cin:5 * Cin, Cp:Cp + Cout].set(wbp[:, :, 0, 0].T)
    w0s = w0s.astype(compute_dtype)

    w1m = jnp.transpose(w1, (2, 3, 1, 0)).reshape(9, Cout, Cout)
    w1p = jnp.zeros((9, Cp, Cp), jnp.float32).at[:, :Cout, :Cout].set(w1m)
    w1p = w1p.astype(compute_dtype)

    b0p = jnp.zeros((1, Cp), jnp.float32).at[0, :Cout].set(b0)
    b1p = jnp.zeros((1, Cp), jnp.float32).at[0, :Cout].set(b1)
    bbpp = jnp.zeros((1, Cp), jnp.float32).at[0, :Cout].set(bbp)

    kernel = functools.partial(_resblock_kernel, H0=H0, W0=W0)

    out = pl.pallas_call(
        kernel,
        out_shape=jax.ShapeDtypeStruct((N, HW, Cp), out_dtype),
        grid=(N // B,),
        in_specs=[
            pl.BlockSpec((B, HW, K0p), lambda n: (n, 0, 0)),
            pl.BlockSpec((K0p, 2 * Cp), lambda n: (0, 0)),
            pl.BlockSpec((1, Cp), lambda n: (0, 0)),
            pl.BlockSpec((1, Cp), lambda n: (0, 0)),
            pl.BlockSpec((9, Cp, Cp), lambda n: (0, 0, 0)),
            pl.BlockSpec((1, Cp), lambda n: (0, 0)),
        ],
        out_specs=pl.BlockSpec((B, HW, Cp), lambda n: (n, 0, 0)),
        scratch_shapes=[pltpu.VMEM((B, H0 + 2, W0 + 2, Cp), compute_dtype)],
        compiler_params=pltpu.CompilerParams(
            dimension_semantics=("parallel",),
            vmem_limit_bytes=32 * 1024 * 1024,
        ),
    )(x0, w0s, b0p, bbpp, w1p, b1p)

    out = out[:, :, :Cout].reshape(N, H0, W0, Cout)
    # TODO(synk): return NHWC (and/or bf16) directly if the consumer accepts it —
    #             skips this full-tensor transpose and halves HBM writeback.
    return jnp.transpose(out, (0, 3, 1, 2)).astype(jnp.float32)   # back to NCHW


# ---------------- pure-JAX reference (for correctness check) ----------------

def residual_block_ref(x, params, stride):
    w0, b0, w1, b1, wbp, bbp = params
    dn = ('NCHW', 'OIHW', 'NCHW')
    y = jax.lax.conv_general_dilated(x, w0, (stride, stride), ((1, 1), (1, 1)),
                                     dimension_numbers=dn) + b0[None, :, None, None]
    y = jax.nn.silu(y)
    y = jax.lax.conv_general_dilated(y, w1, (1, 1), ((1, 1), (1, 1)),
                                     dimension_numbers=dn) + b1[None, :, None, None]
    bp = jax.lax.conv_general_dilated(x, wbp, (stride, stride), ((0, 0), (0, 0)),
                                      dimension_numbers=dn) + bbp[None, :, None, None]
    return jax.nn.silu(y + bp)


if __name__ == "__main__":
    N, Cin, H, W = 2, 4, 16, 16
    Cout, stride = 8, 2

    key = jax.random.PRNGKey(0)
    kx, k0, k1, kbp = jax.random.split(key, 4)

    x = jax.random.normal(kx, (N, Cin, H, W), jnp.float32)

    # Deterministic orthogonal init with gain 0.5 (mirrors torch.nn.init.orthogonal_(w, 0.5)).
    ortho = jax.nn.initializers.orthogonal(scale=0.5)
    w0 = ortho(k0, (Cout, Cin * 9), jnp.float32).reshape(Cout, Cin, 3, 3)
    b0 = jnp.zeros((Cout,), jnp.float32)
    w1 = ortho(k1, (Cout, Cout * 9), jnp.float32).reshape(Cout, Cout, 3, 3)
    b1 = jnp.zeros((Cout,), jnp.float32)
    wbp = ortho(kbp, (Cout, Cin), jnp.float32).reshape(Cout, Cin, 1, 1)
    bbp = jnp.zeros((Cout,), jnp.float32)
    params = (w0, b0, w1, b1, wbp, bbp)

    fwd = jax.jit(functools.partial(residual_block_pallas, stride=stride))
    out = jax.block_until_ready(fwd(x, params))

    ref = residual_block_ref(x, params, stride)
    assert out.shape == ref.shape == (N, Cout, H // stride, W // stride), (out.shape, ref.shape)
    # bf16 MXU inputs / bf16 staged activation with f32 accumulation: loosened tolerance
    # vs the f32 reference.
    max_err = float(jnp.max(jnp.abs(out - ref)))
    assert jnp.allclose(out, ref, atol=5e-2, rtol=5e-2), max_err

    print("KERNEL_OK")
</pallas_src>

<mosaic_0001>
module attributes {stable_mosaic.version = 11 : i64} {
  func.func @_resblock_kernel(%arg0: i32, %arg1: memref<2x64x128xbf16, #tpu.memory_space<vmem>>, %arg2: memref<128x256xbf16, #tpu.memory_space<vmem>>, %arg3: memref<1x128xf32, #tpu.memory_space<vmem>>, %arg4: memref<1x128xf32, #tpu.memory_space<vmem>>, %arg5: memref<9x128x128xbf16, #tpu.memory_space<vmem>>, %arg6: memref<1x128xf32, #tpu.memory_space<vmem>>, %arg7: memref<2x64x128xf32, #tpu.memory_space<vmem>>, %arg8: memref<2x10x10x128xbf16, #tpu.memory_space<vmem>>) attributes {dimension_semantics = [#tpu.dimension_semantics<parallel>], iteration_bounds = array<i64: 1>, scalar_prefetch = 0 : i64, scratch_operands = 1 : i64, tpu.core_type = #tpu.core_type<tc>, window_params = [{transform_indices = @transform_0, window_bounds = array<i64: 2, 64, 128>}, {pipeline_mode = #tpu.pipeline_mode<synchronous>, transform_indices = @transform_1, window_bounds = array<i64: 128, 256>}, {pipeline_mode = #tpu.pipeline_mode<synchronous>, transform_indices = @transform_2, window_bounds = array<i64: 1, 128>}, {pipeline_mode = #tpu.pipeline_mode<synchronous>, transform_indices = @transform_3, window_bounds = array<i64: 1, 128>}, {pipeline_mode = #tpu.pipeline_mode<synchronous>, transform_indices = @transform_4, window_bounds = array<i64: 9, 128, 128>}, {pipeline_mode = #tpu.pipeline_mode<synchronous>, transform_indices = @transform_5, window_bounds = array<i64: 1, 128>}, {transform_indices = @transform_6, window_bounds = array<i64: 2, 64, 128>}]} {
    %c0_i32 = arith.constant 0 : i32
    %0 = arith.cmpi eq, %arg0, %c0_i32 : i32
    %1 = arith.extui %0 : i1 to i32
    %c0_i32_0 = arith.constant 0 : i32
    %2 = arith.cmpi ne, %1, %c0_i32_0 : i32
    scf.if %2 {
      %cst_88 = arith.constant 0.000000e+00 : bf16
      %93 = vector.broadcast %cst_88 : bf16 to vector<2x10x10x128xbf16>
      %c0_89 = arith.constant 0 : index
      %c0_90 = arith.constant 0 : index
      %c0_91 = arith.constant 0 : index
      %c0_92 = arith.constant 0 : index
      %94 = vector.load %arg8[%c0_89, %c0_90, %c0_91, %c0_92] : memref<2x10x10x128xbf16, #tpu.memory_space<vmem>>, vector<2x10x10x128xbf16>
      tpu.vector_store %arg8[%c0_89, %c0_90, %c0_91, %c0_92], %93 {strides = array<i32>} : memref<2x10x10x128xbf16, #tpu.memory_space<vmem>>, vector<2x10x10x128xbf16>,
    } else {
    }
    %c0 = arith.constant 0 : index
    %c0_1 = arith.constant 0 : index
    %c0_2 = arith.constant 0 : index
    %3 = vector.load %arg1[%c0, %c0_1, %c0_2] : memref<2x64x128xbf16, #tpu.memory_space<vmem>>, vector<2x64x128xbf16>
    %4 = vector.shape_cast %3 : vector<2x64x128xbf16> to vector<128x128xbf16>
    %c0_3 = arith.constant 0 : index
    %c0_4 = arith.constant 0 : index
    %5 = vector.load %arg2[%c0_3, %c0_4] : memref<128x256xbf16, #tpu.memory_space<vmem>>, vector<128x256xbf16>
    %cst = arith.constant dense<0.000000e+00> : vector<128x256xf32>
    %6 = tpu.matmul %4, %5, %cst {dimension_numbers = #tpu.dot_dimension_numbers<[1], [0], [0], [1], [0, 0, 1, 1], [], []>} : vector<128x128xbf16>, vector<128x256xbf16>, vector<128x256xf32> -> vector<128x256xf32>
    %7 = vector.extract_strided_slice %6 {offsets = [0, 0], sizes = [128, 128], strides = [1, 1]} : vector<128x256xf32> to vector<128x128xf32>
    %c0_5 = arith.constant 0 : index
    %c0_6 = arith.constant 0 : index
    %8 = vector.load %arg3[%c0_5, %c0_6] : memref<1x128xf32, #tpu.memory_space<vmem>>, vector<1x128xf32>
    %9 = vector.broadcast %8 : vector<1x128xf32> to vector<128x128xf32>
    %10 = arith.addf %7, %9 : vector<128x128xf32>
    %cst_7 = arith.constant 5.000000e-01 : f32
    %11 = vector.broadcast %cst_7 : f32 to vector<128x128xf32>
    %12 = arith.mulf %11, %10 : vector<128x128xf32>
    %13 = math.tanh %12 : vector<128x128xf32>
    %cst_8 = arith.constant 5.000000e-01 : f32
    %14 = vector.broadcast %cst_8 : f32 to vector<128x128xf32>
    %15 = arith.mulf %14, %13 : vector<128x128xf32>
    %cst_9 = arith.constant 5.000000e-01 : f32
    %16 = vector.broadcast %cst_9 : f32 to vector<128x128xf32>
    %17 = arith.addf %15, %16 : vector<128x128xf32>
    %18 = arith.mulf %10, %17 : vector<128x128xf32>
    %19 = vector.shape_cast %18 : vector<128x128xf32> to vector<2x8x8x128xf32>
    %20 = arith.truncf %19 : vector<2x8x8x128xf32> to vector<2x8x8x128xbf16>
    %c0_10 = arith.constant 0 : index
    %c1 = arith.constant 1 : index
    %c1_11 = arith.constant 1 : index
    %c0_12 = arith.constant 0 : index
    %21 = vector.load %arg8[%c0_10, %c1, %c1_11, %c0_12] : memref<2x10x10x128xbf16, #tpu.memory_space<vmem>>, vector<2x8x8x128xbf16>
    tpu.vector_store %arg8[%c0_10, %c1, %c1_11, %c0_12], %20 {strides = array<i32>} : memref<2x10x10x128xbf16, #tpu.memory_space<vmem>>, vector<2x8x8x128xbf16>,
    %22 = vector.extract_strided_slice %6 {offsets = [0, 128], sizes = [128, 128], strides = [1, 1]} : vector<128x256xf32> to vector<128x128xf32>
    %c0_13 = arith.constant 0 : index
    %c0_14 = arith.constant 0 : index
    %23 = vector.load %arg4[%c0_13, %c0_14] : memref<1x128xf32, #tpu.memory_space<vmem>>, vector<1x128xf32>
    %24 = vector.broadcast %23 : vector<1x128xf32> to vector<128x128xf32>
    %25 = arith.addf %22, %24 : vector<128x128xf32>
    %c0_15 = arith.constant 0 : index
    %c0_16 = arith.constant 0 : index
    %26 = vector.load %arg6[%c0_15, %c0_16] : memref<1x128xf32, #tpu.memory_space<vmem>>, vector<1x128xf32>
    %27 = vector.broadcast %26 : vector<1x128xf32> to vector<128x128xf32>
    %28 = arith.addf %25, %27 : vector<128x128xf32>
    %c0_17 = arith.constant 0 : index
    %c0_18 = arith.constant 0 : index
    %c0_19 = arith.constant 0 : index
    %c0_20 = arith.constant 0 : index
    %29 = vector.load %arg8[%c0_17, %c0_18, %c0_19, %c0_20] : memref<2x10x10x128xbf16, #tpu.memory_space<vmem>>, vector<2x8x8x128xbf16>
    %30 = vector.shape_cast %29 : vector<2x8x8x128xbf16> to vector<128x128xbf16>
    %c0_21 = arith.constant 0 : index
    %c0_22 = arith.constant 0 : index
    %c0_23 = arith.constant 0 : index
    %31 = vector.load %arg5[%c0_21, %c0_22, %c0_23] : memref<9x128x128xbf16, #tpu.memory_space<vmem>>, vector<1x128x128xbf16>
    %32 = vector.shape_cast %31 : vector<1x128x128xbf16> to vector<128x128xbf16>
    %cst_24 = arith.constant dense<0.000000e+00> : vector<128x128xf32>
    %33 = tpu.matmul %30, %32, %cst_24 {dimension_numbers = #tpu.dot_dimension_numbers<[1], [0], [0], [1], [0, 0, 1, 1], [], []>} : vector<128x128xbf16>, vector<128x128xbf16>, vector<128x128xf32> -> vector<128x128xf32>
    %34 = arith.addf %28, %33 : vector<128x128xf32>
    %c0_25 = arith.constant 0 : index
    %c0_26 = arith.constant 0 : index
    %c1_27 = arith.constant 1 : index
    %c0_28 = arith.constant 0 : index
    %35 = vector.load %arg8[%c0_25, %c0_26, %c1_27, %c0_28] : memref<2x10x10x128xbf16, #tpu.memory_space<vmem>>, vector<2x8x8x128xbf16>
    %36 = vector.shape_cast %35 : vector<2x8x8x128xbf16> to vector<128x128xbf16>
    %c1_29 = arith.constant 1 : index
    %c0_30 = arith.constant 0 : index
    %c0_31 = arith.constant 0 : index
    %37 = vector.load %arg5[%c1_29, %c0_30, %c0_31] : memref<9x128x128xbf16, #tpu.memory_space<vmem>>, vector<1x128x128xbf16>
    %38 = vector.shape_cast %37 : vector<1x128x128xbf16> to vector<128x128xbf16>
    %cst_32 = arith.constant dense<0.000000e+00> : vector<128x128xf32>
    %39 = tpu.matmul %36, %38, %cst_32 {dimension_numbers = #tpu.dot_dimension_numbers<[1], [0], [0], [1], [0, 0, 1, 1], [], []>} : vector<128x128xbf16>, vector<128x128xbf16>, vector<128x128xf32> -> vector<128x128xf32>
    %40 = arith.addf %34, %39 : vector<128x128xf32>
    %c0_33 = arith.constant 0 : index
    %c0_34 = arith.constant 0 : index
    %c2 = arith.constant 2 : index
    %c0_35 = arith.constant 0 : index
    %41 = vector.load %arg8[%c0_33, %c0_34, %c2, %c0_35] : memref<2x10x10x128xbf16, #tpu.memory_space<vmem>>, vector<2x8x8x128xbf16>
    %42 = vector.shape_cast %41 : vector<2x8x8x128xbf16> to vector<128x128xbf16>
    %c2_36 = arith.constant 2 : index
    %c0_37 = arith.constant 0 : index
    %c0_38 = arith.constant 0 : index
    %43 = vector.load %arg5[%c2_36, %c0_37, %c0_38] : memref<9x128x128xbf16, #tpu.memory_space<vmem>>, vector<1x128x128xbf16>
    %44 = vector.shape_cast %43 : vector<1x128x128xbf16> to vector<128x128xbf16>
    %cst_39 = arith.constant dense<0.000000e+00> : vector<128x128xf32>
    %45 = tpu.matmul %42, %44, %cst_39 {dimension_numbers = #tpu.dot_dimension_numbers<[1], [0], [0], [1], [0, 0, 1, 1], [], []>} : vector<128x128xbf16>, vector<128x128xbf16>, vector<128x128xf32> -> vector<128x128xf32>
    %46 = arith.addf %40, %45 : vector<128x128xf32>
    %c0_40 = arith.constant 0 : index
    %c1_41 = arith.constant 1 : index
    %c0_42 = arith.constant 0 : index
    %c0_43 = arith.constant 0 : index
    %47 = vector.load %arg8[%c0_40, %c1_41, %c0_42, %c0_43] : memref<2x10x10x128xbf16, #tpu.memory_space<vmem>>, vector<2x8x8x128xbf16>
    %48 = vector.shape_cast %47 : vector<2x8x8x128xbf16> to vector<128x128xbf16>
    %c3 = arith.constant 3 : index
    %c0_44 = arith.constant 0 : index
    %c0_45 = arith.constant 0 : index
    %49 = vector.load %arg5[%c3, %c0_44, %c0_45] : memref<9x128x128xbf16, #tpu.memory_space<vmem>>, vector<1x128x128xbf16>
    %50 = vector.shape_cast %49 : vector<1x128x128xbf16> to vector<128x128xbf16>
    %cst_46 = arith.constant dense<0.000000e+00> : vector<128x128xf32>
    %51 = tpu.matmul %48, %50, %cst_46 {dimension_numbers = #tpu.dot_dimension_numbers<[1], [0], [0], [1], [0, 0, 1, 1], [], []>} : vector<128x128xbf16>, vector<128x128xbf16>, vector<128x128xf32> -> vector<128x128xf32>
    %52 = arith.addf %46, %51 : vector<128x128xf32>
    %c0_47 = arith.constant 0 : index
    %c1_48 = arith.constant 1 : index
    %c1_49 = arith.constant 1 : index
    %c0_50 = arith.constant 0 : index
    %53 = vector.load %arg8[%c0_47, %c1_48, %c1_49, %c0_50] : memref<2x10x10x128xbf16, #tpu.memory_space<vmem>>, vector<2x8x8x128xbf16>
    %54 = vector.shape_cast %53 : vector<2x8x8x128xbf16> to vector<128x128xbf16>
    %c4 = arith.constant 4 : index
    %c0_51 = arith.constant 0 : index
    %c0_52 = arith.constant 0 : index
    %55 = vector.load %arg5[%c4, %c0_51, %c0_52] : memref<9x128x128xbf16, #tpu.memory_space<vmem>>, vector<1x128x128xbf16>
    %56 = vector.shape_cast %55 : vector<1x128x128xbf16> to vector<128x128xbf16>
    %cst_53 = arith.constant dense<0.000000e+00> : vector<128x128xf32>
    %57 = tpu.matmul %54, %56, %cst_53 {dimension_numbers = #tpu.dot_dimension_numbers<[1], [0], [0], [1], [0, 0, 1, 1], [], []>} : vector<128x128xbf16>, vector<128x128xbf16>, vector<128x128xf32> -> vector<128x128xf32>
    %58 = arith.addf %52, %57 : vector<128x128xf32>
    %c0_54 = arith.constant 0 : index
    %c1_55 = arith.constant 1 : index
    %c2_56 = arith.constant 2 : index
    %c0_57 = arith.constant 0 : index
    %59 = vector.load %arg8[%c0_54, %c1_55, %c2_56, %c0_57] : memref<2x10x10x128xbf16, #tpu.memory_space<vmem>>, vector<2x8x8x128xbf16>
    %60 = vector.shape_cast %59 : vector<2x8x8x128xbf16> to vector<128x128xbf16>
    %c5 = arith.constant 5 : index
    %c0_58 = arith.constant 0 : index
    %c0_59 = arith.constant 0 : index
    %61 = vector.load %arg5[%c5, %c0_58, %c0_59] : memref<9x128x128xbf16, #tpu.memory_space<vmem>>, vector<1x128x128xbf16>
    %62 = vector.shape_cast %61 : vector<1x128x128xbf16> to vector<128x128xbf16>
    %cst_60 = arith.constant dense<0.000000e+00> : vector<128x128xf32>
    %63 = tpu.matmul %60, %62, %cst_60 {dimension_numbers = #tpu.dot_dimension_numbers<[1], [0], [0], [1], [0, 0, 1, 1], [], []>} : vector<128x128xbf16>, vector<128x128xbf16>, vector<128x128xf32> -> vector<128x128xf32>
    %64 = arith.addf %58, %63 : vector<128x128xf32>
    %c0_61 = arith.constant 0 : index
    %c2_62 = arith.constant 2 : index
    %c0_63 = arith.constant 0 : index
    %c0_64 = arith.constant 0 : index
    %65 = vector.load %arg8[%c0_61, %c2_62, %c0_63, %c0_64] : memref<2x10x10x128xbf16, #tpu.memory_space<vmem>>, vector<2x8x8x128xbf16>
    %66 = vector.shape_cast %65 : vector<2x8x8x128xbf16> to vector<128x128xbf16>
    %c6 = arith.constant 6 : index
    %c0_65 = arith.constant 0 : index
    %c0_66 = arith.constant 0 : index
    %67 = vector.load %arg5[%c6, %c0_65, %c0_66] : memref<9x128x128xbf16, #tpu.memory_space<vmem>>, vector<1x128x128xbf16>
    %68 = vector.shape_cast %67 : vector<1x128x128xbf16> to vector<128x128xbf16>
    %cst_67 = arith.constant dense<0.000000e+00> : vector<128x128xf32>
    %69 = tpu.matmul %66, %68, %cst_67 {dimension_numbers = #tpu.dot_dimension_numbers<[1], [0], [0], [1], [0, 0, 1, 1], [], []>} : vector<128x128xbf16>, vector<128x128xbf16>, vector<128x128xf32> -> vector<128x128xf32>
    %70 = arith.addf %64, %69 : vector<128x128xf32>
    %c0_68 = arith.constant 0 : index
    %c2_69 = arith.constant 2 : index
    %c1_70 = arith.constant 1 : index
    %c0_71 = arith.constant 0 : index
    %71 = vector.load %arg8[%c0_68, %c2_69, %c1_70, %c0_71] : memref<2x10x10x128xbf16, #tpu.memory_space<vmem>>, vector<2x8x8x128xbf16>
    %72 = vector.shape_cast %71 : vector<2x8x8x128xbf16> to vector<128x128xbf16>
    %c7 = arith.constant 7 : index
    %c0_72 = arith.constant 0 : index
    %c0_73 = arith.constant 0 : index
    %73 = vector.load %arg5[%c7, %c0_72, %c0_73] : memref<9x128x128xbf16, #tpu.memory_space<vmem>>, vector<1x128x128xbf16>
    %74 = vector.shape_cast %73 : vector<1x128x128xbf16> to vector<128x128xbf16>
    %cst_74 = arith.constant dense<0.000000e+00> : vector<128x128xf32>
    %75 = tpu.matmul %72, %74, %cst_74 {dimension_numbers = #tpu.dot_dimension_numbers<[1], [0], [0], [1], [0, 0, 1, 1], [], []>} : vector<128x128xbf16>, vector<128x128xbf16>, vector<128x128xf32> -> vector<128x128xf32>
    %76 = arith.addf %70, %75 : vector<128x128xf32>
    %c0_75 = arith.constant 0 : index
    %c2_76 = arith.constant 2 : index
    %c2_77 = arith.constant 2 : index
    %c0_78 = arith.constant 0 : index
    %77 = vector.load %arg8[%c0_75, %c2_76, %c2_77, %c0_78] : memref<2x10x10x128xbf16, #tpu.memory_space<vmem>>, vector<2x8x8x128xbf16>
    %78 = vector.shape_cast %77 : vector<2x8x8x128xbf16> to vector<128x128xbf16>
    %c8 = arith.constant 8 : index
    %c0_79 = arith.constant 0 : index
    %c0_80 = arith.constant 0 : index
    %79 = vector.load %arg5[%c8, %c0_79, %c0_80] : memref<9x128x128xbf16, #tpu.memory_space<vmem>>, vector<1x128x128xbf16>
    %80 = vector.shape_cast %79 : vector<1x128x128xbf16> to vector<128x128xbf16>
    %cst_81 = arith.constant dense<0.000000e+00> : vector<128x128xf32>
    %81 = tpu.matmul %78, %80, %cst_81 {dimension_numbers = #tpu.dot_dimension_numbers<[1], [0], [0], [1], [0, 0, 1, 1], [], []>} : vector<128x128xbf16>, vector<128x128xbf16>, vector<128x128xf32> -> vector<128x128xf32>
    %82 = arith.addf %76, %81 : vector<128x128xf32>
    %cst_82 = arith.constant 5.000000e-01 : f32
    %83 = vector.broadcast %cst_82 : f32 to vector<128x128xf32>
    %84 = arith.mulf %83, %82 : vector<128x128xf32>
    %85 = math.tanh %84 : vector<128x128xf32>
    %cst_83 = arith.constant 5.000000e-01 : f32
    %86 = vector.broadcast %cst_83 : f32 to vector<128x128xf32>
    %87 = arith.mulf %86, %85 : vector<128x128xf32>
    %cst_84 = arith.constant 5.000000e-01 : f32
    %88 = vector.broadcast %cst_84 : f32 to vector<128x128xf32>
    %89 = arith.addf %87, %88 : vector<128x128xf32>
    %90 = arith.mulf %82, %89 : vector<128x128xf32>
    %91 = vector.shape_cast %90 : vector<128x128xf32> to vector<2x64x128xf32>
    %c0_85 = arith.constant 0 : index
    %c0_86 = arith.constant 0 : index
    %c0_87 = arith.constant 0 : index
    %92 = vector.load %arg7[%c0_85, %c0_86, %c0_87] : memref<2x64x128xf32, #tpu.memory_space<vmem>>, vector<2x64x128xf32>
    tpu.vector_store %arg7[%c0_85, %c0_86, %c0_87], %91 {strides = array<i32>} : memref<2x64x128xf32, #tpu.memory_space<vmem>>, vector<2x64x128xf32>,
    return
  }
  func.func @transform_0(%arg0: i32) -> (i32, i32, i32) {
    %c0_i32 = arith.constant 0 : i32
    %c0_i32_0 = arith.constant 0 : i32
    %c0_i32_1 = arith.constant 0 : i32
    return %arg0, %c0_i32, %c0_i32_0 : i32, i32, i32
  }
  func.func @transform_1(%arg0: i32) -> (i32, i32) {
    %c0_i32 = arith.constant 0 : i32
    %c0_i32_0 = arith.constant 0 : i32
    %c0_i32_1 = arith.constant 0 : i32
    return %c0_i32, %c0_i32_0 : i32, i32
  }
  func.func @transform_2(%arg0: i32) -> (i32, i32) {
    %c0_i32 = arith.constant 0 : i32
    %c0_i32_0 = arith.constant 0 : i32
    %c0_i32_1 = arith.constant 0 : i32
    return %c0_i32, %c0_i32_0 : i32, i32
  }
  func.func @transform_3(%arg0: i32) -> (i32, i32) {
    %c0_i32 = arith.constant 0 : i32
    %c0_i32_0 = arith.constant 0 : i32
    %c0_i32_1 = arith.constant 0 : i32
    return %c0_i32, %c0_i32_0 : i32, i32
  }
  func.func @transform_4(%arg0: i32) -> (i32, i32, i32) {
    %c0_i32 = arith.constant 0 : i32
    %c0_i32_0 = arith.constant 0 : i32
    %c0_i32_1 = arith.constant 0 : i32
    %c0_i32_2 = arith.constant 0 : i32
    return %c0_i32, %c0_i32_0, %c0_i32_1 : i32, i32, i32
  }
  func.func @transform_5(%arg0: i32) -> (i32, i32) {
    %c0_i32 = arith.constant 0 : i32
    %c0_i32_0 = arith.constant 0 : i32
    %c0_i32_1 = arith.constant 0 : i32
    return %c0_i32, %c0_i32_0 : i32, i32
  }
  func.func @transform_6(%arg0: i32) -> (i32, i32, i32) {
    %c0_i32 = arith.constant 0 : i32
    %c0_i32_0 = arith.constant 0 : i32
    %c0_i32_1 = arith.constant 0 : i32
    return %arg0, %c0_i32, %c0_i32_0 : i32, i32, i32
  }
}

</mosaic_0001>

<bundles_post_ra>
// kernel: residual_block_pallas.1
= control target key start
LH: loop header
LB: loop body
LE: loop exit
PB: predicated region body
PF: predicated region fallthrough
CT: control target
= control target key end

     0   :  { %v5035_v1 = vmov 0   ;;  %vm669_vm0 = vcmask 1043456   ;;  %vm670_vm1 = vsmask.f32 7938  ;;  %vm675_vm2 = vcmask 1040384   ;;  %s6544_s1 = inlined_call_operand.vmem [shape: bf16[128,256], index: 1, kind: input, shape index: {}]   ;;  %s6545_s0 = inlined_call_operand.vmem [shape: bf16[2,64,128], index: 0, kind: input, shape index: {}]   ;;  %s6546_s4 = inlined_call_operand.vmem [shape: bf16[9,128,128], index: 4, kind: input, shape index: {}]   ;;  %s6547_s2 = inlined_call_operand.vmem [shape: f32[1,128], index: 2, kind: input, shape index: {}]   ;;  %s6548_s3 = inlined_call_operand.vmem [shape: f32[1,128], index: 3, kind: input, shape index: {}]   ;;  %s6549_s5 = inlined_call_operand.vmem [shape: f32[1,128], index: 5, kind: input, shape index: {}]   ;;  %s6550_s6 = inlined_call_operand.vmem [shape: f32[2,64,128], index: 6, kind: output, shape index: {}]  }
   0x1   :  { %v4841_v0 = vld [vmem:[%s6544_s1 + $0x74] ss:$8 sps:$4 sm:$0xff]   ;;  %260 = vmatprep.mubr.bf16.mxu0 %v5035_v1  ;;  %28 = vst [vmem:[#allocation2] sm:$0xf] %v5035_v1  ;;  %29 = vst [vmem:[#allocation2 + $0x4] sm:$0x1] %v5035_v1 }
   0x2   :  { %30 = vst [vmem:[#allocation2 + $0x8] sm:$0xf] %v5035_v1  ;;  %31 = vst [vmem:[#allocation2 + $0xc] sm:$0x1] %v5035_v1  ;;  %v4843_v2 = vld [vmem:[%s6544_s1 + $0x70] ss:$8 sps:$4 sm:$0xff]   ;;  %228 = vmatprep.subr.bf16.mxu0 %v4841_v0 }
   0x3   :  { %32 = vst [vmem:[#allocation2 + $0x10] sm:$0xf] %v5035_v1  ;;  %33 = vst [vmem:[#allocation2 + $0x14] sm:$0x1] %v5035_v1  ;;  %v4844_v3 = vld [vmem:[%s6544_s1 + $0x64] ss:$8 sps:$4 sm:$0xff]   ;;  %229 = vmatpush1.bf16.msra.mxu0 %v4843_v2 }
   0x4   :  { %34 = vst [vmem:[#allocation2 + $0x18] sm:$0xf] %v5035_v1  ;;  %35 = vst [vmem:[#allocation2 + $0x1c] sm:$0x1] %v5035_v1  ;;  %v4846_v4 = vld [vmem:[%s6544_s1 + $0x60] ss:$8 sps:$4 sm:$0xff]   ;;  %230 = vmatprep.subr.bf16.mxu0 %v4844_v3 }
   0x5   :  { %36 = vst [vmem:[#allocation2 + $0x20] sm:$0xf] %v5035_v1  ;;  %37 = vst [vmem:[#allocation2 + $0x24] sm:$0x1] %v5035_v1  ;;  %v4847_v5 = vld [vmem:[%s6544_s1 + $0x54] ss:$8 sps:$4 sm:$0xff]  }
   0x6   :  { %38 = vst [vmem:[#allocation2 + $0x28] sm:$0xf] %v5035_v1  ;;  %39 = vst [vmem:[#allocation2 + $0x2c] sm:$0x1] %v5035_v1  ;;  %v4849_v6 = vld [vmem:[%s6544_s1 + $0x50] ss:$8 sps:$4 sm:$0xff]  }
   0x7   :  { %40 = vst [vmem:[#allocation2 + $0x30] sm:$0xf] %v5035_v1  ;;  %41 = vst [vmem:[#allocation2 + $0x34] sm:$0x1] %v5035_v1  ;;  %231 = vmatpush1.bf16.msra.mxu0 %v4846_v4  ;;  %v4850_v7 = vld [vmem:[%s6544_s1 + $0x44] ss:$8 sps:$4 sm:$0xff]  }
   0x8   :  { %42 = vst [vmem:[#allocation2 + $0x38] sm:$0xf] %v5035_v1  ;;  %43 = vst [vmem:[#allocation2 + $0x3c] sm:$0x1] %v5035_v1  ;;  %232 = vmatprep.subr.bf16.mxu0 %v4847_v5  ;;  %v4852_v8 = vld [vmem:[%s6544_s1 + $0x40] ss:$8 sps:$4 sm:$0xff]  }
   0x9   :  { %44 = vst [vmem:[#allocation2 + $0x40] sm:$0xf] %v5035_v1  ;;  %45 = vst [vmem:[#allocation2 + $0x44] sm:$0x1] %v5035_v1  ;;  %v4853_v9 = vld [vmem:[%s6544_s1 + $0x34] ss:$8 sps:$4 sm:$0xff]  }
   0xa   :  { %46 = vst [vmem:[#allocation2 + $0x48] sm:$0xf] %v5035_v1  ;;  %47 = vst [vmem:[#allocation2 + $0x4c] sm:$0x1] %v5035_v1  ;;  %v4855_v10 = vld [vmem:[%s6544_s1 + $0x30] ss:$8 sps:$4 sm:$0xff]  }
   0xb   :  { %48 = vst [vmem:[#allocation2 + $0x50] sm:$0xf] %v5035_v1  ;;  %49 = vst [vmem:[#allocation2 + $0x54] sm:$0x1] %v5035_v1  ;;  %233 = vmatpush1.bf16.msra.mxu0 %v4849_v6  ;;  %v4856_v11 = vld [vmem:[%s6544_s1 + $0x24] ss:$8 sps:$4 sm:$0xff]  }
   0xc   :  { %50 = vst [vmem:[#allocation2 + $0x58] sm:$0xf] %v5035_v1  ;;  %51 = vst [vmem:[#allocation2 + $0x5c] sm:$0x1] %v5035_v1  ;;  %234 = vmatprep.subr.bf16.mxu0 %v4850_v7  ;;  %v4858_v12 = vld [vmem:[%s6544_s1 + $0x20] ss:$8 sps:$4 sm:$0xff]  }
   0xd   :  { %52 = vst [vmem:[#allocation2 + $0x60] sm:$0xf] %v5035_v1  ;;  %53 = vst [vmem:[#allocation2 + $0x64] sm:$0x1] %v5035_v1  ;;  %v4859_v13 = vld [vmem:[%s6544_s1 + $0x14] ss:$8 sps:$4 sm:$0xff]  }
   0xe   :  { %54 = vst [vmem:[#allocation2 + $0x68] sm:$0xf] %v5035_v1  ;;  %55 = vst [vmem:[#allocation2 + $0x6c] sm:$0x1] %v5035_v1  ;;  %v4861_v14 = vld [vmem:[%s6544_s1 + $0x10] ss:$8 sps:$4 sm:$0xff]  }
   0xf   :  { %56 = vst [vmem:[#allocation2 + $0x70] sm:$0xf] %v5035_v1  ;;  %57 = vst [vmem:[#allocation2 + $0x74] sm:$0x1] %v5035_v1  ;;  %235 = vmatpush1.bf16.msra.mxu0 %v4852_v8  ;;  %v4862_v15 = vld [vmem:[%s6544_s1 + $0x4] ss:$8 sps:$4 sm:$0xff]  }
  0x10   :  { %58 = vst [vmem:[#allocation2 + $0x78] sm:$0xf] %v5035_v1  ;;  %59 = vst [vmem:[#allocation2 + $0x7c] sm:$0x1] %v5035_v1  ;;  %236 = vmatprep.subr.bf16.mxu0 %v4853_v9  ;;  %v4864_v16 = vld [vmem:[%s6544_s1] ss:$8 sps:$4 sm:$0xff]  }
  0x11   :  { %60 = vst [vmem:[#allocation2 + $0x80] sm:$0xf] %v5035_v1  ;;  %61 = vst [vmem:[#allocation2 + $0x84] sm:$0x1] %v5035_v1  ;;  %v4865_v17 = vld [vmem:[%s6545_s0] sm:$0xff]   ;;  %v4866_v18 = vld [vmem:[%s6545_s0 + $0x8] sm:$0xff]  }
  0x12   :  { %62 = vst [vmem:[#allocation2 + $0x88] sm:$0xf] %v5035_v1  ;;  %63 = vst [vmem:[#allocation2 + $0x8c] sm:$0x1] %v5035_v1  ;;  %v4867_v19 = vld [vmem:[%s6545_s0 + $0x10] sm:$0xff]   ;;  %v4868_v20 = vld [vmem:[%s6545_s0 + $0x18] sm:$0xff]  }
  0x13   :  { %64 = vst [vmem:[#allocation2 + $0x90] sm:$0xf] %v5035_v1  ;;  %65 = vst [vmem:[#allocation2 + $0x94] sm:$0x1] %v5035_v1  ;;  %237 = vmatpush1.bf16.msra.mxu0 %v4855_v10  ;;  %v4869_v21 = vld [vmem:[%s6545_s0 + $0x20] sm:$0xff]   ;;  %v4870_v22 = vld [vmem:[%s6545_s0 + $0x28] sm:$0xff]  }
  0x14   :  { %66 = vst [vmem:[#allocation2 + $0x98] sm:$0xf] %v5035_v1  ;;  %67 = vst [vmem:[#allocation2 + $0x9c] sm:$0x1] %v5035_v1  ;;  %238 = vmatprep.subr.bf16.mxu0 %v4856_v11  ;;  %v4871_v23 = vld [vmem:[%s6545_s0 + $0x30] sm:$0xff]   ;;  %v4872_v24 = vld [vmem:[%s6545_s0 + $0x38] sm:$0xff]  }
  0x15   :  { %v4873_v25 = vld [vmem:[%s6546_s4 + $0x38] sm:$0xff]   ;;  %v4875_v27 = vld [vmem:[%s6546_s4 + $0x30] sm:$0xff]   ;;  %v4877_v29 = vld [vmem:[%s6546_s4 + $0x28] sm:$0xff]   ;;  %vm676_vm3 = vsmask.f32 256  ;;  %vm1575_vm4 = vcmask 1042432  }
  0x16   :  { %4536 = vmatprep.subr.bf16.mxu1 %v4873_v25  ;;  %v4874_v26 = vld [vmem:[%s6546_s4 + $0xb8] sm:$0xff]   ;;  %v4876_v28 = vld [vmem:[%s6546_s4 + $0xb0] sm:$0xff]   ;;  %v4878_v30 = vld [vmem:[%s6546_s4 + $0xa8] sm:$0xff]   ;;  %vm1576_vm7 = vcmask 1046532   ;;  %vm1090_vm9 = vsmask.f32 3328 }
  0x17   :  { %239 = vmatpush1.bf16.msra.mxu0 %v4858_v12  ;;  %4537 = vmatpush3.bf16.msra.mxu1 %v4873_v25  ;;  %v4879_v31 = vld [vmem:[%s6546_s4 + $0x20] sm:$0xff]   ;;  %v4881_v33 = vld [vmem:[%s6546_s4 + $0x18] sm:$0xff]   ;;  %v4883_v35 = vld [vmem:[%s6546_s4 + $0x10] sm:$0xff]   ;;  %vm1091_vm10 = vsmask.f32 7440 }
  0x18   :  { %240 = vmatprep.subr.bf16.mxu0 %v4859_v13  ;;  %4538 = vmatprep.subr.bf16.mxu1 %v4875_v27  ;;  %v4880_v32 = vld [vmem:[%s6546_s4 + $0xa0] sm:$0xff]   ;;  %v4882_v34 = vld [vmem:[%s6546_s4 + $0x98] sm:$0xff]   ;;  %v4884_v36 = vld [vmem:[%s6546_s4 + $0x90] sm:$0xff]  }
  0x19   :  { %v4885_v37 = vld [vmem:[%s6546_s4 + $0x8] sm:$0xff]   ;;  %v4888_v39 = vld [vmem:[%s6546_s4] sm:$0xff]   ;;  %v5242_v41 = vld [vmem:[%s6546_s4 + $0x78] sm:$0xff]  }
  0x1a   :  { %v4887_v38 = vld [vmem:[%s6546_s4 + $0x88] sm:$0xff]   ;;  %v4889_v40 = vld [vmem:[%s6546_s4 + $0x80] sm:$0xff]   ;;  %v5248_v42 = vld [vmem:[%s6546_s4 + $0x138] sm:$0xff]  }
  0x1b   :  { %241 = vmatpush1.bf16.msra.mxu0 %v4861_v14  ;;  %4539 = vmatpush3.bf16.msra.mxu1 %v4875_v27  ;;  %v5254_v43 = vld [vmem:[%s6547_s2] ss:$0 sm:$0xff]  ;;  %vm5300_vm5 = vmand %vm669_vm0, %vm670_vm1 }
  0x1c   :  { %242 = vmatprep.subr.bf16.mxu0 %v4862_v15  ;;  %4540 = vmatprep.subr.bf16.mxu1 %v4877_v29  ;;  %v1058_v2 = vld [vmem:[#allocation2] sm:$0xf]  ;;  %vm5309_vm6 = vmand %vm675_vm2, %vm676_vm3 }
  0x1d   :  { %v1094_v8 = vshrl.u32 %v1058_v2, 16  ;;  %v1097_v12 = vshll.u32 %v1058_v2, 16  ;;  %vm5329_vm8 = vmor %vm1575_vm4, %vm1576_vm7  ;;  %v681_v2 = vld [vmem:[#allocation2 + $0x10] sm:$0xf] }
  0x1e   :  { %vm5604_vm11 = vmor %vm1090_vm9, %vm1091_vm10 }
  0x1f   :  { %243 = vmatpush1.bf16.msra.mxu0 %v4864_v16  ;;  %4541 = vmatpush3.bf16.msra.mxu1 %v4877_v29  ;;  %v5295_v25 = vrot.slane %v1097_v12, 5 }
  0x20   :  { %4600 = vmatprep.subr.bf16.mxu0 %v4874_v26  ;;  %4542 = vmatprep.subr.bf16.mxu1 %v4879_v31 }
  0x22   :  { %261 = vmatmul.mubr.bf16.vlgmr.msra.gmra.mxu0 %v4865_v17 }
  0x23   :  { %270 = vmatprep.mubr.bf16.mxu0 %v5035_v1  ;;  %4601 = vmatpush3.bf16.msra.mxu0 %v4874_v26 }
  0x24   :  { %4602 = vmatprep.subr.bf16.mxu0 %v4876_v28  ;;  %4543 = vmatpush3.bf16.msra.mxu1 %v4879_v31  ;;  %v672_v31 = vld [vmem:[#allocation2 + $0x8] sm:$0xf] }
  0x25   :  { %4544 = vmatprep.subr.bf16.mxu1 %v4881_v33 }
  0x27   :  { %4603 = vmatpush3.bf16.msra.mxu0 %v4876_v28 }
  0x28   :  { %4604 = vmatprep.subr.bf16.mxu0 %v4878_v30  ;;  %4545 = vmatpush3.bf16.msra.mxu1 %v4881_v33 }
  0x29   :  { %4546 = vmatprep.subr.bf16.mxu1 %v4883_v35 }
  0x2a   :  { %271 = vmatmul.mubr.bf16.gmra.mxu0 %v4866_v18 }
  0x2b   :  { %280 = vmatprep.mubr.bf16.mxu0 %v5035_v1  ;;  %4605 = vmatpush3.bf16.msra.mxu0 %v4878_v30 }
  0x2c   :  { %4606 = vmatprep.subr.bf16.mxu0 %v4880_v32  ;;  %4547 = vmatpush3.bf16.msra.mxu1 %v4883_v35 }
  0x2d   :  { %4548 = vmatprep.subr.bf16.mxu1 %v4885_v37 }
  0x2f   :  { %4607 = vmatpush3.bf16.msra.mxu0 %v4880_v32 }
  0x30   :  { %4608 = vmatprep.subr.bf16.mxu0 %v4882_v34  ;;  %4549 = vmatpush3.bf16.msra.mxu1 %v4885_v37  ;;  %v678_v37 = vld [vmem:[#allocation2 + $0xc] sm:$0x1] }
  0x31   :  { %4550 = vmatprep.subr.bf16.mxu1 %v4888_v39 }
  0x32   :  { %281 = vmatmul.mubr.bf16.gmra.mxu0 %v4867_v19  ;;  %v5291_v19 = vld [vmem:[#allocation2 + $0x4] sm:$0x1] }
  0x33   :  { %290 = vmatprep.mubr.bf16.mxu0 %v5035_v1  ;;  %4609 = vmatpush3.bf16.msra.mxu0 %v4882_v34 }
  0x34   :  { %4610 = vmatprep.subr.bf16.mxu0 %v4884_v36  ;;  %4551 = vmatpush3.bf16.msra.mxu1 %v4888_v39 }
  0x35   :  { %4568 = vmatprep.subr.bf16.mxu1 %v5242_v41 }
  0x37   :  { %4611 = vmatpush3.bf16.msra.mxu0 %v4884_v36 }
  0x38   :  { %4612 = vmatprep.subr.bf16.mxu0 %v4887_v38 }
  0x3a   :  { %291 = vmatmul.mubr.bf16.gmra.mxu0 %v4868_v20  ;;  %v5293_v20 = vrot.slane %v1094_v8, 4 }
  0x3b   :  { %300 = vmatprep.mubr.bf16.mxu0 %v5035_v1  ;;  %4613 = vmatpush3.bf16.msra.mxu0 %v4887_v38 }
  0x3c   :  { %4614 = vmatprep.subr.bf16.mxu0 %v4889_v40 }
  0x3f   :  { %4615 = vmatpush3.bf16.msra.mxu0 %v4889_v40  ;;  %v1580_v40 = vrot.slane %v5291_v19, 5 }
  0x40   :  { %4664 = vmatprep.subr.bf16.mxu0 %v5248_v42 }
  0x42   :  { %301 = vmatmul.mubr.bf16.gmra.mxu0 %v4869_v21 }
  0x43   :  { %310 = vmatprep.mubr.bf16.mxu0 %v5035_v1 }
  0x4a   :  { %311 = vmatmul.mubr.bf16.gmra.mxu0 %v4870_v22 }
  0x4b   :  { %320 = vmatprep.mubr.bf16.mxu0 %v5035_v1 }
  0x52   :  { %321 = vmatmul.mubr.bf16.gmra.mxu0 %v4871_v23 }
  0x53   :  { %330 = vmatprep.mubr.bf16.mxu0 %v5035_v1 }
  0x5a   :  { %331 = vmatmul.mubr.bf16.gmra.mxu0 %v4872_v24  ;;  %v1527_v24 = vld [vmem:[#allocation2] sm:$0xe] }
  0x5b   :  { %v4104_v39 = vrot.slane %v1527_v24, 9 }
  0xe2   :  { %v262_v44 = vpop.f32.mrf.mxu0 }
  0xe3   :  { %v348_v45 = vadd.f32 %v5254_v43, %v262_v44 }
  0xe4   :  { %v5257_v46 = vpop.f32.mrf.mxu0 }
  0xe5   :  { %v364_v47 = vmul.f32 0.5, %v348_v45 }
  0xe6   :  { %v266_v48 = vpop.f32.mrf.mxu0 }
  0xe7   :  { %4969 = vtanh.f32 %v364_v47  ;;  %v349_v49 = vadd.f32 %v5254_v43, %v266_v48  ;;  %v1100_v48 = vor.u32 %v5295_v25, %v5293_v20  ;;  %v5340_v20 = vsel %vm5329_vm8, %v4104_v39, %v1580_v40 }
  0xe8   :  { %v5260_v50 = vpop.f32.mrf.mxu0 }
  0xe9   :  { %v365_v51 = vmul.f32 0.5, %v349_v49 }
  0xea   :  { %v272_v52 = vpop.f32.mrf.mxu0 }
  0xeb   :  { %4971 = vtanh.f32 %v365_v51  ;;  %v5263_v53 = vadd.f32 %v5254_v43, %v272_v52 }
  0xec   :  { %v5265_v54 = vpop.f32.mrf.mxu0 }
  0xed   :  { %v366_v55 = vmul.f32 0.5, %v5263_v53 }
  0xee   :  { %v276_v56 = vpop.f32.mrf.mxu0 }
  0xef   :  { %4973 = vtanh.f32 %v366_v55  ;;  %v5269_v57 = vadd.f32 %v5254_v43, %v276_v56 }
  0xf0   :  { %v5271_v58 = vpop.f32.mrf.mxu0 }
  0xf1   :  { %v367_v59 = vmul.f32 0.5, %v5269_v57 }
  0xf2   :  { %v282_v60 = vpop.f32.mrf.mxu0 }
  0xf3   :  { %4975 = vtanh.f32 %v367_v59  ;;  %v5275_v61 = vadd.f32 %v5254_v43, %v282_v60 }
  0xf4   :  { %v4970_v62 = vpop.eup %4969  ;;  %v5277_v63 = vpop.f32.mrf.mxu0 }
  0xf5   :  { %v396_v0 = vmul.f32 0.5, %v4970_v62  ;;  %v368_v1 = vmul.f32 0.5, %v5275_v61 }
  0xf6   :  { %v286_v3 = vpop.f32.mrf.mxu0 }
  0xf7   :  { %v412_v4 = vadd.f32 0.5, %v396_v0  ;;  %4977 = vtanh.f32 %v368_v1  ;;  %v5281_v5 = vadd.f32 %v5254_v43, %v286_v3  ;;  %v684_v3 = vld [vmem:[#allocation2 + $0x14] sm:$0x1] }
  0xf8   :  { %v4972_v6 = vpop.eup %4971  ;;  %v5283_v7 = vpop.f32.mrf.mxu0 }
  0xf9   :  { %v428_v9 = vmul.f32 %v412_v4, %v348_v45  ;;  %v397_v10 = vmul.f32 0.5, %v4972_v6  ;;  %v369_v11 = vmul.f32 0.5, %v5281_v5 }
  0xfa   :  { %v292_v13 = vpop.f32.mrf.mxu0 }
  0xfb   :  { %v4376_v14 = vpack.c.bf16 %v428_v9, %v428_v9  ;;  %v413_v15 = vadd.f32 0.5, %v397_v10  ;;  %4979 = vtanh.f32 %v369_v11  ;;  %v5287_v16 = vadd.f32 %v5254_v43, %v292_v13 }
  0xfc   :  { %v4974_v17 = vpop.eup %4973  ;;  %v5289_v18 = vpop.f32.mrf.mxu0  ;;  %v1103_v9 = vshll.u32 %v5291_v19, 16 }
  0xfd   :  { %v509_v21 = vshrl.u32 %v4376_v14, 16  ;;  %v429_v22 = vmul.f32 %v413_v15, %v349_v49  ;;  %v398_v23 = vmul.f32 0.5, %v4974_v17  ;;  %v512_v26 = vshll.u32 %v4376_v14, 16 }
  0xfe   :  { %v370_v27 = vmul.f32 0.5, %v5287_v16  ;;  %v296_v28 = vpop.f32.mrf.mxu0 }
  0xff   :  { %v511_v29 = vrot.slane %v509_v21, 7  ;;  %v4377_v32 = vpack.c.bf16 %v429_v22, %v429_v22  ;;  %v414_v33 = vadd.f32 0.5, %v398_v23  ;;  %v5305_v34 = vadd.f32 %v5254_v43, %v296_v28  ;;  %v5346_v23 = vld [vmem:[#allocation2 + $0x50] sm:$0xe] }
 0x100   :  { %v4976_v35 = vpop.eup %4975  ;;  %4981 = vtanh.f32 %v370_v27  ;;  %v5313_v38 = vpop.f32.mrf.mxu0 }
 0x101   :  { %v514_v44 = vor.u32 %v512_v26, %v511_v29  ;;  %v515_v45 = vrot.slane %v511_v29, 4  ;;  %v517_v47 = vshrl.u32 %v4377_v32, 16  ;;  %v520_v49 = vshll.u32 %v4377_v32, 16  ;;  %v687_v26 = vld [vmem:[#allocation2 + $0x18] sm:$0xf] }
 0x102   :  { %v430_v51 = vmul.f32 %v414_v33, %v5263_v53  ;;  %v399_v52 = vmul.f32 0.5, %v4976_v35  ;;  %v371_v55 = vmul.f32 0.5, %v5305_v34  ;;  %v302_v56 = vpop.f32.mrf.mxu0  ;;  %v5354_v35 = vrot.slane %v1100_v48, 4 }
 0x103   :  { %v673_v59 = vsel %vm5300_vm5, %v514_v44, %v672_v31  ;;  %v679_v60 = vsel %vm5309_vm6, %v515_v45, %v678_v37  ;;  %v519_v62 = vrot.slane %v517_v47, 7  ;;  %v5325_v0 = vadd.f32 %v5254_v43, %v302_v56  ;;  %v690_v31 = vld [vmem:[#allocation2 + $0x1c] sm:$0x1]  ;;  %v5358_v47 = vld [vmem:[#allocation2 + $0x54] sm:$0x1] }
 0x104   :  { %v4978_v53 = vpop.eup %4977  ;;  %674 = vst [vmem:[#allocation2 + $0x8] sm:$0xf] %v673_v59  ;;  %680 = vst [vmem:[#allocation2 + $0xc] sm:$0x1] %v679_v60  ;;  %v4378_v4 = vpack.c.bf16 %v430_v51, %v430_v51  ;;  %v415_v6 = vadd.f32 0.5, %v399_v52  ;;  %4983 = vtanh.f32 %v371_v55  ;;  %v5333_v8 = vpop.f32.mrf.mxu0  ;;  %v5356_v37 = vrot.slane %v1103_v9, 5 }
 0x105   :  { %6557 = vst [vmem:[#allocation3_spill] sm:$0xff] %v5333_v8  ;;  %v522_v10 = vor.u32 %v520_v49, %v519_v62  ;;  %v523_v11 = vrot.slane %v519_v62, 4  ;;  %v400_v12 = vmul.f32 0.5, %v4978_v53  ;;  %v372_v13 = vmul.f32 0.5, %v5325_v0 }
 0x106   :  { %v525_v14 = vshrl.u32 %v4378_v4, 16  ;;  %v431_v15 = vmul.f32 %v415_v6, %v5269_v57  ;;  %v306_v17 = vpop.f32.mrf.mxu0  ;;  %v528_v57 = vshll.u32 %v4378_v4, 16  ;;  %v4112_v49 = vrot.slane %v5346_v23, 9  ;;  %v696_v4 = vld [vmem:[#allocation2 + $0x24] sm:$0x1] }
 0x107   :  { %v682_v21 = vsel %vm5300_vm5, %v522_v10, %v681_v2  ;;  %v685_v22 = vsel %vm5309_vm6, %v523_v11, %v684_v3  ;;  %v416_v19 = vadd.f32 0.5, %v400_v12  ;;  %4985 = vtanh.f32 %v372_v13  ;;  %v693_v3 = vld [vmem:[#allocation2 + $0x20] sm:$0xf] }
 0x108   :  { %v4980_v24 = vpop.eup %4979  ;;  %683 = vst [vmem:[#allocation2 + $0x10] sm:$0xf] %v682_v21  ;;  %686 = vst [vmem:[#allocation2 + $0x14] sm:$0x1] %v685_v22  ;;  %v527_v25 = vrot.slane %v525_v14, 7  ;;  %v4379_v27 = vpack.c.bf16 %v431_v15, %v431_v15  ;;  %v5349_v28 = vadd.f32 %v5254_v43, %v306_v17  ;;  %v5351_v29 = vpop.f32.mrf.mxu0  ;;  %v1612_v10 = vrot.slane %v5358_v47, 5 }
 0x109   :  { %6558 = vst [vmem:[#allocation4_spill] sm:$0xff] %v5351_v29  ;;  %v432_v32 = vmul.f32 %v416_v19, %v5275_v61  ;;  %v401_v33 = vmul.f32 0.5, %v4980_v24  ;;  %v699_v22 = vld [vmem:[#allocation2 + $0x28] sm:$0xf] }
 0x10a   :  { %v530_v39 = vor.u32 %v528_v57, %v527_v25  ;;  %v531_v40 = vrot.slane %v527_v25, 4  ;;  %v533_v44 = vshrl.u32 %v4379_v27, 16  ;;  %v312_v45 = vpop.f32.mrf.mxu0  ;;  %v373_v55 = vmul.f32 0.5, %v5349_v28  ;;  %v702_v25 = vld [vmem:[#allocation2 + $0x2c] sm:$0x1] }
 0x10b   :  { %v4380_v51 = vpack.c.bf16 %v432_v32, %v432_v32  ;;  %v417_v52 = vadd.f32 0.5, %v401_v33  ;;  %v5363_v56 = vadd.f32 %v5254_v43, %v312_v45  ;;  %v4886_v61 = vld [vmem:[#allocation2] ss:$8 sps:$4 sm:$0xff]   ;;  %v536_v62 = vshll.u32 %v4379_v27, 16 }
 0x10c   :  { %v688_v48 = vsel %vm5300_vm5, %v530_v39, %v687_v26  ;;  %v691_v59 = vsel %vm5309_vm6, %v531_v40, %v690_v31  ;;  %v535_v60 = vrot.slane %v533_v44, 7  ;;  %v5369_v53 = vpop.f32.mrf.mxu0  ;;  %4987 = vtanh.f32 %v373_v55  ;;  %4552 = vmatprep.mubr.bf16.mxu1 %v4886_v61  ;;  %v1528_v27 = vld [vmem:[#allocation2 + $0x8] sm:$0xe]  ;;  %v5383_v40 = vld [vmem:[#allocation2 + $0xc] sm:$0x1] }
 0x10d   :  { %v4982_v2 = vpop.eup %4981  ;;  %689 = vst [vmem:[#allocation2 + $0x18] sm:$0xf] %v688_v48  ;;  %692 = vst [vmem:[#allocation2 + $0x1c] sm:$0x1] %v691_v59  ;;  %v541_v6 = vshrl.u32 %v4380_v51, 16  ;;  %v433_v9 = vmul.f32 %v417_v52, %v5281_v5  ;;  %v374_v14 = vmul.f32 0.5, %v5363_v56  ;;  %v5387_v44 = vsel %vm5329_vm8, %v4112_v49, %v1612_v10 }
 0x10e   :  { %v538_v11 = vor.u32 %v536_v62, %v535_v60  ;;  %v539_v12 = vrot.slane %v535_v60, 4  ;;  %v402_v13 = vmul.f32 0.5, %v4982_v2  ;;  %v316_v15 = vpop.f32.mrf.mxu0  ;;  %v544_v21 = vshll.u32 %v4380_v51, 16  ;;  %v705_v51 = vld [vmem:[#allocation2 + $0x30] sm:$0xf] }
 0x10f   :  { %v543_v17 = vrot.slane %v541_v6, 7  ;;  %v4381_v19 = vpack.c.bf16 %v433_v9, %v433_v9  ;;  %v5375_v23 = vadd.f32 %v5254_v43, %v316_v15  ;;  %4989 = vtanh.f32 %v374_v14  ;;  %v708_v52 = vld [vmem:[#allocation2 + $0x34] sm:$0x1] }
 0x110   :  { %v694_v5 = vsel %vm5300_vm5, %v538_v11, %v693_v3  ;;  %v697_v24 = vsel %vm5309_vm6, %v539_v12, %v696_v4  ;;  %v418_v57 = vadd.f32 0.5, %v402_v13  ;;  %v5381_v26 = vpop.f32.mrf.mxu0  ;;  %v4105_v3 = vrot.slane %v1528_v27, 9  ;;  %v4895_v49 = vld [vmem:[%s6546_s4 + $0x70] sm:$0xff]  }
 0x111   :  { %6559 = vst [vmem:[#allocation5_spill] sm:$0xff] %v5381_v26  ;;  %v4984_v31 = vpop.eup %4983  ;;  %695 = vst [vmem:[#allocation2 + $0x20] sm:$0xf] %v694_v5  ;;  %v546_v32 = vor.u32 %v544_v21, %v543_v17  ;;  %v547_v33 = vrot.slane %v543_v17, 4  ;;  %v549_v39 = vshrl.u32 %v4381_v19, 16  ;;  %v552_v45 = vshll.u32 %v4381_v19, 16 }
 0x112   :  { %698 = vst [vmem:[#allocation2 + $0x24] sm:$0x1] %v697_v24  ;;  %v434_v55 = vmul.f32 %v418_v57, %v5287_v16  ;;  %v403_v61 = vmul.f32 0.5, %v4984_v31  ;;  %v375_v48 = vmul.f32 0.5, %v5375_v23  ;;  %v322_v59 = vpop.f32.mrf.mxu0  ;;  %v1584_v9 = vrot.slane %v5383_v40, 5 }
 0x113   :  { %v700_v60 = vsel %vm5300_vm5, %v546_v32, %v699_v22  ;;  %v703_v62 = vsel %vm5309_vm6, %v547_v33, %v702_v25  ;;  %v551_v2 = vrot.slane %v549_v39, 7  ;;  %v5402_v15 = vadd.f32 %v5254_v43, %v322_v59  ;;  %v1529_v5 = vld [vmem:[#allocation2 + $0x10] sm:$0xe]  ;;  %v711_v31 = vld [vmem:[#allocation2 + $0x38] sm:$0xf] }
 0x114   :  { %v4986_v4 = vpop.eup %4985  ;;  %701 = vst [vmem:[#allocation2 + $0x28] sm:$0xf] %v700_v60  ;;  %704 = vst [vmem:[#allocation2 + $0x2c] sm:$0x1] %v703_v62  ;;  %v4382_v16 = vpack.c.bf16 %v434_v55, %v434_v55  ;;  %v419_v6 = vadd.f32 0.5, %v403_v61  ;;  %4991 = vtanh.f32 %v375_v48  ;;  %v5399_v10 = vpop.f32.mrf.mxu0  ;;  %v1585_v22 = vsel %vm5329_vm8, %v4105_v3, %v1584_v9  ;;  %v4900_v9 = vld [vmem:[%s6546_s4 + $0x60] sm:$0xff]  }
 0x115   :  { %6560 = vst [vmem:[#allocation6_spill] sm:$0xff] %v5399_v10  ;;  %v4890_v11 = vld [vmem:[#allocation2 + $0x10] ss:$8 sps:$4 sm:$0xff]   ;;  %v554_v12 = vor.u32 %v552_v45, %v551_v2  ;;  %v555_v13 = vrot.slane %v551_v2, 4  ;;  %v404_v14 = vmul.f32 0.5, %v4986_v4  ;;  %v376_v55 = vmul.f32 0.5, %v5402_v15 }
 0x116   :  { %v557_v17 = vshrl.u32 %v4382_v16, 16  ;;  %v435_v21 = vmul.f32 %v419_v6, %v5305_v34  ;;  %v326_v19 = vpop.f32.mrf.mxu0  ;;  %4553 = vmatmul.mubr.bf16.vlgmr.msra.gmra.mxu1 %v4890_v11  ;;  %v5407_v24 = vld [vmem:[#allocation2 + $0x50] sm:$0xf]  ;;  %v4136_v34 = vcombine.low %v5340_v20, %v1585_v22  ;;  %v560_v39 = vshll.u32 %v4382_v16, 16  ;;  %v5426_v20 = vld [vmem:[#allocation2 + $0x14] sm:$0x1] }
 0x117   :  { %v706_v57 = vsel %vm5300_vm5, %v554_v12, %v705_v51  ;;  %v709_v27 = vsel %vm5309_vm6, %v555_v13, %v708_v52  ;;  %v420_v32 = vadd.f32 0.5, %v404_v14  ;;  %4569 = vmatpush3.bf16.msra.mxu1 %v5242_v41  ;;  %v4897_v51 = vld [vmem:[%s6546_s4 + $0x68] sm:$0xff]   ;;  %v714_v52 = vld [vmem:[#allocation2 + $0x3c] sm:$0x1]  ;;  %v5424_v41 = vadd.f32 %v5254_v43, %v326_v19 }
 0x118   :  { %707 = vst [vmem:[#allocation2 + $0x30] sm:$0xf] %v706_v57  ;;  %710 = vst [vmem:[#allocation2 + $0x34] sm:$0x1] %v709_v27  ;;  %v559_v33 = vrot.slane %v557_v17, 7  ;;  %v4383_v45 = vpack.c.bf16 %v435_v21, %v435_v21  ;;  %v5417_v61 = vpop.f32.mrf.mxu0  ;;  %4570 = vmatprep.subr.bf16.mxu1 %v4895_v49  ;;  %4616 = vmatprep.mubr.bf16.mxu0 %v4136_v34  ;;  %v4106_v59 = vrot.slane %v1529_v5, 9  ;;  %4993 = vtanh.f32 %v376_v55 }
 0x119   :  { %6561 = vst [vmem:[#allocation7_spill] sm:$0xff] %v5417_v61  ;;  %v436_v48 = vmul.f32 %v420_v32, %v5325_v0  ;;  %v1206_v60 = vshrl.u32 %v5407_v24, 16  ;;  %v4988_v62 = vpop.eup %4987  ;;  %v717_v0 = vld [vmem:[#allocation2 + $0x40] sm:$0xf]  ;;  %v377_v13 = vmul.f32 0.5, %v5424_v41  ;;  %v1588_v57 = vrot.slane %v5426_v20, 5 }
 0x11a   :  { %v562_v2 = vor.u32 %v560_v39, %v559_v33  ;;  %v563_v3 = vrot.slane %v559_v33, 4  ;;  %v565_v4 = vshrl.u32 %v4383_v45, 16  ;;  %v568_v16 = vshll.u32 %v4383_v45, 16  ;;  %v332_v6 = vpop.f32.mrf.mxu0  ;;  %v5437_v19 = vld [vmem:[#allocation2 + $0x1c] sm:$0x1] }
 0x11b   :  { %v4384_v11 = vpack.c.bf16 %v436_v48, %v436_v48  ;;  %v405_v12 = vmul.f32 0.5, %v4988_v62  ;;  %v4891_v14 = vld [vmem:[#allocation2 + $0x20] ss:$8 sps:$4 sm:$0xff]   ;;  %4571 = vmatpush3.bf16.msra.mxu1 %v4895_v49  ;;  %v1530_v5 = vld [vmem:[#allocation2 + $0x18] sm:$0xe]  ;;  %4995 = vtanh.f32 %v377_v13  ;;  %v1589_v55 = vsel %vm5329_vm8, %v4106_v59, %v1588_v57 }
 0x11c   :  { %v712_v17 = vsel %vm5300_vm5, %v562_v2, %v711_v31  ;;  %v715_v21 = vsel %vm5309_vm6, %v563_v3, %v714_v52  ;;  %v567_v22 = vrot.slane %v565_v4, 7  ;;  %4572 = vmatprep.subr.bf16.mxu1 %v4897_v51  ;;  %v4990_v27 = vpop.eup %4989  ;;  %v720_v32 = vld [vmem:[#allocation2 + $0x44] sm:$0x1]  ;;  %4556 = vmatprep.mubr.bf16.mxu1 %v4891_v14  ;;  %v5442_v52 = vpop.f32.mrf.mxu0  ;;  %v4107_v2 = vrot.slane %v1530_v5, 9  ;;  %v744_v61 = vld [vmem:[#allocation2 + $0x74] sm:$0x1] }
 0x11d   :  { %713 = vst [vmem:[#allocation2 + $0x38] sm:$0xf] %v712_v17  ;;  %716 = vst [vmem:[#allocation2 + $0x3c] sm:$0x1] %v715_v21  ;;  %v573_v34 = vshrl.u32 %v4384_v11, 16  ;;  %v576_v33 = vshll.u32 %v4384_v11, 16  ;;  %v5451_v59 = vadd.f32 %v5254_v43, %v332_v6 }
 0x11e   :  { %v421_v49 = vadd.f32 0.5, %v405_v12  ;;  %v570_v31 = vor.u32 %v568_v16, %v567_v22  ;;  %v571_v39 = vrot.slane %v567_v22, 4  ;;  %v406_v45 = vmul.f32 0.5, %v4990_v27  ;;  %6562 = vst [vmem:[#allocation8_spill] sm:$0xff] %v5442_v52  ;;  %v723_v11 = vld [vmem:[#allocation2 + $0x58] sm:$0xf] }
 0x11f   :  { %v575_v48 = vrot.slane %v573_v34, 7  ;;  %v1592_v3 = vrot.slane %v5437_v19, 5  ;;  %4573 = vmatpush3.bf16.msra.mxu1 %v4897_v51  ;;  %v726_v12 = vld [vmem:[#allocation2 + $0x5c] sm:$0x1]  ;;  %v4898_v22 = vld [vmem:[%s6546_s4 + $0x130] sm:$0xff]   ;;  %v378_v27 = vmul.f32 0.5, %v5451_v59 }
 0x120   :  { %v437_v62 = vmul.f32 %v421_v49, %v5349_v28  ;;  %v718_v4 = vsel %vm5300_vm5, %v570_v31, %v717_v0  ;;  %v721_v16 = vsel %vm5309_vm6, %v571_v39, %v720_v32  ;;  %v422_v13 = vadd.f32 0.5, %v406_v45  ;;  %4574 = vmatprep.subr.bf16.mxu1 %v4900_v9  ;;  %v4902_v28 = vld [vmem:[%s6546_s4 + $0x58] sm:$0xff]   ;;  %v336_v32 = vpop.f32.mrf.mxu0  ;;  %v5463_v34 = vld [vmem:[#allocation2 + $0x24] sm:$0x1]  ;;  %v1531_v49 = vld [vmem:[#allocation2 + $0x20] sm:$0xe] }
 0x121   :  { %v4992_v14 = vpop.eup %4991  ;;  %719 = vst [vmem:[#allocation2 + $0x40] sm:$0xf] %v718_v4  ;;  %722 = vst [vmem:[#allocation2 + $0x44] sm:$0x1] %v721_v16  ;;  %v578_v51 = vor.u32 %v576_v33, %v575_v48  ;;  %v579_v17 = vrot.slane %v575_v48, 4  ;;  %v1593_v21 = vsel %vm5329_vm8, %v4107_v2, %v1592_v3  ;;  %v5468_v33 = vld [vmem:[%s6546_s4 + $0x50] sm:$0xff]   ;;  %4997 = vtanh.f32 %v378_v27 }
 0x122   :  { %v4385_v0 = vpack.c.bf16 %v437_v62, %v437_v62  ;;  %v438_v6 = vmul.f32 %v422_v13, %v5363_v56  ;;  %v407_v5 = vmul.f32 0.5, %v4992_v14  ;;  %v4137_v57 = vcombine.low %v1589_v55, %v1593_v21  ;;  %v5474_v45 = vld [vmem:[#allocation2 + $0x28] sm:$0xe]  ;;  %v729_v48 = vld [vmem:[#allocation2 + $0x60] sm:$0xf] }
 0x123   :  { %v724_v31 = vsel %vm5300_vm5, %v578_v51, %v723_v11  ;;  %v727_v39 = vsel %vm5309_vm6, %v579_v17, %v726_v12  ;;  %4575 = vmatpush3.bf16.msra.mxu1 %v4900_v9  ;;  %v5479_v4 = vrot.slane %v1206_v60, 4  ;;  %v5482_v12 = vadd.f32 %v5254_v43, %v336_v32  ;;  %v5484_v9 = vld [vmem:[#allocation2 + $0x2c] sm:$0x1]  ;;  %v732_v14 = vld [vmem:[#allocation2 + $0x64] sm:$0x1] }
 0x124   :  { %v581_v56 = vshrl.u32 %v4385_v0, 16  ;;  %725 = vst [vmem:[#allocation2 + $0x58] sm:$0xf] %v724_v31  ;;  %728 = vst [vmem:[#allocation2 + $0x5c] sm:$0x1] %v727_v39  ;;  %v4386_v62 = vpack.c.bf16 %v438_v6, %v438_v6  ;;  %v423_v2 = vadd.f32 0.5, %v407_v5  ;;  %4617 = vmatmul.mubr.bf16.vlgmr.msra.gmra.mxu0 %v4137_v57  ;;  %4576 = vmatprep.subr.bf16.mxu1 %v4902_v28 }
 0x125   :  { %v4892_v3 = vld [vmem:[#allocation2 + $0x30] ss:$8 sps:$4 sm:$0xff]   ;;  %v584_v11 = vshll.u32 %v4385_v0, 16  ;;  %v4108_v13 = vrot.slane %v1531_v49, 9  ;;  %4665 = vmatpush3.bf16.msra.mxu0 %v5248_v42  ;;  %v1596_v6 = vrot.slane %v5463_v34, 5  ;;  %v4901_v60 = vld [vmem:[%s6546_s4 + $0x128] sm:$0xff]   ;;  %v4994_v32 = vpop.eup %4993 }
 0x126   :  { %v583_v16 = vrot.slane %v581_v56, 7  ;;  %v589_v51 = vshrl.u32 %v4386_v62, 16  ;;  %v592_v17 = vshll.u32 %v4386_v62, 16  ;;  %v439_v21 = vmul.f32 %v423_v2, %v5375_v23  ;;  %4557 = vmatmul.mubr.bf16.gmra.mxu1 %v4892_v3  ;;  %4666 = vmatprep.subr.bf16.mxu0 %v4898_v22  ;;  %v735_v5 = vld [vmem:[#allocation2 + $0x68] sm:$0xf] }
 0x127   :  { %v738_v57 = vld [vmem:[#allocation2 + $0x6c] sm:$0x1]  ;;  %v379_v27 = vmul.f32 0.5, %v5482_v12  ;;  %v4109_v42 = vrot.slane %v5474_v45, 9  ;;  %4577 = vmatpush3.bf16.msra.mxu1 %v4902_v28  ;;  %v1597_v39 = vsel %vm5329_vm8, %v4108_v13, %v1596_v6  ;;  %v1600_v56 = vrot.slane %v5484_v9, 5 }
 0x128   :  { %v586_v43 = vor.u32 %v584_v11, %v583_v16  ;;  %v587_v0 = vrot.slane %v583_v16, 4  ;;  %v4907_v23 = vld [vmem:[%s6546_s4 + $0x48] sm:$0xff]   ;;  %v591_v49 = vrot.slane %v589_v51, 7  ;;  %v4387_v31 = vpack.c.bf16 %v439_v21, %v439_v21  ;;  %v5500_v62 = vld [vmem:[#allocation2 + $0x34] sm:$0x1]  ;;  %4578 = vmatprep.subr.bf16.mxu1 %v5468_v33  ;;  %v4996_v13 = vpop.eup %4995 }
 0x129   :  { %v1533_v2 = vld [vmem:[#allocation2 + $0x30] sm:$0xe]  ;;  %v408_v3 = vmul.f32 0.5, %v4994_v32  ;;  %4999 = vtanh.f32 %v379_v27  ;;  %v5507_v16 = vld [vmem:[#allocation2 + $0x3c] sm:$0x1]  ;;  %4667 = vmatpush3.bf16.msra.mxu0 %v4898_v22  ;;  %v4903_v22 = vld [vmem:[%s6546_s4 + $0x120] sm:$0xff]  }
 0x12a   :  { %v730_v28 = vsel %vm5300_vm5, %v586_v43, %v729_v48  ;;  %v733_v45 = vsel %vm5309_vm6, %v587_v0, %v732_v14  ;;  %v1534_v11 = vld [vmem:[#allocation2 + $0x38] sm:$0xe]  ;;  %v594_v51 = vor.u32 %v592_v17, %v591_v49  ;;  %v595_v21 = vrot.slane %v591_v49, 4  ;;  %4668 = vmatprep.subr.bf16.mxu0 %v4901_v60  ;;  %v741_v55 = vld [vmem:[#allocation2 + $0x70] sm:$0xf]  ;;  %v6575_v1 = vld [vmem:[#allocation8_spill] sm:$0xff] }
 0x12b   :  { %731 = vst [vmem:[#allocation2 + $0x60] sm:$0xf] %v730_v28  ;;  %734 = vst [vmem:[#allocation2 + $0x64] sm:$0x1] %v733_v45  ;;  %v597_v6 = vshrl.u32 %v4387_v31, 16  ;;  %v600_v25 = vshll.u32 %v4387_v31, 16  ;;  %v1601_v14 = vsel %vm5329_vm8, %v4109_v42, %v1600_v56  ;;  %4579 = vmatpush3.bf16.msra.mxu1 %v5468_v33 }
 0x12c   :  { %v424_v48 = vadd.f32 0.5, %v408_v3  ;;  %v409_v43 = vmul.f32 0.5, %v4996_v13  ;;  %v4110_v0 = vrot.slane %v1533_v2, 9  ;;  %v736_v17 = vsel %vm5300_vm5, %v594_v51, %v735_v5  ;;  %v4894_v31 = vld [vmem:[#allocation2 + $0x50] ss:$8 sps:$4 sm:$0xff]   ;;  %4580 = vmatprep.subr.bf16.mxu1 %v4907_v23  ;;  %v4910_v42 = vld [vmem:[%s6546_s4 + $0x40] sm:$0xff]  }
 0x12d   :  { %v739_v27 = vsel %vm5309_vm6, %v595_v21, %v738_v57  ;;  %v599_v32 = vrot.slane %v597_v6, 7  ;;  %v4138_v49 = vcombine.low %v1597_v39, %v1601_v14  ;;  %v5519_v28 = vld [vmem:[#allocation2 + $0x5c] sm:$0x1]  ;;  %737 = vst [vmem:[#allocation2 + $0x68] sm:$0xf] %v736_v17  ;;  %v1604_v5 = vrot.slane %v5500_v62, 5  ;;  %4669 = vmatpush3.bf16.msra.mxu0 %v4901_v60  ;;  %4560 = vmatprep.mubr.bf16.mxu1 %v4894_v31 }
 0x12e   :  { %740 = vst [vmem:[#allocation2 + $0x6c] sm:$0x1] %v739_v27  ;;  %v440_v33 = vmul.f32 %v424_v48, %v5402_v15  ;;  %v425_v56 = vadd.f32 0.5, %v409_v43  ;;  %v4111_v2 = vrot.slane %v1534_v11, 9  ;;  %v1536_v45 = vld [vmem:[#allocation2 + $0x58] sm:$0xe]  ;;  %4670 = vmatprep.subr.bf16.mxu0 %v4903_v22 }
 0x12f   :  { %v602_v57 = vor.u32 %v600_v25, %v599_v32  ;;  %v603_v39 = vrot.slane %v599_v32, 4  ;;  %4620 = vmatprep.mubr.bf16.mxu0 %v4138_v49  ;;  %v1608_v3 = vrot.slane %v5507_v16, 5  ;;  %v4113_v13 = vrot.slane %v1536_v45, 9  ;;  %v4906_v51 = vld [vmem:[%s6546_s4 + $0x118] sm:$0xff]   ;;  %v5530_v21 = vld [vmem:[#allocation2 + $0x8] sm:$0xf]  ;;  %4581 = vmatpush3.bf16.msra.mxu1 %v4907_v23 }
 0x130   :  { %v4388_v15 = vpack.c.bf16 %v440_v33, %v440_v33  ;;  %v441_v6 = vmul.f32 %v425_v56, %v5424_v41  ;;  %v1616_v11 = vrot.slane %v5519_v28, 5  ;;  %v6563_v25 = vshll.u32 %v5407_v24, 16  ;;  %4582 = vmatprep.subr.bf16.mxu1 %v4910_v42  ;;  %v5549_v23 = vld [vmem:[%s6546_s4 + $0xf8] sm:$0xff]   ;;  %v4998_v24 = vpop.eup %4997 }
 0x131   :  { %v742_v48 = vsel %vm5300_vm5, %v602_v57, %v741_v55  ;;  %v745_v43 = vsel %vm5309_vm6, %v603_v39, %v744_v61  ;;  %v1605_v14 = vsel %vm5329_vm8, %v4110_v0, %v1604_v5  ;;  %v1609_v41 = vsel %vm5329_vm8, %v4111_v2, %v1608_v3  ;;  %4671 = vmatpush3.bf16.msra.mxu0 %v4903_v22  ;;  %v747_v49 = vld [vmem:[#allocation2 + $0x78] sm:$0xf]  ;;  %v4908_v2 = vld [vmem:[%s6546_s4 + $0x110] sm:$0xff]   ;;  %v750_v57 = vld [vmem:[#allocation2 + $0x7c] sm:$0x1] }
 0x132   :  { %v5536_v60 = vrot.slane %v6563_v25, 5  ;;  %743 = vst [vmem:[#allocation2 + $0x70] sm:$0xf] %v742_v48  ;;  %746 = vst [vmem:[#allocation2 + $0x74] sm:$0x1] %v745_v43  ;;  %v605_v17 = vshrl.u32 %v4388_v15, 16  ;;  %v4389_v55 = vpack.c.bf16 %v441_v6, %v441_v6  ;;  %v4139_v27 = vcombine.low %v1605_v14, %v1609_v41  ;;  %4672 = vmatprep.subr.bf16.mxu0 %v4906_v51 }
 0x133   :  { %v5551_v32 = vld [vmem:[#allocation2 + $0x64] sm:$0x1]  ;;  %v1108_v61 = vshrl.u32 %v5530_v21, 16  ;;  %v608_v0 = vshll.u32 %v4388_v15, 16  ;;  %v410_v31 = vmul.f32 0.5, %v4998_v24  ;;  %v1617_v33 = vsel %vm5329_vm8, %v4113_v13, %v1616_v11  ;;  %4583 = vmatpush3.bf16.msra.mxu1 %v4910_v42 }
 0x134   :  { %v1537_v56 = vld [vmem:[#allocation2 + $0x60] sm:$0xe]  ;;  %v1620_v5 = vrot.slane %v5551_v32, 5  ;;  %v607_v45 = vrot.slane %v605_v17, 7  ;;  %v613_v39 = vshrl.u32 %v4389_v55, 16  ;;  %v616_v22 = vshll.u32 %v4389_v55, 16  ;;  %4621 = vmatmul.mubr.bf16.gmra.mxu0 %v4139_v27  ;;  %4632 = vmatprep.subr.bf16.mxu1 %v5549_v23 }
 0x135   :  { %v4140_v3 = vcombine.low %v5387_v44, %v1617_v33  ;;  %v753_v15 = vld [vmem:[#allocation2 + $0x80] sm:$0xf]  ;;  %v426_v13 = vadd.f32 0.5, %v410_v31  ;;  %v4114_v11 = vrot.slane %v1537_v56, 9  ;;  %v5562_v14 = vld [vmem:[#allocation2 + $0x6c] sm:$0x1]  ;;  %4673 = vmatpush3.bf16.msra.mxu0 %v4906_v51  ;;  %v1212_v44 = vor.u32 %v5536_v60, %v5479_v4 }
 0x136   :  { %v4899_v6 = vld [vmem:[#allocation2 + $0x60] ss:$8 sps:$4 sm:$0xff]   ;;  %v610_v25 = vor.u32 %v608_v0, %v607_v45  ;;  %v611_v48 = vrot.slane %v607_v45, 4  ;;  %v615_v43 = vrot.slane %v613_v39, 7  ;;  %v5000_v24 = vpop.eup %4999  ;;  %v756_v17 = vld [vmem:[#allocation2 + $0x84] sm:$0x1]  ;;  %4674 = vmatprep.subr.bf16.mxu0 %v4908_v2 }
 0x137   :  { %4624 = vmatprep.mubr.bf16.mxu0 %v4140_v3  ;;  %v1538_v41 = vld [vmem:[#allocation2 + $0x68] sm:$0xe]  ;;  %v442_v42 = vmul.f32 %v426_v13, %v5451_v59  ;;  %4561 = vmatmul.mubr.bf16.gmra.mxu1 %v4899_v6  ;;  %v1621_v55 = vsel %vm5329_vm8, %v4114_v11, %v1620_v5  ;;  %v1624_v0 = vrot.slane %v5562_v14, 5  ;;  %v411_v56 = vmul.f32 0.5, %v5000_v24 }
 0x138   :  { %v4115_v27 = vrot.slane %v1538_v41, 9  ;;  %v4911_v31 = vld [vmem:[%s6546_s4 + $0x108] sm:$0xff]   ;;  %v748_v51 = vsel %vm5300_vm5, %v610_v25, %v747_v49  ;;  %v751_v4 = vsel %vm5309_vm6, %v611_v48, %v750_v57  ;;  %v618_v60 = vor.u32 %v616_v22, %v615_v43 }
 0x139   :  { %v619_v59 = vrot.slane %v615_v43, 4  ;;  %749 = vst [vmem:[#allocation2 + $0x78] sm:$0xf] %v748_v51  ;;  %752 = vst [vmem:[#allocation2 + $0x7c] sm:$0x1] %v751_v4  ;;  %v4390_v33 = vpack.c.bf16 %v442_v42, %v442_v42  ;;  %v1111_v45 = vshll.u32 %v5530_v21, 16  ;;  %4675 = vmatpush3.bf16.msra.mxu0 %v4908_v2 }
 0x13a   :  { %v1625_v5 = vsel %vm5329_vm8, %v4115_v27, %v1624_v0  ;;  %v2094_v39 = vld [vmem:[#allocation2 + $0x8] sm:$0xf]  ;;  %v754_v3 = vsel %vm5300_vm5, %v618_v60, %v753_v15  ;;  %v5584_v57 = vld [vmem:[#allocation2 + $0x74] sm:$0x1]  ;;  %v1110_v22 = vrot.slane %v1108_v61, 4  ;;  %v427_v11 = vadd.f32 0.5, %v411_v56  ;;  %4676 = vmatprep.subr.bf16.mxu0 %v4911_v31 }
 0x13b   :  { %v757_v49 = vsel %vm5309_vm6, %v619_v59, %v756_v17  ;;  %v4141_v13 = vcombine.low %v1621_v55, %v1625_v5  ;;  %755 = vst [vmem:[#allocation2 + $0x80] sm:$0xf] %v754_v3  ;;  %v621_v6 = vshrl.u32 %v4390_v33, 16  ;;  %v1539_v25 = vld [vmem:[#allocation2 + $0x70] sm:$0xe]  ;;  %v4913_v21 = vld [vmem:[%s6546_s4 + $0x100] sm:$0xff]  }
 0x13c   :  { %758 = vst [vmem:[#allocation2 + $0x84] sm:$0x1] %v757_v49  ;;  %v6564_v15 = vshll.u32 %v5358_v47, 16  ;;  %v759_v43 = vld [vmem:[#allocation2 + $0x88] sm:$0xf]  ;;  %v1113_v24 = vrot.slane %v1111_v45, 5  ;;  %v443_v0 = vmul.f32 %v427_v11, %v5482_v12 }
 0x13d   :  { %v762_v41 = vld [vmem:[#allocation2 + $0x8c] sm:$0x1]  ;;  %4625 = vmatmul.mubr.bf16.gmra.mxu0 %v4141_v13  ;;  %v2127_v61 = vshrl.u32 %v2094_v39, 16  ;;  %v2130_v17 = vshll.u32 %v2094_v39, 16  ;;  %v5593_v42 = vrot.slane %v1212_v44, 4  ;;  %v623_v55 = vrot.slane %v621_v6, 7 }
 0x13e   :  { %v5591_v48 = vrot.slane %v6564_v15, 5  ;;  %v2095_v2 = vld [vmem:[#allocation2 + $0xc] sm:$0x1]  ;;  %v624_v27 = vshll.u32 %v4390_v33, 16  ;;  %v1628_v51 = vrot.slane %v5584_v57, 5  ;;  %v4116_v4 = vrot.slane %v1539_v25, 9  ;;  %4677 = vmatpush3.bf16.msra.mxu0 %v4911_v31 }
 0x13f   :  { %v1114_v60 = vor.u32 %v1113_v24, %v1110_v22  ;;  %v2096_v47 = vld [vmem:[#allocation2 + $0x10] sm:$0xf]  ;;  %v2129_v59 = vrot.slane %v2127_v61, 4  ;;  %v2132_v56 = vrot.slane %v2130_v17, 5  ;;  %v5600_v5 = vld [vmem:[%s6546_s4 + $0x1b8] sm:$0xff]   ;;  %v627_v44 = vrot.slane %v623_v55, 4  ;;  %4678 = vmatprep.subr.bf16.mxu0 %v4913_v21 }
 0x140   :  { %v626_v45 = vor.u32 %v624_v27, %v623_v55  ;;  %v4391_v39 = vpack.c.bf16 %v443_v0, %v443_v0  ;;  %v1117_v33 = vshll.u32 %v5383_v40, 16  ;;  %v4904_v31 = vld [vmem:[#allocation2 + $0x70] ss:$8 sps:$4 sm:$0xff]   ;;  %v5609_v3 = vld [vmem:[#allocation2 + $0x7c] sm:$0x1]  ;;  %v2136_v25 = vshll.u32 %v2095_v2, 16 }
 0x141   :  { %v2133_v49 = vor.u32 %v2132_v56, %v2129_v59  ;;  %v763_v22 = vsel %vm5309_vm6, %v627_v44, %v762_v41  ;;  %v1540_v11 = vld [vmem:[#allocation2 + $0x78] sm:$0xe]  ;;  %v765_v24 = vld [vmem:[#allocation2 + $0x90] sm:$0xf]  ;;  %v768_v61 = vld [vmem:[#allocation2 + $0x94] sm:$0x1]  ;;  %4564 = vmatprep.mubr.bf16.mxu1 %v4904_v31  ;;  %v1106_v41 = vsel %vm5604_vm11, %v5354_v35, %v5356_v37 }
 0x142   :  { %v760_v13 = vsel %vm5300_vm5, %v626_v45, %v759_v43  ;;  %v629_v6 = vshrl.u32 %v4391_v39, 16  ;;  %764 = vst [vmem:[#allocation2 + $0x8c] sm:$0x1] %v763_v22  ;;  %v632_v15 = vshll.u32 %v4391_v39, 16  ;;  %v4117_v40 = vrot.slane %v1540_v11, 9  ;;  %4679 = vmatpush3.bf16.msra.mxu0 %v4913_v21 }
 0x143   :  { %761 = vst [vmem:[#allocation2 + $0x88] sm:$0xf] %v760_v13  ;;  %v1632_v17 = vrot.slane %v5609_v3, 5  ;;  %v1115_v55 = vrot.slane %v1114_v60, 4  ;;  %v2097_v27 = vld [vmem:[#allocation2 + $0x14] sm:$0x1]  ;;  %v1629_v43 = vsel %vm5329_vm8, %v4116_v4, %v1628_v51  ;;  %4728 = vmatprep.subr.bf16.mxu0 %v5600_v5 }
 0x144   :  { %v631_v0 = vrot.slane %v629_v6, 7  ;;  %v5622_v2 = vld [vmem:[#allocation2 + $0x84] sm:$0x1]  ;;  %v1541_v59 = vld [vmem:[#allocation2 + $0x80] sm:$0xe]  ;;  %v2141_v56 = vshrl.u32 %v2096_v47, 16 }
 0x145   :  { %v1633_v60 = vsel %vm5329_vm8, %v4117_v40, %v1632_v17  ;;  %v1119_v45 = vrot.slane %v1117_v33, 5  ;;  %v4118_v21 = vrot.slane %v1541_v59, 9  ;;  %v2134_v44 = vrot.slane %v2133_v49, 4  ;;  %v1062_v39 = vld [vmem:[#allocation2 + $0x10] sm:$0xf] }
 0x146   :  { %v634_v31 = vor.u32 %v632_v15, %v631_v0  ;;  %v635_v51 = vrot.slane %v631_v0, 4  ;;  %v4142_v4 = vcombine.low %v1629_v43, %v1633_v60  ;;  %v1636_v13 = vrot.slane %v5622_v2, 5  ;;  %v1064_v22 = vld [vmem:[#allocation2 + $0x18] sm:$0xf] }
 0x147   :  { %v1120_v35 = vsel %vm5604_vm11, %v1115_v55, %v1119_v45  ;;  %v2138_v37 = vrot.slane %v2136_v25, 5  ;;  %v2143_v6 = vrot.slane %v2141_v56, 4  ;;  %v2144_v11 = vshll.u32 %v2096_v47, 16  ;;  %v1066_v55 = vld [vmem:[#allocation2 + $0x20] sm:$0xf] }
 0x148   :  { %v766_v10 = vsel %vm5300_vm5, %v634_v31, %v765_v24  ;;  %v769_v33 = vsel %vm5309_vm6, %v635_v51, %v768_v61  ;;  %4628 = vmatprep.mubr.bf16.mxu0 %v4142_v4  ;;  %v2150_v49 = vshll.u32 %v2097_v27, 16  ;;  %v1122_v15 = vshrl.u32 %v1062_v39, 16 }
 0x149   :  { %767 = vst [vmem:[#allocation2 + $0x90] sm:$0xf] %v766_v10  ;;  %770 = vst [vmem:[#allocation2 + $0x94] sm:$0x1] %v769_v33  ;;  %v2146_v40 = vrot.slane %v2144_v11, 5  ;;  %v1125_v17 = vshll.u32 %v1062_v39, 16  ;;  %v4088_v59 = vcombine.low %v1106_v41, %v1120_v35  ;;  %v1637_v30 = vsel %vm5329_vm8, %v4118_v21, %v1636_v13 }
 0x14a   :  { %v1131_v0 = vshll.u32 %v5426_v20, 16  ;;  %v1136_v43 = vshrl.u32 %v1064_v22, 16  ;;  %v4909_v25 = vld [vmem:[#allocation2 + $0x80] ss:$8 sps:$4 sm:$0xff]   ;;  %v5635_v47 = vld [vmem:[#allocation2 + $0x8c] sm:$0x1]  ;;  %v2139_v36 = vsel %vm5604_vm11, %v2134_v44, %v2138_v37 }
 0x14b   :  { %v1542_v24 = vld [vmem:[#allocation2 + $0x88] sm:$0xe]  ;;  %v1640_v10 = vrot.slane %v5635_v47, 5  ;;  %v2147_v61 = vor.u32 %v2146_v40, %v2143_v6  ;;  %v2152_v27 = vrot.slane %v2150_v49, 5  ;;  %v1124_v56 = vrot.slane %v1122_v15, 4  ;;  %4565 = vmatmul.mubr.bf16.gmra.mxu1 %v4909_v25 }
 0x14c   :  { %v4119_v20 = vrot.slane %v1542_v24, 9  ;;  %v1127_v60 = vrot.slane %v1125_v17, 5  ;;  %v1133_v45 = vrot.slane %v1131_v0, 5  ;;  %v1138_v39 = vrot.slane %v1136_v43, 4  ;;  %4584 = vmatprep.mubr.bf16.mxu1 %v4088_v59  ;;  %v1068_v13 = vld [vmem:[#allocation2 + $0x28] sm:$0xf] }
 0x14d   :  { %v2148_v41 = vrot.slane %v2147_v61, 4  ;;  %v1139_v31 = vshll.u32 %v1064_v22, 16  ;;  %v1145_v51 = vshll.u32 %v5437_v19, 16  ;;  %v1150_v21 = vshrl.u32 %v1066_v55, 16  ;;  %v2098_v15 = vld [vmem:[#allocation2 + $0x18] sm:$0xf] }
 0x14e   :  { %v1641_v44 = vsel %vm5329_vm8, %v4119_v20, %v1640_v10  ;;  %v1128_v4 = vor.u32 %v1127_v60, %v1124_v56  ;;  %v1153_v35 = vshll.u32 %v1066_v55, 16  ;;  %v1159_v37 = vshll.u32 %v5463_v34, 16  ;;  %v5648_v0 = vld [vmem:[#allocation2 + $0x1c] sm:$0x1]  ;;  %v2100_v24 = vld [vmem:[#allocation2 + $0x20] sm:$0xf] }
 0x14f   :  { %v4143_v6 = vcombine.low %v1637_v30, %v1641_v44  ;;  %v2153_v11 = vsel %vm5604_vm11, %v2148_v41, %v2152_v27  ;;  %v1141_v33 = vrot.slane %v1139_v31, 5  ;;  %v1147_v49 = vrot.slane %v1145_v51, 5  ;;  %v5651_v10 = vld [vmem:[#allocation2 + $0x24] sm:$0x1] }
 0x150   :  { %v4200_v40 = vcombine.low %v2139_v36, %v2153_v11  ;;  %v1129_v22 = vrot.slane %v1128_v4, 4  ;;  %v1152_v17 = vrot.slane %v1150_v21, 4  ;;  %v1155_v19 = vrot.slane %v1153_v35, 5 }
 0x151   :  { %4629 = vmatmul.mubr.bf16.gmra.mxu0 %v4143_v6  ;;  %v1142_v43 = vor.u32 %v1141_v33, %v1138_v39  ;;  %v1161_v25 = vrot.slane %v1159_v37, 5  ;;  %v1164_v59 = vshrl.u32 %v1068_v13, 16  ;;  %v1167_v55 = vshll.u32 %v1068_v13, 16  ;;  %v2102_v39 = vld [vmem:[#allocation2 + $0x28] sm:$0xf] }
 0x152   :  { %4680 = vmatprep.mubr.bf16.mxu0 %v4200_v40  ;;  %v1156_v34 = vor.u32 %v1155_v19, %v1152_v17  ;;  %v1173_v30 = vshll.u32 %v5484_v9, 16  ;;  %v2155_v61 = vshrl.u32 %v2098_v15, 16  ;;  %v1218_v36 = vsel %vm5604_vm11, %v5593_v42, %v5591_v48  ;;  %v4914_v9 = vld [vmem:[%s6546_s4 + $0xf0] sm:$0xff]   ;;  %v5665_v37 = vld [vmem:[#allocation2 + $0x2c] sm:$0x1]  ;;  %v4923_v48 = vld [vmem:[%s6546_s4 + $0x198] sm:$0xff]  }
 0x153   :  { %v1143_v27 = vrot.slane %v1142_v43, 4  ;;  %v1166_v56 = vrot.slane %v1164_v59, 4  ;;  %v1169_v20 = vrot.slane %v1167_v55, 5  ;;  %v2158_v60 = vshll.u32 %v2098_v15, 16  ;;  %v2104_v15 = vld [vmem:[#allocation2 + $0x30] sm:$0xf] }
 0x154   :  { %v1134_v41 = vsel %vm5604_vm11, %v1129_v22, %v1133_v45  ;;  %v1157_v31 = vrot.slane %v1156_v34, 4  ;;  %v2157_v51 = vrot.slane %v2155_v61, 4  ;;  %v2164_v21 = vshll.u32 %v5648_v0, 16  ;;  %v5670_v43 = vld [vmem:[#allocation2 + $0x34] sm:$0x1] }
 0x155   :  { %v1148_v44 = vsel %vm5604_vm11, %v1143_v27, %v1147_v49  ;;  %v1170_v4 = vor.u32 %v1169_v20, %v1166_v56  ;;  %v2160_v13 = vrot.slane %v2158_v60, 5  ;;  %v2169_v35 = vshrl.u32 %v2100_v24, 16  ;;  %v1070_v49 = vld [vmem:[#allocation2 + $0x30] sm:$0xf]  ;;  %v4916_v56 = vld [vmem:[%s6546_s4 + $0xe8] sm:$0xff]  }
 0x156   :  { %v4089_v6 = vcombine.low %v1134_v41, %v1148_v44  ;;  %v1162_v45 = vsel %vm5604_vm11, %v1157_v31, %v1161_v25  ;;  %v1175_v11 = vrot.slane %v1173_v30, 5  ;;  %v2172_v33 = vshll.u32 %v2100_v24, 16  ;;  %v1072_v20 = vld [vmem:[#allocation2 + $0x38] sm:$0xf] }
 0x157   :  { %v1171_v40 = vrot.slane %v1170_v4, 4  ;;  %v2161_v22 = vor.u32 %v2160_v13, %v2157_v51  ;;  %v2171_v17 = vrot.slane %v2169_v35, 4  ;;  %v2178_v19 = vshll.u32 %v5651_v10, 16 }
 0x158   :  { %4585 = vmatmul.mubr.bf16.vlgmr.msra.gmra.mxu1 %v4089_v6  ;;  %v2166_v59 = vrot.slane %v2164_v21, 5  ;;  %v2174_v55 = vrot.slane %v2172_v33, 5  ;;  %v2183_v34 = vshrl.u32 %v2102_v39, 16  ;;  %v2186_v61 = vshll.u32 %v2102_v39, 16 }
 0x159   :  { %4633 = vmatpush3.bf16.msra.mxu1 %v5549_v23  ;;  %v1176_v25 = vsel %vm5604_vm11, %v1171_v40, %v1175_v11  ;;  %v2162_v24 = vrot.slane %v2161_v22, 4  ;;  %v2192_v30 = vshll.u32 %v5665_v37, 16  ;;  %v2197_v27 = vshrl.u32 %v2104_v15, 16 }
 0x15a   :  { %v4090_v60 = vcombine.low %v1162_v45, %v1176_v25  ;;  %4634 = vmatprep.subr.bf16.mxu1 %v4914_v9  ;;  %v2175_v41 = vor.u32 %v2174_v55, %v2171_v17  ;;  %v2185_v31 = vrot.slane %v2183_v34, 4  ;;  %v2188_v51 = vrot.slane %v2186_v61, 5  ;;  %v4917_v45 = vld [vmem:[%s6546_s4 + $0x1b0] sm:$0xff]   ;;  %v2106_v17 = vld [vmem:[#allocation2 + $0x38] sm:$0xf] }
 0x15b   :  { %v2167_v23 = vsel %vm5604_vm11, %v2162_v24, %v2166_v59  ;;  %v2180_v39 = vrot.slane %v2178_v19, 5  ;;  %v2199_v21 = vrot.slane %v2197_v27, 4  ;;  %v2200_v44 = vshll.u32 %v2104_v15, 16  ;;  %v1076_v34 = vld [vmem:[#allocation2 + $0x58] sm:$0xf] }
 0x15c   :  { %4588 = vmatprep.mubr.bf16.mxu1 %v4090_v60  ;;  %v2176_v4 = vrot.slane %v2175_v41, 4  ;;  %v2189_v13 = vor.u32 %v2188_v51, %v2185_v31  ;;  %v2206_v35 = vshll.u32 %v5670_v43, 16  ;;  %v1178_v6 = vshrl.u32 %v1070_v49, 16  ;;  %v5692_v31 = vld [vmem:[#allocation2 + $0x3c] sm:$0x1] }
 0x15d   :  { %4635 = vmatpush3.bf16.msra.mxu1 %v4914_v9  ;;  %v2202_v11 = vrot.slane %v2200_v44, 5  ;;  %v1181_v33 = vshll.u32 %v1070_v49, 16  ;;  %v1187_v40 = vshll.u32 %v5500_v62, 16  ;;  %v1192_v22 = vshrl.u32 %v1072_v20, 16  ;;  %v4918_v9 = vld [vmem:[%s6546_s4 + $0xe0] sm:$0xff]  }
 0x15e   :  { %v2181_v15 = vsel %vm5604_vm11, %v2176_v4, %v2180_v39  ;;  %v2190_v19 = vrot.slane %v2189_v13, 4  ;;  %v2194_v59 = vrot.slane %v2192_v30, 5  ;;  %4636 = vmatprep.subr.bf16.mxu1 %v4916_v56  ;;  %v1180_v55 = vrot.slane %v1178_v6, 4 }
 0x15f   :  { %v4201_v61 = vcombine.low %v2167_v23, %v2181_v15  ;;  %v2203_v25 = vor.u32 %v2202_v11, %v2199_v21  ;;  %v2208_v24 = vrot.slane %v2206_v35, 5  ;;  %v1183_v49 = vrot.slane %v1181_v33, 5  ;;  %v2108_v11 = vld [vmem:[#allocation2 + $0x40] sm:$0xf]  ;;  %v5706_v15 = vld [vmem:[#allocation2 + $0x44] sm:$0x1] }
 0x160   :  { %v1189_v27 = vrot.slane %v1187_v40, 5  ;;  %v1194_v62 = vrot.slane %v1192_v22, 4  ;;  %v1195_v60 = vshll.u32 %v1072_v20, 16  ;;  %v1201_v41 = vshll.u32 %v5507_v16, 16  ;;  %v4919_v16 = vld [vmem:[%s6546_s4 + $0x1a8] sm:$0xff]  }
 0x161   :  { %4681 = vmatmul.mubr.bf16.vlgmr.msra.gmra.mxu0 %v4201_v61  ;;  %v2204_v30 = vrot.slane %v2203_v25, 4  ;;  %v1184_v51 = vor.u32 %v1183_v49, %v1180_v55  ;;  %4637 = vmatpush3.bf16.msra.mxu1 %v4916_v56  ;;  %v1220_v39 = vshrl.u32 %v1076_v34, 16  ;;  %v1223_v44 = vshll.u32 %v1076_v34, 16 }
 0x162   :  { %v2195_v4 = vsel %vm5604_vm11, %v2190_v19, %v2194_v59  ;;  %4729 = vmatpush3.bf16.msra.mxu0 %v5600_v5  ;;  %v1197_v23 = vrot.slane %v1195_v60, 5  ;;  %v1229_v21 = vshll.u32 %v5519_v28, 16  ;;  %4638 = vmatprep.subr.bf16.mxu1 %v4918_v9  ;;  %v2211_v20 = vshrl.u32 %v2106_v17, 16  ;;  %v4920_v5 = vld [vmem:[%s6546_s4 + $0xd8] sm:$0xff]  }
 0x163   :  { %v2209_v13 = vsel %vm5604_vm11, %v2204_v30, %v2208_v24  ;;  %4730 = vmatprep.subr.bf16.mxu0 %v4917_v45  ;;  %v1185_v56 = vrot.slane %v1184_v51, 4  ;;  %v1222_v35 = vrot.slane %v1220_v39, 4  ;;  %v1225_v6 = vrot.slane %v1223_v44, 5  ;;  %v2110_v19 = vld [vmem:[#allocation2 + $0x58] sm:$0xf] }
 0x164   :  { %v4202_v33 = vcombine.low %v2195_v4, %v2209_v13  ;;  %v1198_v28 = vor.u32 %v1197_v23, %v1194_v62  ;;  %v1203_v40 = vrot.slane %v1201_v41, 5  ;;  %v1231_v22 = vrot.slane %v1229_v21, 5  ;;  %v4921_v62 = vld [vmem:[%s6546_s4 + $0x1a0] sm:$0xff]   ;;  %v4922_v41 = vld [vmem:[%s6546_s4 + $0xd0] sm:$0xff]   ;;  %v5718_v51 = vld [vmem:[#allocation2 + $0x5c] sm:$0x1] }
 0x165   :  { %v1226_v59 = vor.u32 %v1225_v6, %v1222_v35  ;;  %v2213_v55 = vrot.slane %v2211_v20, 4  ;;  %v2214_v34 = vshll.u32 %v2106_v17, 16  ;;  %v2220_v61 = vshll.u32 %v5692_v31, 16  ;;  %4639 = vmatpush3.bf16.msra.mxu1 %v4918_v9  ;;  %v2112_v23 = vld [vmem:[#allocation2 + $0x60] sm:$0xf] }
 0x166   :  { %4684 = vmatprep.mubr.bf16.mxu0 %v4202_v33  ;;  %v1190_v25 = vsel %vm5604_vm11, %v1185_v56, %v1189_v27  ;;  %v1199_v24 = vrot.slane %v1198_v28, 4  ;;  %4731 = vmatpush3.bf16.msra.mxu0 %v4917_v45  ;;  %v2225_v49 = vshrl.u32 %v2108_v11, 16  ;;  %v2228_v60 = vshll.u32 %v2108_v11, 16  ;;  %v5724_v56 = vld [vmem:[#allocation2 + $0x64] sm:$0x1] }
 0x167   :  { %v1227_v17 = vrot.slane %v1226_v59, 4  ;;  %v2216_v30 = vrot.slane %v2214_v34, 5  ;;  %v2234_v9 = vshll.u32 %v5706_v15, 16  ;;  %4732 = vmatprep.subr.bf16.mxu0 %v4919_v16  ;;  %v2239_v27 = vshrl.u32 %v2110_v19, 16  ;;  %4640 = vmatprep.subr.bf16.mxu1 %v4920_v5  ;;  %v1078_v6 = vld [vmem:[#allocation2 + $0x60] sm:$0xf] }
 0x168   :  { %v1204_v45 = vsel %vm5604_vm11, %v1199_v24, %v1203_v40  ;;  %v2222_v39 = vrot.slane %v2220_v61, 5  ;;  %v2227_v44 = vrot.slane %v2225_v49, 4  ;;  %v2230_v4 = vrot.slane %v2228_v60, 5 }
 0x169   :  { %v4091_v21 = vcombine.low %v1190_v25, %v1204_v45  ;;  %v1232_v20 = vsel %vm5604_vm11, %v1227_v17, %v1231_v22  ;;  %v2217_v13 = vor.u32 %v2216_v30, %v2213_v55  ;;  %v2241_v35 = vrot.slane %v2239_v27, 4  ;;  %4641 = vmatpush3.bf16.msra.mxu1 %v4920_v5  ;;  %v4924_v22 = vld [vmem:[%s6546_s4 + $0xc8] sm:$0xff]   ;;  %v1082_v45 = vld [vmem:[#allocation2 + $0x70] sm:$0xf] }
 0x16a   :  { %v4092_v11 = vcombine.low %v1218_v36, %v1232_v20  ;;  %v2231_v33 = vor.u32 %v2230_v4, %v2227_v44  ;;  %v2242_v28 = vshll.u32 %v2110_v19, 16  ;;  %v2248_v40 = vshll.u32 %v5718_v51, 16  ;;  %4733 = vmatpush3.bf16.msra.mxu0 %v4919_v16  ;;  %4642 = vmatprep.subr.bf16.mxu1 %v4922_v41  ;;  %v1080_v19 = vld [vmem:[#allocation2 + $0x68] sm:$0xf]  ;;  %v4927_v44 = vld [vmem:[%s6546_s4 + $0xc0] sm:$0xff]  }
 0x16b   :  { %4589 = vmatmul.mubr.bf16.gmra.mxu1 %v4091_v21  ;;  %v2218_v59 = vrot.slane %v2217_v13, 4  ;;  %v2236_v55 = vrot.slane %v2234_v9, 5  ;;  %v2253_v5 = vshrl.u32 %v2112_v23, 16  ;;  %v2256_v34 = vshll.u32 %v2112_v23, 16  ;;  %4734 = vmatprep.subr.bf16.mxu0 %v4921_v62 }
 0x16c   :  { %4592 = vmatprep.mubr.bf16.mxu1 %v4092_v11  ;;  %v2232_v42 = vrot.slane %v2231_v33, 4  ;;  %v2244_v36 = vrot.slane %v2242_v28, 5  ;;  %v2262_v16 = vshll.u32 %v5724_v56, 16  ;;  %v1234_v61 = vshrl.u32 %v1078_v6, 16  ;;  %v1084_v28 = vld [vmem:[#allocation2 + $0x78] sm:$0xf] }
 0x16d   :  { %v2223_v25 = vsel %vm5604_vm11, %v2218_v59, %v2222_v39  ;;  %v2250_v24 = vrot.slane %v2248_v40, 5  ;;  %v2255_v49 = vrot.slane %v2253_v5, 4  ;;  %v2258_v60 = vrot.slane %v2256_v34, 5  ;;  %4643 = vmatpush3.bf16.msra.mxu1 %v4922_v41  ;;  %v4925_v41 = vld [vmem:[%s6546_s4 + $0x190] sm:$0xff]  }
 0x16e   :  { %v2237_v17 = vsel %vm5604_vm11, %v2232_v42, %v2236_v55  ;;  %v2245_v30 = vor.u32 %v2244_v36, %v2241_v35  ;;  %v1236_v9 = vrot.slane %v1234_v61, 4  ;;  %v1237_v27 = vshll.u32 %v1078_v6, 16  ;;  %4735 = vmatpush3.bf16.msra.mxu0 %v4921_v62  ;;  %4644 = vmatprep.subr.bf16.mxu1 %v4924_v22 }
 0x16f   :  { %v4203_v4 = vcombine.low %v2223_v25, %v2237_v17  ;;  %v2259_v23 = vor.u32 %v2258_v60, %v2255_v49  ;;  %v1243_v39 = vshll.u32 %v5551_v32, 16  ;;  %v1248_v21 = vshrl.u32 %v1080_v19, 16  ;;  %4736 = vmatprep.subr.bf16.mxu0 %v4923_v48 }
 0x170   :  { %v2246_v20 = vrot.slane %v2245_v30, 4  ;;  %v2264_v13 = vrot.slane %v2262_v16, 5  ;;  %v1239_v35 = vrot.slane %v1237_v27, 5  ;;  %v1251_v62 = vshll.u32 %v1080_v19, 16  ;;  %v2114_v16 = vld [vmem:[#allocation2 + $0x68] sm:$0xf] }
 0x171   :  { %4685 = vmatmul.mubr.bf16.gmra.mxu0 %v4203_v4  ;;  %v2260_v6 = vrot.slane %v2259_v23, 4  ;;  %v1250_v11 = vrot.slane %v1248_v21, 4  ;;  %v1257_v33 = vshll.u32 %v5562_v14, 16  ;;  %v1262_v40 = vshrl.u32 %v1082_v45, 16  ;;  %4645 = vmatpush3.bf16.msra.mxu1 %v4924_v22  ;;  %v4928_v14 = vld [vmem:[%s6546_s4 + $0x188] sm:$0xff]   ;;  %v5761_v22 = vld [vmem:[%s6546_s4 + $0x178] sm:$0xff]  }
 0x172   :  { %v1240_v59 = vor.u32 %v1239_v35, %v1236_v9  ;;  %v1245_v32 = vrot.slane %v1243_v39, 5  ;;  %v1253_v55 = vrot.slane %v1251_v62, 5  ;;  %4737 = vmatpush3.bf16.msra.mxu0 %v4923_v48  ;;  %4646 = vmatprep.subr.bf16.mxu1 %v4927_v44  ;;  %v2251_v5 = vsel %vm5604_vm11, %v2246_v20, %v2250_v24  ;;  %v5763_v24 = vld [vmem:[#allocation2 + $0x6c] sm:$0x1]  ;;  %v2116_v9 = vld [vmem:[#allocation2 + $0x70] sm:$0xf] }
 0x173   :  { %v2265_v34 = vsel %vm5604_vm11, %v2260_v6, %v2264_v13  ;;  %v1264_v42 = vrot.slane %v1262_v40, 4  ;;  %v1265_v36 = vshll.u32 %v1082_v45, 16  ;;  %4738 = vmatprep.subr.bf16.mxu0 %v4925_v41  ;;  %v1276_v25 = vshrl.u32 %v1084_v28, 16  ;;  %v5769_v13 = vld [vmem:[#allocation2 + $0x74] sm:$0x1] }
 0x174   :  { %v4204_v48 = vcombine.low %v2251_v5, %v2265_v34  ;;  %v1241_v19 = vrot.slane %v1240_v59, 4  ;;  %v1254_v61 = vor.u32 %v1253_v55, %v1250_v11  ;;  %v1259_v49 = vrot.slane %v1257_v33, 5  ;;  %v2118_v6 = vld [vmem:[#allocation2 + $0x78] sm:$0xf]  ;;  %v2120_v34 = vld [vmem:[#allocation2 + $0x80] sm:$0xf] }
 0x175   :  { %v1267_v60 = vrot.slane %v1265_v36, 5  ;;  %v1271_v17 = vshll.u32 %v5584_v57, 16  ;;  %v1279_v30 = vshll.u32 %v1084_v28, 16  ;;  %4647 = vmatpush3.bf16.msra.mxu1 %v4927_v44  ;;  %v1278_v45 = vrot.slane %v1276_v25, 4  ;;  %v4931_v57 = vld [vmem:[%s6546_s4 + $0x180] sm:$0xff]  }
 0x176   :  { %4688 = vmatprep.mubr.bf16.mxu0 %v4204_v48  ;;  %v1255_v27 = vrot.slane %v1254_v61, 4  ;;  %v1285_v4 = vshll.u32 %v5609_v3, 16  ;;  %v2267_v23 = vshrl.u32 %v2114_v16, 16  ;;  %4739 = vmatpush3.bf16.msra.mxu0 %v4925_v41  ;;  %v1246_v39 = vsel %vm5604_vm11, %v1241_v19, %v1245_v32  ;;  %v5779_v48 = vld [vmem:[#allocation2 + $0x7c] sm:$0x1] }
 0x177   :  { %v1268_v21 = vor.u32 %v1267_v60, %v1264_v42  ;;  %v1281_v20 = vrot.slane %v1279_v30, 5  ;;  %v2270_v35 = vshll.u32 %v2114_v16, 16  ;;  %4740 = vmatprep.subr.bf16.mxu0 %v4928_v14  ;;  %4696 = vmatprep.subr.bf16.mxu1 %v5761_v22  ;;  %v2276_v41 = vshll.u32 %v5763_v24, 16  ;;  %v5784_v61 = vld [vmem:[%s6546_s4 + $0x238] sm:$0xff]  }
 0x178   :  { %v1260_v3 = vsel %vm5604_vm11, %v1255_v27, %v1259_v49  ;;  %v2269_v44 = vrot.slane %v2267_v23, 4  ;;  %v2281_v62 = vshrl.u32 %v2116_v9, 16  ;;  %v1273_v59 = vrot.slane %v1271_v17, 5  ;;  %v5788_v17 = vld [vmem:[#allocation2 + $0x84] sm:$0x1] }
 0x179   :  { %v4093_v11 = vcombine.low %v1246_v39, %v1260_v3  ;;  %v1269_v33 = vrot.slane %v1268_v21, 4  ;;  %v1282_v28 = vor.u32 %v1281_v20, %v1278_v45  ;;  %v2272_v40 = vrot.slane %v2270_v35, 5  ;;  %v1088_v35 = vld [vmem:[#allocation2 + $0x88] sm:$0xf] }
 0x17a   :  { %v2283_v32 = vrot.slane %v2281_v62, 4  ;;  %v2284_v55 = vshll.u32 %v2116_v9, 16  ;;  %v2290_v5 = vshll.u32 %v5769_v13, 16  ;;  %4741 = vmatpush3.bf16.msra.mxu0 %v4928_v14  ;;  %v1287_v36 = vrot.slane %v1285_v4, 5  ;;  %v1086_v4 = vld [vmem:[#allocation2 + $0x80] sm:$0xf] }
 0x17b   :  { %4593 = vmatmul.mubr.bf16.gmra.mxu1 %v4093_v11  ;;  %v1283_v42 = vrot.slane %v1282_v28, 4  ;;  %v2273_v16 = vor.u32 %v2272_v40, %v2269_v44  ;;  %v2295_v19 = vshrl.u32 %v2118_v6, 16  ;;  %4742 = vmatprep.subr.bf16.mxu0 %v4931_v57  ;;  %v1274_v25 = vsel %vm5604_vm11, %v1269_v33, %v1273_v59 }
 0x17c   :  { %v2278_v49 = vrot.slane %v2276_v41, 5  ;;  %v2286_v60 = vrot.slane %v2284_v55, 5  ;;  %v2298_v14 = vshll.u32 %v2118_v6, 16  ;;  %v2292_v9 = vrot.slane %v2290_v5, 5 }
 0x17d   :  { %v1288_v30 = vsel %vm5604_vm11, %v1283_v42, %v1287_v36  ;;  %v2297_v27 = vrot.slane %v2295_v19, 4  ;;  %v2309_v45 = vshrl.u32 %v2120_v34, 16  ;;  %v2274_v39 = vrot.slane %v2273_v16, 4 }
 0x17e   :  { %v4094_v23 = vcombine.low %v1274_v25, %v1288_v30  ;;  %v2287_v21 = vor.u32 %v2286_v60, %v2283_v32  ;;  %v2300_v20 = vrot.slane %v2298_v14, 5  ;;  %4743 = vmatpush3.bf16.msra.mxu0 %v4931_v57  ;;  %v2304_v3 = vshll.u32 %v5779_v48, 16  ;;  %v2124_v25 = vld [vmem:[#allocation2 + $0x90] sm:$0xf] }
 0x17f   :  { %v2311_v44 = vrot.slane %v2309_v45, 4  ;;  %v2312_v41 = vshll.u32 %v2120_v34, 16  ;;  %v2318_v62 = vshll.u32 %v5788_v17, 16  ;;  %4792 = vmatprep.subr.bf16.mxu0 %v5784_v61  ;;  %v1290_v33 = vshrl.u32 %v1086_v4, 16  ;;  %v2122_v34 = vld [vmem:[#allocation2 + $0x88] sm:$0xf] }
 0x180   :  { %4596 = vmatprep.mubr.bf16.mxu1 %v4094_v23  ;;  %v2288_v6 = vrot.slane %v2287_v21, 4  ;;  %v2301_v11 = vor.u32 %v2300_v20, %v2297_v27  ;;  %v1293_v28 = vshll.u32 %v1086_v4, 16  ;;  %v1304_v59 = vshrl.u32 %v1088_v35, 16 }
 0x181   :  { %v2314_v40 = vrot.slane %v2312_v41, 5  ;;  %v2279_v32 = vsel %vm5604_vm11, %v2274_v39, %v2278_v49  ;;  %v1292_v55 = vrot.slane %v1290_v33, 4  ;;  %v2306_v16 = vrot.slane %v2304_v3, 5  ;;  %v5807_v41 = vld [vmem:[#allocation2 + $0x94] sm:$0x1] }
 0x182   :  { %v2293_v57 = vsel %vm5604_vm11, %v2288_v6, %v2292_v9  ;;  %v1295_v5 = vrot.slane %v1293_v28, 5  ;;  %v2302_v36 = vrot.slane %v2301_v11, 4  ;;  %v2320_v60 = vrot.slane %v2318_v62, 5 }
 0x183   :  { %v4205_v42 = vcombine.low %v2279_v32, %v2293_v57  ;;  %v2315_v19 = vor.u32 %v2314_v40, %v2311_v44  ;;  %v1306_v30 = vrot.slane %v1304_v59, 4  ;;  %v1307_v27 = vshll.u32 %v1088_v35, 16  ;;  %v5805_v44 = vld [vmem:[#allocation2 + $0x8c] sm:$0x1] }
 0x184   :  { %v1296_v14 = vor.u32 %v1295_v5, %v1292_v55  ;;  %v1299_v4 = vshll.u32 %v5622_v2, 16  ;;  %v2323_v49 = vshrl.u32 %v2122_v34, 16  ;;  %v2326_v23 = vshll.u32 %v2122_v34, 16  ;;  %v2562_v34 = vld [vmem:[#allocation2 + $0x18] sm:$0xe] }
 0x185   :  { %4689 = vmatmul.mubr.bf16.gmra.mxu0 %v4205_v42  ;;  %v2316_v45 = vrot.slane %v2315_v19, 4  ;;  %v1309_v39 = vrot.slane %v1307_v27, 5  ;;  %v1313_v9 = vshll.u32 %v5635_v47, 16  ;;  %v2337_v21 = vshrl.u32 %v2124_v25, 16  ;;  %v4926_v27 = vld [vmem:[#allocation2 + $0x8] ss:$8 sps:$4 sm:$0xff]  }
 0x186   :  { %v2307_v20 = vsel %vm5604_vm11, %v2302_v36, %v2306_v16  ;;  %v2325_v35 = vrot.slane %v2323_v49, 4  ;;  %v2328_v62 = vrot.slane %v2326_v23, 5  ;;  %v1297_v2 = vrot.slane %v1296_v14, 4  ;;  %v2563_v16 = vld [vmem:[#allocation2 + $0x20] sm:$0xe] }
 0x187   :  { %v2321_v3 = vsel %vm5604_vm11, %v2316_v45, %v2320_v60  ;;  %v1310_v11 = vor.u32 %v1309_v39, %v1306_v30  ;;  %v1301_v33 = vrot.slane %v1299_v4, 5  ;;  %v2339_v40 = vrot.slane %v2337_v21, 4  ;;  %v2565_v30 = vld [vmem:[#allocation2 + $0x30] sm:$0xe] }
 0x188   :  { %v4206_v6 = vcombine.low %v2307_v20, %v2321_v3  ;;  %v2329_v28 = vor.u32 %v2328_v62, %v2325_v35  ;;  %v2340_v47 = vshll.u32 %v2124_v25, 16  ;;  %v1315_v32 = vrot.slane %v1313_v9, 5  ;;  %v2564_v25 = vld [vmem:[#allocation2 + $0x28] sm:$0xe] }
 0x189   :  { %v1311_v59 = vrot.slane %v1310_v11, 4  ;;  %v2332_v57 = vshll.u32 %v5805_v44, 16  ;;  %v2346_v55 = vshll.u32 %v5807_v41, 16  ;;  %v1302_v42 = vsel %vm5604_vm11, %v1297_v2, %v1301_v33  ;;  %v4929_v33 = vld [vmem:[#allocation2 + $0x10] ss:$8 sps:$4 sm:$0xff]  }
 0x18a   :  { %4692 = vmatprep.mubr.bf16.mxu0 %v4206_v6  ;;  %v2342_v5 = vrot.slane %v2340_v47, 5  ;;  %v2330_v60 = vrot.slane %v2329_v28, 4  ;;  %v4218_v49 = vrot.slane %v2562_v34, 9  ;;  %v2618_v39 = vrot.slane %v5648_v0, 5  ;;  %v2566_v28 = vld [vmem:[#allocation2 + $0x38] sm:$0xe] }
 0x18b   :  { %v1316_v36 = vsel %vm5604_vm11, %v1311_v59, %v1315_v32  ;;  %v2334_v45 = vrot.slane %v2332_v57, 5  ;;  %v2348_v4 = vrot.slane %v2346_v55, 5  ;;  %v4219_v9 = vrot.slane %v2563_v16, 9  ;;  %v2567_v59 = vld [vmem:[#allocation2 + $0x40] sm:$0xe]  ;;  %v4934_v55 = vld [vmem:[%s6546_s4 + $0x170] sm:$0xff]  }
 0x18c   :  { %v4095_v19 = vcombine.low %v1302_v42, %v1316_v36  ;;  %v2343_v14 = vor.u32 %v2342_v5, %v2339_v40  ;;  %v2622_v21 = vrot.slane %v5651_v10, 5  ;;  %v4220_v20 = vrot.slane %v2564_v25, 9  ;;  %v2568_v32 = vld [vmem:[#allocation2 + $0x58] sm:$0xe]  ;;  %v2569_v5 = vld [vmem:[#allocation2 + $0x60] sm:$0xe] }
 0x18d   :  { %v2626_v3 = vrot.slane %v5665_v37, 5  ;;  %v4221_v35 = vrot.slane %v2565_v30, 9  ;;  %v2335_v62 = vsel %vm5604_vm11, %v2330_v60, %v2334_v45  ;;  %v5824_v2 = vsel %vm5329_vm8, %v4218_v49, %v2618_v39  ;;  %v4932_v57 = vld [vmem:[#allocation2 + $0x18] ss:$8 sps:$4 sm:$0xff]   ;;  %v4933_v34 = vld [vmem:[#allocation2 + $0x28] ss:$8 sps:$4 sm:$0xff]  }
 0x18e   :  { %4597 = vmatmul.mubr.bf16.gmra.mxu1 %v4095_v19  ;;  %v2344_v23 = vrot.slane %v2343_v14, 4  ;;  %v5828_v0 = vsel %vm5329_vm8, %v4219_v9, %v2622_v21  ;;  %v2630_v37 = vrot.slane %v5670_v43, 5  ;;  %v4222_v42 = vrot.slane %v2566_v28, 9  ;;  %v2570_v30 = vld [vmem:[#allocation2 + $0x68] sm:$0xe] }
 0x18f   :  { %4648 = vmatprep.mubr.bf16.mxu1 %v4926_v27  ;;  %v4249_v11 = vcombine.low %v5824_v2, %v5828_v0  ;;  %v5835_v40 = vsel %vm5329_vm8, %v4220_v20, %v2626_v3  ;;  %v2634_v36 = vrot.slane %v5692_v31, 5  ;;  %v4223_v16 = vrot.slane %v2567_v59, 9  ;;  %v4938_v27 = vld [vmem:[%s6546_s4 + $0x168] sm:$0xff]   ;;  %v2571_v45 = vld [vmem:[#allocation2 + $0x70] sm:$0xe] }
 0x190   :  { %v2349_v6 = vsel %vm5604_vm11, %v2344_v23, %v2348_v4  ;;  %v5839_v47 = vsel %vm5329_vm8, %v4221_v35, %v2630_v37  ;;  %v2638_v19 = vrot.slane %v5706_v15, 5  ;;  %v4224_v60 = vrot.slane %v2568_v32, 9  ;;  %v4935_v4 = vld [vmem:[#allocation2 + $0x20] ss:$8 sps:$4 sm:$0xff]   ;;  %v2572_v23 = vld [vmem:[#allocation2 + $0x78] sm:$0xe] }
 0x191   :  { %v4207_v10 = vcombine.low %v2335_v62, %v2349_v6  ;;  %v2642_v14 = vrot.slane %v5718_v51, 5  ;;  %v4225_v25 = vrot.slane %v2569_v5, 9  ;;  %v5855_v31 = vsel %vm5329_vm8, %v4222_v42, %v2634_v36  ;;  %v5865_v51 = vld [vmem:[%s6546_s4 + $0x230] sm:$0xff]   ;;  %v2573_v3 = vld [vmem:[#allocation2 + $0x80] sm:$0xe]  ;;  %v5890_v59 = vld [vmem:[%s6546_s4 + $0x228] sm:$0xff]  }
 0x192   :  { %v5859_v15 = vsel %vm5329_vm8, %v4223_v16, %v2638_v19  ;;  %v4937_v39 = vld [vmem:[#allocation2 + $0x30] ss:$8 sps:$4 sm:$0xff]   ;;  %v2650_v20 = vrot.slane %v5763_v24, 5  ;;  %v4227_v62 = vrot.slane %v2571_v45, 9  ;;  %v2654_v6 = vrot.slane %v5769_v13, 5  ;;  %v4942_v37 = vld [vmem:[%s6546_s4 + $0x160] sm:$0xff]  }
 0x193   :  { %4693 = vmatmul.mubr.bf16.gmra.mxu0 %v4207_v10  ;;  %v5871_v9 = vsel %vm5329_vm8, %v4224_v60, %v2642_v14  ;;  %v4940_v10 = vld [vmem:[#allocation2 + $0x38] ss:$8 sps:$4 sm:$0xff]   ;;  %v2658_v24 = vrot.slane %v5779_v48, 5  ;;  %v2662_v48 = vrot.slane %v5788_v17, 5  ;;  %v2561_v60 = vld [vmem:[#allocation2 + $0x10] sm:$0xe] }
 0x194   :  { %4744 = vmatprep.mubr.bf16.mxu0 %v4929_v33  ;;  %v4228_v33 = vrot.slane %v2572_v23, 9  ;;  %v4941_v28 = vld [vmem:[#allocation2 + $0x58] ss:$8 sps:$4 sm:$0xff]   ;;  %v5898_v32 = vsel %vm5329_vm8, %v4227_v62, %v2654_v6  ;;  %v4948_v14 = vld [vmem:[#allocation2 + $0x68] ss:$8 sps:$4 sm:$0xff]   ;;  %v4217_v45 = vrot.slane %v2561_v60, 9 }
 0x195   :  { %v4943_v42 = vld [vmem:[#allocation2 + $0x40] ss:$8 sps:$4 sm:$0xff]   ;;  %v4946_v36 = vld [vmem:[%s6546_s4 + $0x158] sm:$0xff]   ;;  %v5034_v6 = vld [vmem:[#allocation2 + $0xc] sm:$0x1] }
 0x196   :  { %4649 = vmatmul.mubr.bf16.vlgmr.msra.gmra.mxu1 %v4932_v57  ;;  %v4229_v57 = vrot.slane %v2573_v3, 9  ;;  %v5905_v5 = vsel %vm5329_vm8, %v4228_v33, %v2658_v24  ;;  %v5921_v16 = vld [vmem:[%s6546_s4 + $0x220] sm:$0xff]   ;;  %v5942_v3 = vld [vmem:[%s6546_s4 + $0x210] sm:$0xff]   ;;  %v3127_v43 = vld [vmem:[#allocation2 + $0x18] sm:$0xf] }
 0x197   :  { %4697 = vmatpush3.bf16.msra.mxu1 %v5761_v22  ;;  %4652 = vmatprep.mubr.bf16.mxu1 %v4933_v34  ;;  %v2646_v22 = vrot.slane %v5724_v56, 5  ;;  %v4226_v56 = vrot.slane %v2570_v30, 9  ;;  %v4945_v19 = vld [vmem:[#allocation2 + $0x60] ss:$8 sps:$4 sm:$0xff]   ;;  %v5945_v33 = vld [vmem:[#allocation2 + $0x14] sm:$0x1] }
 0x198   :  { %4698 = vmatprep.subr.bf16.mxu1 %v4934_v55  ;;  %v5909_v34 = vsel %vm5329_vm8, %v4229_v57, %v2662_v48  ;;  %v4949_v30 = vld [vmem:[#allocation2 + $0x78] ss:$8 sps:$4 sm:$0xff]   ;;  %v3591_v24 = vld [vmem:[#allocation2 + $0x10] sm:$0xe] }
 0x199   :  { %v5875_v21 = vsel %vm5329_vm8, %v4225_v25, %v2646_v22  ;;  %v5894_v13 = vsel %vm5329_vm8, %v4226_v56, %v2650_v20  ;;  %v4950_v25 = vld [vmem:[%s6546_s4 + $0x150] sm:$0xff]   ;;  %v2560_v22 = vld [vmem:[#allocation2 + $0x8] sm:$0xe]  ;;  %v3592_v56 = vld [vmem:[#allocation2 + $0x18] sm:$0xe] }
 0x19a   :  { %v4954_v20 = vld [vmem:[%s6546_s4 + $0x148] sm:$0xff]   ;;  %v4216_v62 = vrot.slane %v2560_v22, 9  ;;  %v4329_v48 = vrot.slane %v3592_v56, 9  ;;  %v4957_v60 = vld [vmem:[%s6546_s4 + $0x140] sm:$0xff]   ;;  %v5967_v56 = vld [vmem:[#allocation2 + $0x3c] sm:$0x1] }
 0x19b   :  { %4745 = vmatmul.mubr.bf16.vlgmr.msra.gmra.mxu0 %v4935_v4  ;;  %4699 = vmatpush3.bf16.msra.mxu1 %v4934_v55  ;;  %v5033_v4 = vld [vmem:[#allocation2 + $0x14] sm:$0x1]  ;;  %v5995_v55 = vld [vmem:[#allocation2 + $0x44] sm:$0x1]  ;;  %v3597_v35 = vld [vmem:[#allocation2 + $0x40] sm:$0xe] }
 0x19c   :  { %4748 = vmatprep.mubr.bf16.mxu0 %v4937_v39  ;;  %4793 = vmatpush3.bf16.msra.mxu0 %v5784_v61  ;;  %v2614_v23 = vrot.slane %v5033_v4, 5  ;;  %v5933_v39 = vld [vmem:[#allocation2 + $0x1c] sm:$0x1]  ;;  %v5965_v4 = vld [vmem:[#allocation2 + $0x2c] sm:$0x1]  ;;  %v4962_v17 = vld [vmem:[%s6546_s4 + $0x1f0] sm:$0xff]  }
 0x19d   :  { %4700 = vmatprep.subr.bf16.mxu1 %v4938_v27  ;;  %4794 = vmatprep.subr.bf16.mxu0 %v5865_v51  ;;  %v4334_v52 = vrot.slane %v3597_v35, 9  ;;  %v3665_v29 = vrot.slane %v5995_v55, 5  ;;  %v3125_v2 = vld [vmem:[#allocation2 + $0x10] sm:$0xf] }
 0x19e   :  { %4653 = vmatmul.mubr.bf16.gmra.mxu1 %v4940_v10  ;;  %v2610_v10 = vrot.slane %v5034_v6, 5  ;;  %v2615_v57 = vsel %vm5329_vm8, %v4217_v45, %v2614_v23  ;;  %v3594_v23 = vld [vmem:[#allocation2 + $0x28] sm:$0xe]  ;;  %v4958_v6 = vld [vmem:[#allocation2 + $0x90] ss:$8 sps:$4 sm:$0xff]  }
 0x19f   :  { %4701 = vmatpush3.bf16.msra.mxu1 %v4938_v27  ;;  %4656 = vmatprep.mubr.bf16.mxu1 %v4941_v28  ;;  %v5931_v27 = vld [vmem:[%s6546_s4 + $0x218] sm:$0xff]   ;;  %v4953_v28 = vld [vmem:[#allocation2 + $0x80] ss:$8 sps:$4 sm:$0xff]   ;;  %v2575_v35 = vld [vmem:[#allocation2 + $0x90] sm:$0xe] }
 0x1a0   :  { %4795 = vmatpush3.bf16.msra.mxu0 %v5865_v51  ;;  %4702 = vmatprep.subr.bf16.mxu1 %v4942_v37 }
 0x1a1   :  { %4796 = vmatprep.subr.bf16.mxu0 %v5890_v59 }
 0x1a3   :  { %4749 = vmatmul.mubr.bf16.gmra.mxu0 %v4943_v42  ;;  %4703 = vmatpush3.bf16.msra.mxu1 %v4942_v37  ;;  %v4951_v37 = vld [vmem:[#allocation2 + $0x70] ss:$8 sps:$4 sm:$0xff]   ;;  %v3645_v42 = vrot.slane %v5933_v39, 5 }
 0x1a4   :  { %4752 = vmatprep.mubr.bf16.mxu0 %v4945_v19  ;;  %4797 = vmatpush3.bf16.msra.mxu0 %v5890_v59  ;;  %v2611_v19 = vsel %vm5329_vm8, %v4216_v62, %v2610_v10  ;;  %v3596_v62 = vld [vmem:[#allocation2 + $0x38] sm:$0xe] }
 0x1a5   :  { %4704 = vmatprep.subr.bf16.mxu1 %v4946_v36  ;;  %4798 = vmatprep.subr.bf16.mxu0 %v5921_v16  ;;  %v4248_v22 = vcombine.low %v2611_v19, %v2615_v57  ;;  %v3646_v45 = vsel %vm5329_vm8, %v4329_v48, %v3645_v42  ;;  %v5986_v57 = vld [vmem:[#allocation2 + $0x24] sm:$0x1]  ;;  %v3593_v48 = vld [vmem:[#allocation2 + $0x20] sm:$0xe]  ;;  %v5988_v42 = vld [vmem:[#allocation2 + $0x34] sm:$0x1] }
 0x1a6   :  { %4657 = vmatmul.mubr.bf16.gmra.mxu1 %v4948_v14  ;;  %v4328_v14 = vrot.slane %v3591_v24, 9  ;;  %v5983_v24 = vld [vmem:[%s6548_s3] ss:$0 sm:$0xff]  ;;  %v3653_v19 = vrot.slane %v5965_v4, 5 }
 0x1a7   :  { %4705 = vmatpush3.bf16.msra.mxu1 %v4946_v36  ;;  %4660 = vmatprep.mubr.bf16.mxu1 %v4949_v30  ;;  %v4956_v36 = vld [vmem:[#allocation2 + $0x88] ss:$8 sps:$4 sm:$0xff]   ;;  %v3641_v30 = vrot.slane %v5945_v33, 5  ;;  %v778_v49 = vadd.f32 %v5983_v24, %v5257_v46  ;;  %v779_v0 = vadd.f32 %v5983_v24, %v5260_v50 }
 0x1a8   :  { %4799 = vmatpush3.bf16.msra.mxu0 %v5921_v16  ;;  %4706 = vmatprep.subr.bf16.mxu1 %v4950_v25  ;;  %v2574_v50 = vld [vmem:[#allocation2 + $0x88] sm:$0xe] }
 0x1a9   :  { %4800 = vmatprep.subr.bf16.mxu0 %v5931_v27  ;;  %v3642_v10 = vsel %vm5329_vm8, %v4328_v14, %v3641_v30  ;;  %v3595_v14 = vld [vmem:[#allocation2 + $0x30] sm:$0xe]  ;;  %v4333_v30 = vrot.slane %v3596_v62, 9  ;;  %v3598_v62 = vld [vmem:[#allocation2 + $0x48] sm:$0xe] }
 0x1aa   :  { %v4335_v46 = vrot.slane %v3598_v62, 9 }
 0x1ab   :  { %4753 = vmatmul.mubr.bf16.gmra.mxu0 %v4951_v37  ;;  %4707 = vmatpush3.bf16.msra.mxu1 %v4950_v25  ;;  %v5961_v25 = vld [vmem:[%s6546_s4 + $0x208] sm:$0xff]   ;;  %v4960_v37 = vld [vmem:[%s6546_s4 + $0x1f8] sm:$0xff]  }
 0x1ac   :  { %4756 = vmatprep.mubr.bf16.mxu0 %v4953_v28  ;;  %4801 = vmatpush3.bf16.msra.mxu0 %v5931_v27  ;;  %v4360_v28 = vcombine.low %v3642_v10, %v3646_v45  ;;  %v5997_v45 = vld [vmem:[#allocation2 + $0x4c] sm:$0x1]  ;;  %v3649_v10 = vrot.slane %v5986_v57, 5 }
 0x1ad   :  { %4708 = vmatprep.subr.bf16.mxu1 %v4954_v20  ;;  %4802 = vmatprep.subr.bf16.mxu0 %v5942_v3  ;;  %v3669_v26 = vrot.slane %v5997_v45, 5 }
 0x1ae   :  { %4661 = vmatmul.mubr.bf16.gmra.mxu1 %v4956_v36  ;;  %v4331_v36 = vrot.slane %v3594_v23, 9  ;;  %v4330_v23 = vrot.slane %v3593_v48, 9 }
 0x1af   :  { %4709 = vmatpush3.bf16.msra.mxu1 %v4954_v20  ;;  %4712 = vmatprep.mubr.bf16.mxu1 %v4248_v22  ;;  %v5978_v20 = vld [vmem:[%s6546_s4 + $0x200] sm:$0xff]   ;;  %v3661_v22 = vrot.slane %v5967_v56, 5 }
 0x1b0   :  { %4803 = vmatpush3.bf16.msra.mxu0 %v5942_v3  ;;  %4710 = vmatprep.subr.bf16.mxu1 %v4957_v60 }
 0x1b1   :  { %4804 = vmatprep.subr.bf16.mxu0 %v5961_v25  ;;  %v3662_v48 = vsel %vm5329_vm8, %v4333_v30, %v3661_v22  ;;  %v3175_v30 = vshll.u32 %v3127_v43, 16  ;;  %v6033_v22 = vadd.f32 %v5983_v24, %v5271_v58  ;;  %v6043_v58 = vld [vmem:[%s6549_s5] ss:$0 sm:$0xff] }
 0x1b2   :  { %v6053_v8 = vadd.f32 %v6043_v58, %v778_v49  ;;  %v4965_v49 = vld [vmem:[%s6546_s4 + $0x1d8] sm:$0xff]  }
 0x1b3   :  { %4757 = vmatmul.mubr.bf16.gmra.mxu0 %v4958_v6  ;;  %4711 = vmatpush3.bf16.msra.mxu1 %v4957_v60  ;;  %v4332_v60 = vrot.slane %v3595_v14, 9  ;;  %v3657_v6 = vrot.slane %v5988_v42, 5  ;;  %v6567_v14 = vcombine.low %v5835_v40, %v5839_v47  ;;  %v3650_v40 = vsel %vm5329_vm8, %v4330_v23, %v3649_v10  ;;  %v4963_v47 = vld [vmem:[%s6546_s4 + $0x1e8] sm:$0xff]   ;;  %v3129_v10 = vld [vmem:[#allocation2 + $0x20] sm:$0xf] }
 0x1b4   :  { %4805 = vmatpush3.bf16.msra.mxu0 %v5961_v25  ;;  %4808 = vmatprep.mubr.bf16.mxu0 %v4360_v28  ;;  %v3654_v28 = vsel %vm5329_vm8, %v4331_v36, %v3653_v19  ;;  %v3172_v19 = vshrl.u32 %v3127_v43, 16  ;;  %v3161_v23 = vshll.u32 %v3125_v2, 16  ;;  %v2670_v43 = vrot.slane %v5807_v41, 5 }
 0x1b5   :  { %4760 = vmatprep.subr.bf16.mxu1 %v4960_v37  ;;  %4806 = vmatprep.subr.bf16.mxu0 %v5978_v20  ;;  %v3658_v36 = vsel %vm5329_vm8, %v4332_v60, %v3657_v6  ;;  %v3670_v60 = vsel %vm5329_vm8, %v4335_v46, %v3669_v26  ;;  %v4231_v6 = vrot.slane %v2575_v35, 9  ;;  %v3177_v46 = vrot.slane %v3175_v30, 5  ;;  %v3133_v35 = vld [vmem:[#allocation2 + $0x30] sm:$0xf] }
 0x1b6   :  { %4713 = vmatmul.mubr.bf16.vlgmr.msra.gmra.mxu1 %v4249_v11  ;;  %v6021_v11 = vadd.f32 %v5983_v24, %v5265_v54  ;;  %v3131_v54 = vld [vmem:[#allocation2 + $0x28] sm:$0xf]  ;;  %v4362_v62 = vcombine.low %v3658_v36, %v3662_v48  ;;  %v4230_v48 = vrot.slane %v2574_v50, 9  ;;  %v3174_v26 = vrot.slane %v3172_v19, 4 }
 0x1b7   :  { %4761 = vmatpush3.bf16.msra.mxu1 %v4960_v37  ;;  %4716 = vmatprep.mubr.bf16.mxu1 %v6567_v14  ;;  %v4361_v37 = vcombine.low %v3650_v40, %v3654_v28  ;;  %v3158_v14 = vshrl.u32 %v3125_v2, 16  ;;  %v3666_v28 = vsel %vm5329_vm8, %v4334_v52, %v3665_v29  ;;  %v2666_v29 = vrot.slane %v5805_v44, 5 }
 0x1b8   :  { %4807 = vmatpush3.bf16.msra.mxu0 %v5978_v20  ;;  %4762 = vmatprep.subr.bf16.mxu1 %v4962_v17  ;;  %v3200_v52 = vshrl.u32 %v3131_v54, 16  ;;  %v3203_v2 = vshll.u32 %v3131_v54, 16  ;;  %v3186_v40 = vshrl.u32 %v3129_v10, 16  ;;  %v3189_v41 = vshll.u32 %v3129_v10, 16  ;;  %v3135_v54 = vld [vmem:[#allocation2 + $0x38] sm:$0xf] }
 0x1b9   :  { %v3160_v36 = vrot.slane %v3158_v14, 4  ;;  %v6056_v50 = vadd.f32 %v6043_v58, %v779_v0  ;;  %v6569_v44 = vcombine.low %v5871_v9, %v5875_v21  ;;  %v4363_v19 = vcombine.low %v3666_v28, %v3670_v60 }
 0x1ba   :  { %v6063_v30 = vsel %vm5329_vm8, %v4231_v6, %v2670_v43  ;;  %v3202_v0 = vrot.slane %v3200_v52, 4  ;;  %v3214_v14 = vshrl.u32 %v3133_v35, 16  ;;  %v3217_v9 = vshll.u32 %v3133_v35, 16  ;;  %v3137_v43 = vld [vmem:[#allocation2 + $0x40] sm:$0xf] }
 0x1bb   :  { %4809 = vmatmul.mubr.bf16.vlgmr.msra.gmra.mxu0 %v4361_v37  ;;  %4763 = vmatpush3.bf16.msra.mxu1 %v4962_v17  ;;  %v4964_v17 = vld [vmem:[%s6546_s4 + $0x1e0] sm:$0xff]   ;;  %v6568_v37 = vcombine.low %v5855_v31, %v5859_v15  ;;  %v3167_v31 = vshll.u32 %v5945_v33, 16  ;;  %v3181_v15 = vshll.u32 %v5933_v39, 16  ;;  %v6072_v21 = vsel %vm5329_vm8, %v4230_v48, %v2666_v29 }
 0x1bc   :  { %4812 = vmatprep.mubr.bf16.mxu0 %v4362_v62  ;;  %4764 = vmatprep.subr.bf16.mxu1 %v4963_v47  ;;  %v3163_v62 = vrot.slane %v3161_v23, 5  ;;  %v3178_v23 = vor.u32 %v3177_v46, %v3174_v26  ;;  %v3188_v10 = vrot.slane %v3186_v40, 4  ;;  %v3191_v28 = vrot.slane %v3189_v41, 5  ;;  %v3143_v40 = vld [vmem:[#allocation2 + $0x68] sm:$0xf] }
 0x1bd   :  { %v3195_v39 = vshll.u32 %v5986_v57, 16  ;;  %v3228_v60 = vshrl.u32 %v3135_v54, 16  ;;  %v3231_v6 = vshll.u32 %v3135_v54, 16  ;;  %v4255_v52 = vcombine.low %v6072_v21, %v6063_v30  ;;  %v4966_v57 = vld [vmem:[%s6546_s4 + $0x1d0] sm:$0xff]  }
 0x1be   :  { %4717 = vmatmul.mubr.bf16.gmra.mxu1 %v6568_v37  ;;  %v3164_v33 = vor.u32 %v3163_v62, %v3160_v36  ;;  %v3183_v35 = vrot.slane %v3181_v15, 5  ;;  %v3139_v37 = vld [vmem:[#allocation2 + $0x48] sm:$0xf]  ;;  %v6079_v48 = vadd.f32 %v6043_v58, %v6021_v11  ;;  %v3209_v26 = vshll.u32 %v5965_v4, 16 }
 0x1bf   :  { %4765 = vmatpush3.bf16.msra.mxu1 %v4963_v47  ;;  %4720 = vmatprep.mubr.bf16.mxu1 %v6569_v44  ;;  %v3205_v47 = vrot.slane %v3203_v2, 5  ;;  %v3169_v2 = vrot.slane %v3167_v31, 5  ;;  %v3216_v46 = vrot.slane %v3214_v14, 4  ;;  %v3179_v41 = vrot.slane %v3178_v23, 4 }
 0x1c0   :  { %4766 = vmatprep.subr.bf16.mxu1 %v4964_v17  ;;  %v3192_v36 = vor.u32 %v3191_v28, %v3188_v10  ;;  %v3242_v62 = vshrl.u32 %v3137_v43, 16  ;;  %v3245_v44 = vshll.u32 %v3137_v43, 16  ;;  %v3165_v11 = vrot.slane %v3164_v33, 4 }
 0x1c1   :  { %v3206_v29 = vor.u32 %v3205_v47, %v3202_v0  ;;  %v3197_v30 = vrot.slane %v3195_v39, 5  ;;  %v3230_v31 = vrot.slane %v3228_v60, 4  ;;  %v3233_v15 = vrot.slane %v3231_v6, 5  ;;  %v3141_v47 = vld [vmem:[#allocation2 + $0x60] sm:$0xf] }
 0x1c2   :  { %v6571_v54 = vcombine.low %v5905_v5, %v5909_v34  ;;  %v3256_v4 = vshrl.u32 %v3139_v37, 16  ;;  %v3259_v0 = vshll.u32 %v3139_v37, 16  ;;  %v3284_v14 = vshrl.u32 %v3143_v40, 16 }
 0x1c3   :  { %4813 = vmatmul.mubr.bf16.gmra.mxu0 %v4363_v19  ;;  %4767 = vmatpush3.bf16.msra.mxu1 %v4964_v17  ;;  %v3219_v17 = vrot.slane %v3217_v9, 5  ;;  %v6570_v19 = vcombine.low %v5894_v13, %v5898_v32  ;;  %v3287_v9 = vshll.u32 %v3143_v40, 16  ;;  %v4967_v13 = vld [vmem:[%s6546_s4 + $0x1c8] sm:$0xff]   ;;  %v3207_v32 = vrot.slane %v3206_v29, 4 }
 0x1c4   :  { %4768 = vmatprep.subr.bf16.mxu1 %v4965_v49  ;;  %v3211_v21 = vrot.slane %v3209_v26, 5  ;;  %v3223_v10 = vshll.u32 %v5988_v42, 16  ;;  %v3193_v5 = vrot.slane %v3192_v36, 4  ;;  %v3244_v34 = vrot.slane %v3242_v62, 4  ;;  %v6107_v62 = vld [vmem:[#allocation2 + $0x64] sm:$0x1] }
 0x1c5   :  { %v3220_v23 = vor.u32 %v3219_v17, %v3216_v46  ;;  %v3247_v28 = vrot.slane %v3245_v44, 5  ;;  %v3234_v33 = vor.u32 %v3233_v15, %v3230_v31  ;;  %v3237_v39 = vshll.u32 %v5967_v56, 16  ;;  %v3147_v44 = vld [vmem:[#allocation2 + $0x78] sm:$0xf] }
 0x1c6   :  { %4721 = vmatmul.mubr.bf16.gmra.mxu1 %v6570_v19  ;;  %v3270_v60 = vshrl.u32 %v3141_v47, 16  ;;  %v3273_v6 = vshll.u32 %v3141_v47, 16  ;;  %v3258_v43 = vrot.slane %v3256_v4, 4  ;;  %v3261_v37 = vrot.slane %v3259_v0, 5  ;;  %v3151_v47 = vld [vmem:[#allocation2 + $0x88] sm:$0xf] }
 0x1c7   :  { %4769 = vmatpush3.bf16.msra.mxu1 %v4965_v49  ;;  %4724 = vmatprep.mubr.bf16.mxu1 %v6571_v54  ;;  %v3184_v49 = vsel %vm5604_vm11, %v3179_v41, %v3183_v35  ;;  %v3286_v40 = vrot.slane %v3284_v14, 4  ;;  %v3289_v29 = vrot.slane %v3287_v9, 5  ;;  %v3170_v42 = vsel %vm5604_vm11, %v3165_v11, %v3169_v2  ;;  %v4968_v35 = vld [vmem:[%s6546_s4 + $0x1c0] sm:$0xff]   ;;  %v6111_v11 = vld [vmem:[#allocation2 + $0x6c] sm:$0x1] }
 0x1c8   :  { %4770 = vmatprep.subr.bf16.mxu1 %v4966_v57  ;;  %v3212_v26 = vsel %vm5604_vm11, %v3207_v32, %v3211_v21  ;;  %v3221_v46 = vrot.slane %v3220_v23, 4  ;;  %v3251_v56 = vshll.u32 %v5995_v55, 16  ;;  %v4312_v17 = vcombine.low %v3170_v42, %v3184_v49  ;;  %v3145_v14 = vld [vmem:[#allocation2 + $0x70] sm:$0xf] }
 0x1c9   :  { %v3248_v41 = vor.u32 %v3247_v28, %v3244_v34  ;;  %v3265_v36 = vshll.u32 %v5997_v45, 16  ;;  %v3198_v2 = vsel %vm5604_vm11, %v3193_v5, %v3197_v30  ;;  %v3235_v19 = vrot.slane %v3234_v33, 4 }
 0x1ca   :  { %v3272_v31 = vrot.slane %v3270_v60, 4  ;;  %v3275_v15 = vrot.slane %v3273_v6, 5  ;;  %v4313_v55 = vcombine.low %v3198_v2, %v3212_v26  ;;  %v3239_v54 = vrot.slane %v3237_v39, 5 }
 0x1cb   :  { %4771 = vmatpush3.bf16.msra.mxu1 %v4966_v57  ;;  %v3225_v57 = vrot.slane %v3223_v10, 5  ;;  %v3262_v4 = vor.u32 %v3261_v37, %v3258_v43  ;;  %v3290_v0 = vor.u32 %v3289_v29, %v3286_v40  ;;  %v3312_v9 = vshrl.u32 %v3147_v44, 16  ;;  %v3149_v10 = vld [vmem:[#allocation2 + $0x80] sm:$0xf] }
 0x1cc   :  { %4772 = vmatprep.subr.bf16.mxu1 %v4967_v13  ;;  %v3315_v30 = vshll.u32 %v3147_v44, 16  ;;  %v3249_v32 = vrot.slane %v3248_v41, 4  ;;  %v3267_v21 = vrot.slane %v3265_v36, 5  ;;  %v3279_v23 = vshll.u32 %v6107_v62, 16  ;;  %v3155_v44 = vld [vmem:[#allocation2 + $0x98] sm:$0xf] }
 0x1cd   :  { %v3226_v45 = vsel %vm5604_vm11, %v3221_v46, %v3225_v57  ;;  %v3240_v49 = vsel %vm5604_vm11, %v3235_v19, %v3239_v54  ;;  %v3276_v5 = vor.u32 %v3275_v15, %v3272_v31  ;;  %v3340_v34 = vshrl.u32 %v3151_v47, 16  ;;  %v6129_v31 = vld [vmem:[#allocation2 + $0x74] sm:$0x1] }
 0x1ce   :  { %4725 = vmatmul.mubr.bf16.gmra.mxu1 %v4255_v52  ;;  %v3253_v52 = vrot.slane %v3251_v56, 5  ;;  %v3343_v28 = vshll.u32 %v3151_v47, 16  ;;  %v3263_v33 = vrot.slane %v3262_v4, 4  ;;  %v3291_v39 = vrot.slane %v3290_v0, 4  ;;  %v3153_v56 = vld [vmem:[#allocation2 + $0x90] sm:$0xf] }
 0x1cf   :  { %4773 = vmatpush3.bf16.msra.mxu1 %v4967_v13  ;;  %4776 = vmatprep.mubr.bf16.mxu1 %v4312_v17  ;;  %v3293_v13 = vshll.u32 %v6111_v11, 16  ;;  %v3298_v60 = vshrl.u32 %v3145_v14, 16  ;;  %v3301_v6 = vshll.u32 %v3145_v14, 16  ;;  %v3314_v43 = vrot.slane %v3312_v9, 4 }
 0x1d0   :  { %4774 = vmatprep.subr.bf16.mxu1 %v4968_v35  ;;  %v3317_v37 = vrot.slane %v3315_v30, 5  ;;  %v3326_v40 = vshrl.u32 %v3149_v10, 16  ;;  %v3329_v29 = vshll.u32 %v3149_v10, 16  ;;  %v4314_v42 = vcombine.low %v3226_v45, %v3240_v49  ;;  %v6137_v45 = vld [vmem:[#allocation2 + $0x8c] sm:$0x1] }
 0x1d1   :  { %v3254_v26 = vsel %vm5604_vm11, %v3249_v32, %v3253_v52  ;;  %v3295_v46 = vrot.slane %v3293_v13, 5  ;;  %v804_v17 = vadd.f32 %v6043_v58, %v6033_v22  ;;  %v3281_v57 = vrot.slane %v3279_v23, 5 }
 0x1d2   :  { %v3342_v41 = vrot.slane %v3340_v34, 4  ;;  %v3345_v36 = vrot.slane %v3343_v28, 5  ;;  %v3268_v2 = vsel %vm5604_vm11, %v3263_v33, %v3267_v21  ;;  %v3300_v15 = vrot.slane %v3298_v60, 4  ;;  %v6147_v28 = vld [vmem:[#allocation2 + $0x84] sm:$0x1] }
 0x1d3   :  { %4775 = vmatpush3.bf16.msra.mxu1 %v4968_v35  ;;  %v3277_v35 = vrot.slane %v3276_v5, 4  ;;  %v3296_v19 = vsel %vm5604_vm11, %v3291_v39, %v3295_v46  ;;  %v3303_v54 = vrot.slane %v3301_v6, 5  ;;  %v3318_v4 = vor.u32 %v3317_v37, %v3314_v43 }
 0x1d4   :  { %4824 = vmatprep.subr.bf16.mxu1 %v5784_v61  ;;  %v3328_v0 = vrot.slane %v3326_v40, 4  ;;  %v3331_v47 = vrot.slane %v3329_v29, 5  ;;  %v3354_v52 = vshrl.u32 %v3153_v56, 16  ;;  %v3357_v14 = vshll.u32 %v3153_v56, 16 }
 0x1d5   :  { %v3368_v9 = vshrl.u32 %v3155_v44, 16  ;;  %v3371_v30 = vshll.u32 %v3155_v44, 16  ;;  %v3282_v21 = vsel %vm5604_vm11, %v3277_v35, %v3281_v57  ;;  %v3307_v23 = vshll.u32 %v6129_v31, 16  ;;  %v6158_v57 = vld [vmem:[#allocation2 + $0x94] sm:$0x1] }
 0x1d6   :  { %4777 = vmatmul.mubr.bf16.vlgmr.msra.gmra.mxu1 %v4313_v55  ;;  %v4554_v22 = vpop.f32.mrf.mxu1  ;;  %v6132_v55 = vld [vmem:[#allocation2 + $0x7c] sm:$0x1]  ;;  %v3346_v13 = vor.u32 %v3345_v36, %v3342_v41  ;;  %v4316_v49 = vcombine.low %v3282_v21, %v3296_v19  ;;  %v3304_v5 = vor.u32 %v3303_v54, %v3300_v15  ;;  %v3319_v39 = vrot.slane %v3318_v4, 4 }
 0x1d7   :  { %4832 = vmatpush3.bf16.msra.mxu1 %v5784_v61  ;;  %4780 = vmatprep.mubr.bf16.mxu1 %v4314_v42  ;;  %v6135_v61 = vadd.f32 %v4554_v22, %v6079_v48  ;;  %v4315_v48 = vcombine.low %v3254_v26, %v3268_v2  ;;  %v3321_v34 = vshll.u32 %v6132_v55, 16  ;;  %v3332_v60 = vor.u32 %v3331_v47, %v3328_v0  ;;  %v6161_v44 = vld [vmem:[#allocation2 + $0x9c] sm:$0x1]  ;;  %v3600_v47 = vld [vmem:[#allocation2 + $0x68] sm:$0xe] }
 0x1d8   :  { %4825 = vmatprep.subr.bf16.mxu1 %v5865_v51  ;;  %v979_v32 = vpop.f32.mrf.mxu1  ;;  %v3349_v6 = vshll.u32 %v6137_v45, 16  ;;  %v3359_v37 = vrot.slane %v3357_v14, 5  ;;  %v3370_v40 = vrot.slane %v3368_v9, 4  ;;  %v3335_v42 = vshll.u32 %v6147_v28, 16 }
 0x1d9   :  { %v6143_v10 = vadd.f32 %v979_v32, %v6053_v8  ;;  %v3356_v8 = vrot.slane %v3354_v52, 4  ;;  %v3347_v26 = vrot.slane %v3346_v13, 4  ;;  %v3305_v56 = vrot.slane %v3304_v5, 4 }
 0x1da   :  { %v4555_v33 = vpop.f32.mrf.mxu1  ;;  %v3323_v35 = vrot.slane %v3321_v34, 5  ;;  %v3333_v41 = vrot.slane %v3332_v60, 4  ;;  %v3351_v36 = vrot.slane %v3349_v6, 5  ;;  %v3377_v15 = vshll.u32 %v6161_v44, 16 }
 0x1db   :  { %4833 = vmatpush3.bf16.msra.mxu1 %v5865_v51  ;;  %v6151_v43 = vadd.f32 %v4555_v33, %v804_v17  ;;  %v3373_v51 = vrot.slane %v3371_v30, 5  ;;  %v3309_v17 = vrot.slane %v3307_v23, 5  ;;  %v3360_v19 = vor.u32 %v3359_v37, %v3356_v8  ;;  %v6186_v33 = vpop.f32.mrf.mxu0  ;;  %v3602_v37 = vld [vmem:[#allocation2 + $0x78] sm:$0xe] }
 0x1dc   :  { %4826 = vmatprep.subr.bf16.mxu1 %v5890_v59  ;;  %v982_v29 = vpop.f32.mrf.mxu1  ;;  %v3324_v2 = vsel %vm5604_vm11, %v3319_v39, %v3323_v35  ;;  %v3337_v54 = vrot.slane %v3335_v42, 5  ;;  %v3352_v22 = vsel %vm5604_vm11, %v3347_v26, %v3351_v36  ;;  %v3363_v0 = vshll.u32 %v6158_v57, 16 }
 0x1dd   :  { %v6155_v46 = vadd.f32 %v982_v29, %v6056_v50  ;;  %v3374_v50 = vor.u32 %v3373_v51, %v3370_v40  ;;  %v3310_v4 = vsel %vm5604_vm11, %v3305_v56, %v3309_v17  ;;  %v782_v52 = vadd.f32 %v5983_v24, %v5277_v63  ;;  %v3604_v29 = vld [vmem:[#allocation2 + $0x88] sm:$0xe]  ;;  %v3601_v56 = vld [vmem:[#allocation2 + $0x70] sm:$0xe] }
 0x1de   :  { %4781 = vmatmul.mubr.bf16.gmra.mxu1 %v4315_v48  ;;  %v4317_v14 = vcombine.low %v3310_v4, %v3324_v2  ;;  %v3361_v30 = vrot.slane %v3360_v19, 4  ;;  %v3379_v21 = vrot.slane %v3377_v15, 5  ;;  %v785_v23 = vadd.f32 %v5983_v24, %v5313_v38  ;;  %v3603_v19 = vld [vmem:[#allocation2 + $0x80] sm:$0xe] }
 0x1df   :  { %4834 = vmatpush3.bf16.msra.mxu1 %v5890_v59  ;;  %4784 = vmatprep.mubr.bf16.mxu1 %v4316_v49  ;;  %v784_v59 = vadd.f32 %v5983_v24, %v5289_v18  ;;  %v3338_v18 = vsel %vm5604_vm11, %v3333_v41, %v3337_v54  ;;  %v3375_v32 = vrot.slane %v3374_v50, 4  ;;  %v4337_v13 = vrot.slane %v3600_v47, 9 }
 0x1e0   :  { %4827 = vmatprep.subr.bf16.mxu1 %v5921_v16  ;;  %v4318_v9 = vcombine.low %v3338_v18, %v3352_v22  ;;  %v3677_v48 = vrot.slane %v6111_v11, 5  ;;  %v783_v49 = vadd.f32 %v5983_v24, %v5283_v7  ;;  %v3365_v5 = vrot.slane %v3363_v0, 5 }
 0x1e1   :  { %v807_v63 = vadd.f32 %v6043_v58, %v784_v59  ;;  %v3673_v38 = vrot.slane %v6107_v62, 5  ;;  %v805_v11 = vadd.f32 %v6043_v58, %v782_v52  ;;  %v3380_v7 = vsel %vm5604_vm11, %v3375_v32, %v3379_v21  ;;  %v3605_v52 = vld [vmem:[#allocation2 + $0x90] sm:$0xe] }
 0x1e2   :  { %v3366_v6 = vsel %vm5604_vm11, %v3361_v30, %v3365_v5  ;;  %v3678_v8 = vsel %vm5329_vm8, %v4337_v13, %v3677_v48  ;;  %v808_v62 = vadd.f32 %v6043_v58, %v785_v23  ;;  %v806_v17 = vadd.f32 %v6043_v58, %v783_v49  ;;  %v6573_v48 = vld [vmem:[#allocation5_spill] sm:$0xff] }
 0x1e3   :  { %4835 = vmatpush3.bf16.msra.mxu1 %v5921_v16  ;;  %v3599_v16 = vld [vmem:[#allocation2 + $0x60] sm:$0xe]  ;;  %v4319_v26 = vcombine.low %v3366_v6, %v3380_v7  ;;  %v3685_v41 = vrot.slane %v6132_v55, 5  ;;  %v4339_v2 = vrot.slane %v3602_v37, 9  ;;  %v3693_v15 = vrot.slane %v6137_v45, 5 }
 0x1e4   :  { %4828 = vmatprep.subr.bf16.mxu1 %v5931_v27  ;;  %v4336_v39 = vrot.slane %v3599_v16, 9  ;;  %v6199_v40 = vpop.f32.mrf.mxu0  ;;  %v3681_v22 = vrot.slane %v6129_v31, 5  ;;  %v4338_v4 = vrot.slane %v3601_v56, 9  ;;  %v4340_v55 = vrot.slane %v3603_v19, 9  ;;  %v3606_v31 = vld [vmem:[#allocation2 + $0x98] sm:$0xe] }
 0x1e5   :  { %v3689_v0 = vrot.slane %v6147_v28, 5  ;;  %v3686_v47 = vsel %vm5329_vm8, %v4339_v2, %v3685_v41  ;;  %v788_v45 = vadd.f32 %v5983_v24, %v5369_v53  ;;  %v4342_v21 = vrot.slane %v3605_v52, 9  ;;  %v6576_v19 = vld [vmem:[#allocation6_spill] sm:$0xff] }
 0x1e6   :  { %4785 = vmatmul.mubr.bf16.gmra.mxu1 %v4317_v14  ;;  %v4558_v34 = vpop.f32.mrf.mxu1  ;;  %v3674_v12 = vsel %vm5329_vm8, %v4336_v39, %v3673_v38  ;;  %v6213_v59 = vpop.f32.mrf.mxu0  ;;  %v3697_v16 = vrot.slane %v6158_v57, 5  ;;  %v4343_v23 = vrot.slane %v3606_v31, 9  ;;  %v3701_v13 = vrot.slane %v6161_v44, 5 }
 0x1e7   :  { %4836 = vmatpush3.bf16.msra.mxu1 %v5931_v27  ;;  %4788 = vmatprep.mubr.bf16.mxu1 %v4318_v9  ;;  %v6190_v60 = vadd.f32 %v4558_v34, %v807_v63  ;;  %v4364_v36 = vcombine.low %v3674_v12, %v3678_v8  ;;  %v6572_v9 = vld [vmem:[#allocation3_spill] sm:$0xff]  ;;  %v3690_v32 = vsel %vm5329_vm8, %v4340_v55, %v3689_v0  ;;  %v6574_v34 = vld [vmem:[#allocation4_spill] sm:$0xff] }
 0x1e8   :  { %4829 = vmatprep.subr.bf16.mxu1 %v5942_v3  ;;  %v995_v27 = vpop.f32.mrf.mxu1  ;;  %v6227_v18 = vpop.f32.mrf.mxu0  ;;  %v786_v28 = vadd.f32 %v5983_v24, %v6572_v9  ;;  %v811_v49 = vadd.f32 %v6043_v58, %v788_v45  ;;  %v787_v39 = vadd.f32 %v5983_v24, %v6574_v34  ;;  %v3698_v44 = vsel %vm5329_vm8, %v4342_v21, %v3697_v16 }
 0x1e9   :  { %v6201_v51 = vadd.f32 %v995_v27, %v805_v11  ;;  %v3702_v6 = vsel %vm5329_vm8, %v4343_v23, %v3701_v13 }
 0x1ea   :  { %v4559_v42 = vpop.f32.mrf.mxu1  ;;  %v1776_v63 = vpop.f32.mrf.mxu0  ;;  %v809_v57 = vadd.f32 %v6043_v58, %v786_v28 }
 0x1eb   :  { %4837 = vmatpush3.bf16.msra.mxu1 %v5942_v3  ;;  %v6208_v35 = vadd.f32 %v4559_v42, %v808_v62  ;;  %v4341_v3 = vrot.slane %v3604_v29, 9  ;;  %v4367_v62 = vcombine.low %v3698_v44, %v3702_v6 }
 0x1ec   :  { %4830 = vmatprep.subr.bf16.mxu1 %v5961_v25  ;;  %v998_v50 = vpop.f32.mrf.mxu1 }
 0x1ed   :  { %v6215_v54 = vadd.f32 %v998_v50, %v806_v17  ;;  %v3694_v14 = vsel %vm5329_vm8, %v4341_v3, %v3693_v15  ;;  %v790_v50 = vadd.f32 %v5983_v24, %v6576_v19 }
 0x1ee   :  { %4789 = vmatmul.mubr.bf16.gmra.mxu1 %v4319_v26  ;;  %v4366_v53 = vcombine.low %v3690_v32, %v3694_v14  ;;  %v810_v26 = vadd.f32 %v6043_v58, %v787_v39 }
 0x1ef   :  { %4838 = vmatpush3.bf16.msra.mxu1 %v5961_v25  ;;  %4816 = vmatprep.mubr.bf16.mxu1 %v4364_v36  ;;  %v3682_v25 = vsel %vm5329_vm8, %v4338_v4, %v3681_v22  ;;  %v792_v36 = vadd.f32 %v5983_v24, %v6575_v1  ;;  %v6577_v4 = vld [vmem:[#allocation7_spill] sm:$0xff] }
 0x1f0   :  { %4831 = vmatprep.subr.bf16.mxu1 %v5978_v20  ;;  %v4365_v30 = vcombine.low %v3682_v25, %v3686_v47  ;;  %v791_v55 = vadd.f32 %v5983_v24, %v6577_v4  ;;  %v813_v47 = vadd.f32 %v6043_v58, %v790_v50 }
 0x1f1   :  { %v815_v15 = vadd.f32 %v6043_v58, %v792_v36 }
 0x1f2   :  { %v814_v25 = vadd.f32 %v6043_v58, %v791_v55 }
 0x1f3   :  { %4839 = vmatpush3.bf16.msra.mxu1 %v5978_v20  ;;  %v789_v20 = vadd.f32 %v5983_v24, %v6573_v48 }
 0x1f4   :  { %v4622_v38 = vpop.f32.mrf.mxu0 }
 0x1f5   :  { %v812_v8 = vadd.f32 %v6043_v58, %v789_v20 }
 0x1f6   :  { %4817 = vmatmul.mubr.bf16.vlgmr.msra.gmra.mxu1 %v4365_v30  ;;  %v1789_v29 = vpop.f32.mrf.mxu0 }
 0x1f7   :  { %4820 = vmatprep.mubr.bf16.mxu1 %v4366_v53  ;;  %v4562_v5 = vpop.f32.mrf.mxu1 }
 0x1f8   :  { %v6243_v11 = vadd.f32 %v4562_v5, %v811_v49  ;;  %v4623_v17 = vpop.f32.mrf.mxu0 }
 0x1f9   :  { %v1011_v7 = vpop.f32.mrf.mxu1 }
 0x1fa   :  { %v6250_v27 = vadd.f32 %v1011_v7, %v809_v57  ;;  %v1792_v41 = vpop.f32.mrf.mxu0 }
 0x1fb   :  { %v4563_v37 = vpop.f32.mrf.mxu1 }
 0x1fc   :  { %v6253_v42 = vadd.f32 %v4563_v37, %v812_v8 }
 0x1fd   :  { %v1014_v12 = vpop.f32.mrf.mxu1  ;;  %v4626_v2 = vpop.f32.mrf.mxu0 }
 0x1fe   :  { %4821 = vmatmul.mubr.bf16.gmra.mxu1 %v4367_v62  ;;  %v6256_v56 = vadd.f32 %v1014_v12, %v810_v26 }
 0x1ff   :  { %v1805_v3 = vpop.f32.mrf.mxu0 }
 0x201   :  { %v4627_v45 = vpop.f32.mrf.mxu0 }
 0x203   :  { %v1808_v28 = vpop.f32.mrf.mxu0 }
 0x20b   :  { %v4566_v22 = vpop.f32.mrf.mxu1 }
 0x20c   :  { %v6265_v0 = vadd.f32 %v4566_v22, %v815_v15 }
 0x20d   :  { %v1027_v52 = vpop.f32.mrf.mxu1 }
 0x20e   :  { %v6268_v14 = vadd.f32 %v1027_v52, %v813_v47 }
 0x20f   :  { %v4567_v31 = vpop.f32.mrf.mxu1 }
 0x211   :  { %v1030_v9 = vpop.f32.mrf.mxu1  ;;  %v4630_v32 = vpop.f32.mrf.mxu0 }
 0x212   :  { %v6271_v30 = vadd.f32 %v1030_v9, %v814_v25 }
 0x213   :  { %v1821_v53 = vpop.f32.mrf.mxu0 }
 0x215   :  { %v4631_v49 = vpop.f32.mrf.mxu0 }
 0x218   :  { %v4586_v21 = vpop.f32.mrf.mxu1 }
 0x219   :  { %v1513_v16 = vadd.f32 %v4586_v21, %v6135_v61  ;;  %v1824_v61 = vpop.f32.mrf.mxu0 }
 0x21a   :  { %v1448_v23 = vpop.f32.mrf.mxu1 }
 0x21b   :  { %v1511_v13 = vadd.f32 %v1448_v23, %v6143_v10  ;;  %v6276_v48 = vadd.f32 %v6199_v40, %v1513_v16 }
 0x21c   :  { %v4587_v20 = vpop.f32.mrf.mxu1 }
 0x21d   :  { %v1514_v5 = vadd.f32 %v4587_v20, %v6151_v43  ;;  %v6280_v34 = vadd.f32 %v6213_v59, %v1511_v13 }
 0x21e   :  { %v1451_v39 = vpop.f32.mrf.mxu1 }
 0x21f   :  { %v1512_v57 = vadd.f32 %v1451_v39, %v6155_v46  ;;  %v6284_v44 = vadd.f32 %v6227_v18, %v1514_v5 }
 0x221   :  { %v6286_v6 = vadd.f32 %v1776_v63, %v1512_v57  ;;  %v6288_v10 = vpop.f32.mrf.mxu0 }
 0x223   :  { %v6290_v40 = vpop.f32.mrf.mxu0 }
 0x225   :  { %v6293_v43 = vpop.f32.mrf.mxu0 }
 0x227   :  { %v6301_v63 = vpop.f32.mrf.mxu0 }
 0x22b   :  { %v4590_v7 = vpop.f32.mrf.mxu1 }
 0x22c   :  { %v1517_v8 = vadd.f32 %v4590_v7, %v6190_v60 }
 0x22d   :  { %v1464_v59 = vpop.f32.mrf.mxu1 }
 0x22e   :  { %v1515_v37 = vadd.f32 %v1464_v59, %v6201_v51  ;;  %v6296_v62 = vadd.f32 %v4622_v38, %v1517_v8 }
 0x22f   :  { %v4591_v46 = vpop.f32.mrf.mxu1 }
 0x230   :  { %v1518_v18 = vadd.f32 %v4591_v46, %v6208_v35  ;;  %v6299_v26 = vadd.f32 %v1789_v29, %v1515_v37 }
 0x231   :  { %v1467_v12 = vpop.f32.mrf.mxu1  ;;  %v6308_v19 = vpop.f32.mrf.mxu0 }
 0x232   :  { %v1516_v1 = vadd.f32 %v1467_v12, %v6215_v54  ;;  %v6304_v36 = vadd.f32 %v4623_v17, %v1518_v18 }
 0x233   :  { %v6310_v50 = vpop.f32.mrf.mxu0 }
 0x234   :  { %v6306_v60 = vadd.f32 %v1792_v41, %v1516_v1 }
 0x235   :  { %v6313_v15 = vpop.f32.mrf.mxu0 }
 0x237   :  { %v6317_v55 = vpop.f32.mrf.mxu0 }
 0x23b   :  { %v4594_v51 = vpop.f32.mrf.mxu1 }
 0x23c   :  { %v1521_v38 = vadd.f32 %v4594_v51, %v6243_v11  ;;  %v793_v11 = vadd.f32 %v5983_v24, %v6186_v33 }
 0x23d   :  { %v1480_v35 = vpop.f32.mrf.mxu1 }
 0x23e   :  { %v1519_v29 = vadd.f32 %v1480_v35, %v6250_v27  ;;  %v1846_v22 = vadd.f32 %v4626_v2, %v1521_v38  ;;  %v816_v27 = vadd.f32 %v6043_v58, %v793_v11 }
 0x23f   :  { %v4595_v4 = vpop.f32.mrf.mxu1 }
 0x240   :  { %v1522_v54 = vadd.f32 %v4595_v4, %v6253_v42  ;;  %v1844_v17 = vadd.f32 %v1805_v3, %v1519_v29  ;;  %v1057_v13 = vadd.f32 %v4567_v31, %v816_v27 }
 0x241   :  { %v1483_v41 = vpop.f32.mrf.mxu1 }
 0x242   :  { %v1520_v47 = vadd.f32 %v1483_v41, %v6256_v56  ;;  %v1847_v52 = vadd.f32 %v4627_v45, %v1522_v54 }
 0x244   :  { %v1845_v25 = vadd.f32 %v1808_v28, %v1520_v47 }
 0x245   :  { %v4690_v9 = vpop.f32.mrf.mxu0 }
 0x247   :  { %v2513_v21 = vpop.f32.mrf.mxu0 }
 0x249   :  { %v4691_v16 = vpop.f32.mrf.mxu0 }
 0x24b   :  { %v2516_v42 = vpop.f32.mrf.mxu0 }
 0x24e   :  { %v4598_v23 = vpop.f32.mrf.mxu1 }
 0x24f   :  { %v1525_v2 = vadd.f32 %v4598_v23, %v6265_v0 }
 0x250   :  { %v1496_v3 = vpop.f32.mrf.mxu1 }
 0x251   :  { %v1523_v20 = vadd.f32 %v1496_v3, %v6268_v14  ;;  %v1850_v5 = vadd.f32 %v4630_v32, %v1525_v2 }
 0x252   :  { %v4599_v56 = vpop.f32.mrf.mxu1 }
 0x253   :  { %v4694_v45 = vpop.f32.mrf.mxu0  ;;  %v1526_v28 = vadd.f32 %v4599_v56, %v1057_v13  ;;  %v1848_v39 = vadd.f32 %v1821_v53, %v1523_v20 }
 0x254   :  { %v1499_v57 = vpop.f32.mrf.mxu1 }
 0x255   :  { %v2529_v7 = vpop.f32.mrf.mxu0  ;;  %v1524_v24 = vadd.f32 %v1499_v57, %v6271_v30  ;;  %v1851_v33 = vadd.f32 %v4631_v49, %v1526_v28 }
 0x256   :  { %v6326_v8 = vpop.f32.mrf.mxu1 }
 0x257   :  { %v4695_v58 = vpop.f32.mrf.mxu0  ;;  %v1849_v59 = vadd.f32 %v1824_v61, %v1524_v24 }
 0x258   :  { %v2015_v0 = vpop.f32.mrf.mxu1 }
 0x259   :  { %v2532_v37 = vpop.f32.mrf.mxu0 }
 0x25a   :  { %v6328_v46 = vpop.f32.mrf.mxu1 }
 0x25b   :  { %v6330_v31 = vpop.f32.mrf.mxu0 }
 0x25c   :  { %v6332_v14 = vpop.f32.mrf.mxu1 }
 0x25d   :  { %v6334_v32 = vpop.f32.mrf.mxu0 }
 0x25e   :  { %v6336_v53 = vpop.f32.mrf.mxu1 }
 0x25f   :  { %v6338_v18 = vpop.f32.mrf.mxu0 }
 0x260   :  { %v6340_v30 = vpop.f32.mrf.mxu1 }
 0x261   :  { %v6342_v49 = vpop.f32.mrf.mxu0 }
 0x262   :  { %v6344_v12 = vpop.f32.mrf.mxu1 }
 0x263   :  { %v6346_v61 = vpop.f32.mrf.mxu0 }
 0x264   :  { %v6348_v1 = vpop.f32.mrf.mxu1 }
 0x265   :  { %v6350_v51 = vpop.f32.mrf.mxu0 }
 0x266   :  { %v4658_v38 = vpop.f32.mrf.mxu1 }
 0x267   :  { %v6352_v35 = vpop.f32.mrf.mxu0  ;;  %v2088_v29 = vadd.f32 %v4658_v38, %v1846_v22 }
 0x268   :  { %v2047_v4 = vpop.f32.mrf.mxu1 }
 0x269   :  { %v6354_v54 = vpop.f32.mrf.mxu0  ;;  %v2086_v41 = vadd.f32 %v2047_v4, %v1844_v17  ;;  %v6356_v47 = vadd.f32 %v4690_v9, %v2088_v29 }
 0x26a   :  { %v4659_v11 = vpop.f32.mrf.mxu1 }
 0x26b   :  { %v6358_v23 = vpop.f32.mrf.mxu0  ;;  %v2089_v27 = vadd.f32 %v4659_v11, %v1847_v52  ;;  %v6360_v2 = vadd.f32 %v2513_v21, %v2086_v41 }
 0x26c   :  { %v2050_v3 = vpop.f32.mrf.mxu1 }
 0x26d   :  { %v2087_v13 = vadd.f32 %v2050_v3, %v1845_v25  ;;  %v6362_v20 = vadd.f32 %v4691_v16, %v2089_v27  ;;  %v6364_v56 = vpop.f32.mrf.mxu0 }
 0x26e   :  { %v4662_v28 = vpop.f32.mrf.mxu1 }
 0x26f   :  { %v2092_v22 = vadd.f32 %v4662_v28, %v1850_v5  ;;  %v6366_v57 = vadd.f32 %v2516_v42, %v2087_v13  ;;  %v6370_v38 = vpop.f32.mrf.mxu0 }
 0x270   :  { %v2063_v24 = vpop.f32.mrf.mxu1 }
 0x271   :  { %v2090_v17 = vadd.f32 %v2063_v24, %v1848_v39  ;;  %v6368_v9 = vadd.f32 %v4694_v45, %v2092_v22  ;;  %v6376_v41 = vpop.f32.mrf.mxu0 }
 0x272   :  { %v4663_v29 = vpop.f32.mrf.mxu1  ;;  %6580 = vst [vmem:[#allocation4_spill] sm:$0xff] %v6376_v41 }
 0x273   :  { %v2093_v52 = vadd.f32 %v4663_v29, %v1851_v33  ;;  %v6372_v21 = vadd.f32 %v2529_v7, %v2090_v17  ;;  %v6380_v27 = vpop.f32.mrf.mxu0  ;;  %v2080_v29 = vadd.f32 %v6326_v8, %v6276_v48  ;;  %v2084_v8 = vadd.f32 %v6336_v53, %v6296_v62 }
 0x274   :  { %v2066_v4 = vpop.f32.mrf.mxu1  ;;  %6582 = vst [vmem:[#allocation6_spill] sm:$0xff] %v6380_v27  ;;  %v2079_v27 = vadd.f32 %v6332_v14, %v6286_v6 }
 0x275   :  { %6578 = vst [vmem:[#allocation3_spill] sm:$0xff] %v6372_v21  ;;  %v2091_v25 = vadd.f32 %v2066_v4, %v1849_v59  ;;  %v6374_v16 = vadd.f32 %v4695_v58, %v2093_v52  ;;  %v6382_v3 = vpop.f32.mrf.mxu0  ;;  %v2078_v4 = vadd.f32 %v2015_v0, %v6280_v34  ;;  %v2550_v62 = vadd.f32 %v6308_v19, %v2084_v8 }
 0x276   :  { %v4714_v11 = vpop.f32.mrf.mxu1  ;;  %6583 = vst [vmem:[#allocation7_spill] sm:$0xff] %v6382_v3  ;;  %v2546_v3 = vadd.f32 %v6288_v10, %v2080_v29  ;;  %v2545_v6 = vadd.f32 %v6301_v63, %v2079_v27 }
 0x277   :  { %6579 = vst [vmem:[#allocation5_spill] sm:$0xff] %v6374_v16  ;;  %v6378_v5 = vadd.f32 %v2532_v37, %v2091_v25  ;;  %v6384_v7 = vpop.f32.mrf.mxu0  ;;  %v2544_v48 = vadd.f32 %v6290_v40, %v2078_v4  ;;  %v2085_v40 = vadd.f32 %v6344_v12, %v6304_v36 }
 0x278   :  { %v2803_v42 = vpop.f32.mrf.mxu1  ;;  %6584 = vst [vmem:[#allocation9_spill] sm:$0xff] %v6384_v7  ;;  %v2868_v16 = vadd.f32 %v4714_v11, %v2546_v3 }
 0x279   :  { %6581 = vst [vmem:[#allocation8_spill] sm:$0xff] %v6378_v5  ;;  %v6386_v58 = vpop.f32.mrf.mxu0  ;;  %v2866_v41 = vadd.f32 %v2803_v42, %v2544_v48 }
 0x27a   :  { %v4715_v45 = vpop.f32.mrf.mxu1  ;;  %6585 = vst [vmem:[#allocation10_spill] sm:$0xff] %v6386_v58  ;;  %v2081_v58 = vadd.f32 %v6328_v46, %v6284_v44  ;;  %v2082_v44 = vadd.f32 %v6340_v30, %v6299_v26  ;;  %v3111_v14 = vadd.f32 %v6330_v31, %v2868_v16  ;;  %v2083_v26 = vadd.f32 %v6348_v1, %v6306_v60 }
 0x27b   :  { %v4810_v37 = vpop.f32.mrf.mxu0  ;;  %v2551_v16 = vadd.f32 %v6313_v15, %v2085_v40 }
 0x27c   :  { %v2806_v39 = vpop.f32.mrf.mxu1  ;;  %v2547_v21 = vadd.f32 %v6293_v43, %v2081_v58  ;;  %v3109_v43 = vadd.f32 %v6334_v32, %v2866_v41 }
 0x27d   :  { %v3834_v25 = vpop.f32.mrf.mxu0  ;;  %v2867_v42 = vadd.f32 %v2806_v39, %v2545_v6 }
 0x27e   :  { %v4718_v13 = vpop.f32.mrf.mxu1  ;;  %v2869_v46 = vadd.f32 %v4715_v45, %v2547_v21  ;;  %v2548_v21 = vadd.f32 %v6310_v50, %v2082_v44  ;;  %v2549_v50 = vadd.f32 %v6317_v55, %v2083_v26 }
 0x27f   :  { %v4811_v34 = vpop.f32.mrf.mxu0  ;;  %v2872_v30 = vadd.f32 %v4718_v13, %v2550_v62  ;;  %v3110_v60 = vadd.f32 %v6342_v49, %v2867_v42 }
 0x280   :  { %v2819_v33 = vpop.f32.mrf.mxu1  ;;  %v3112_v36 = vadd.f32 %v6338_v18, %v2869_v46 }
 0x281   :  { %v3837_v53 = vpop.f32.mrf.mxu0  ;;  %v2870_v12 = vadd.f32 %v2819_v33, %v2548_v21  ;;  %v3115_v58 = vadd.f32 %v6346_v61, %v2872_v30 }
 0x282   :  { %v4719_v28 = vpop.f32.mrf.mxu1 }
 0x283   :  { %v4814_v19 = vpop.f32.mrf.mxu0  ;;  %v2873_v1 = vadd.f32 %v4719_v28, %v2551_v16 }
 0x284   :  { %v2822_v59 = vpop.f32.mrf.mxu1 }
 0x285   :  { %v3850_v15 = vpop.f32.mrf.mxu0  ;;  %v2871_v29 = vadd.f32 %v2822_v59, %v2549_v50  ;;  %v3116_v55 = vadd.f32 %v6352_v35, %v2873_v1 }
 0x286   :  { %v6388_v22 = vpop.f32.mrf.mxu1 }
 0x287   :  { %v4815_v6 = vpop.f32.mrf.mxu0 }
 0x288   :  { %v6390_v24 = vpop.f32.mrf.mxu1 }
 0x289   :  { %v3853_v42 = vpop.f32.mrf.mxu0 }
 0x28a   :  { %v6392_v17 = vpop.f32.mrf.mxu1 }
 0x28c   :  { %v6396_v52 = vpop.f32.mrf.mxu1 }
 0x28e   :  { %v6399_v7 = vpop.f32.mrf.mxu1 }
 0x290   :  { %v6404_v5 = vpop.f32.mrf.mxu1 }
 0x292   :  { %v6411_v0 = vpop.f32.mrf.mxu1 }
 0x294   :  { %v6416_v10 = vpop.f32.mrf.mxu1 }
 0x296   :  { %v4778_v11 = vpop.f32.mrf.mxu1 }
 0x297   :  { %v3577_v3 = vadd.f32 %v4778_v11, %v3111_v14  ;;  %v3114_v14 = vadd.f32 %v6354_v54, %v2871_v29 }
 0x298   :  { %v3512_v63 = vpop.f32.mrf.mxu1 }
 0x299   :  { %v6427_v27 = vadd.f32 %v4810_v37, %v3577_v3  ;;  %v3575_v31 = vadd.f32 %v3512_v63, %v3109_v43 }
 0x29a   :  { %v4779_v45 = vpop.f32.mrf.mxu1 }
 0x29b   :  { %v3915_v39 = vmul.f32 0.5, %v6427_v27  ;;  %v6432_v32 = vadd.f32 %v3834_v25, %v3575_v31  ;;  %v3578_v41 = vadd.f32 %v4779_v45, %v3112_v36  ;;  %v3113_v25 = vadd.f32 %v6350_v51, %v2870_v12 }
 0x29c   :  { %v3515_v13 = vpop.f32.mrf.mxu1 }
 0x29d   :  { %5001 = vtanh.f32 %v3915_v39  ;;  %v3913_v18 = vmul.f32 0.5, %v6432_v32  ;;  %v3900_v33 = vadd.f32 %v4811_v34, %v3578_v41  ;;  %v3576_v37 = vadd.f32 %v3515_v13, %v3110_v60 }
 0x29e   :  { %v4782_v4 = vpop.f32.mrf.mxu1  ;;  %v2876_v41 = vadd.f32 %v6388_v22, %v6356_v47  ;;  %v2877_v47 = vadd.f32 %v6392_v17, %v6362_v20 }
 0x29f   :  { %5003 = vtanh.f32 %v3913_v18  ;;  %v3916_v48 = vmul.f32 0.5, %v3900_v33  ;;  %v3898_v8 = vadd.f32 %v3837_v53, %v3576_v37  ;;  %v3581_v49 = vadd.f32 %v4782_v4, %v3115_v58 }
 0x2a0   :  { %v3528_v28 = vpop.f32.mrf.mxu1  ;;  %v2874_v4 = vadd.f32 %v6390_v24, %v6360_v2 }
 0x2a1   :  { %5005 = vtanh.f32 %v3916_v48  ;;  %v3914_v44 = vmul.f32 0.5, %v3898_v8  ;;  %v6440_v61 = vadd.f32 %v4814_v19, %v3581_v49  ;;  %v3579_v46 = vadd.f32 %v3528_v28, %v3113_v25 }
 0x2a2   :  { %v4783_v34 = vpop.f32.mrf.mxu1  ;;  %v2875_v28 = vadd.f32 %v6396_v52, %v6366_v57 }
 0x2a3   :  { %5007 = vtanh.f32 %v3914_v44  ;;  %v3919_v59 = vmul.f32 0.5, %v6440_v61  ;;  %v6444_v51 = vadd.f32 %v3850_v15, %v3579_v46  ;;  %v3582_v40 = vadd.f32 %v4783_v34, %v3116_v55 }
 0x2a4   :  { %v3531_v62 = vpop.f32.mrf.mxu1  ;;  %v3117_v46 = vadd.f32 %v6364_v56, %v2874_v4  ;;  %v6587_v56 = vld [vmem:[#allocation4_spill] sm:$0xff]  ;;  %v6593_v4 = vld [vmem:[#allocation10_spill] sm:$0xff] }
 0x2a5   :  { %5009 = vtanh.f32 %v3919_v59  ;;  %v3917_v53 = vmul.f32 0.5, %v6444_v51  ;;  %v6447_v35 = vadd.f32 %v4815_v6, %v3582_v40  ;;  %v3580_v11 = vadd.f32 %v3531_v62, %v3114_v14  ;;  %v6586_v59 = vld [vmem:[#allocation3_spill] sm:$0xff] }
 0x2a6   :  { %v4786_v3 = vpop.f32.mrf.mxu1  ;;  %v2878_v40 = vadd.f32 %v6404_v5, %v6586_v59  ;;  %v3118_v62 = vadd.f32 %v6587_v56, %v2875_v28  ;;  %v6589_v5 = vld [vmem:[#allocation6_spill] sm:$0xff] }
 0x2a7   :  { %5011 = vtanh.f32 %v3917_v53  ;;  %v3920_v43 = vmul.f32 0.5, %v6447_v35  ;;  %v6450_v26 = vadd.f32 %v3853_v42, %v3580_v11 }
 0x2a8   :  { %v3544_v54 = vpop.f32.mrf.mxu1 }
 0x2a9   :  { %5013 = vtanh.f32 %v3920_v43  ;;  %v3918_v30 = vmul.f32 0.5, %v6450_v26 }
 0x2aa   :  { %v5002_v21 = vpop.eup %5001  ;;  %v4787_v63 = vpop.f32.mrf.mxu1 }
 0x2ab   :  { %v3947_v31 = vmul.f32 0.5, %v5002_v21  ;;  %5015 = vtanh.f32 %v3918_v30 }
 0x2ac   :  { %v5004_v36 = vpop.eup %5003  ;;  %v3547_v12 = vpop.f32.mrf.mxu1 }
 0x2ad   :  { %v3963_v19 = vadd.f32 0.5, %v3947_v31  ;;  %v3945_v16 = vmul.f32 0.5, %v5004_v36  ;;  %v3584_v30 = vadd.f32 %v3547_v12, %v3118_v62 }
 0x2ae   :  { %v5006_v45 = vpop.eup %5005  ;;  %v6453_v39 = vpop.f32.mrf.mxu1 }
 0x2af   :  { %v3979_v60 = vmul.f32 %v3963_v19, %v6427_v27  ;;  %v3961_v1 = vadd.f32 0.5, %v3945_v16  ;;  %v3948_v50 = vmul.f32 0.5, %v5006_v45  ;;  %v6590_v19 = vld [vmem:[#allocation8_spill] sm:$0xff]  ;;  %v6591_v45 = vld [vmem:[#allocation7_spill] sm:$0xff] }
 0x2b0   :  { %v5008_v13 = vpop.eup %5007  ;;  %v6458_v58 = vpop.f32.mrf.mxu1  ;;  %v2879_v16 = vadd.f32 %v6416_v10, %v6590_v19 }
 0x2b1   :  { %3995 = vst [vmem:[%s6550_s6 + $0x10] sm:$0xff] %v3979_v60  ;;  %v3977_v18 = vmul.f32 %v3961_v1, %v6432_v32  ;;  %v3964_v37 = vadd.f32 0.5, %v3948_v50  ;;  %v3946_v15 = vmul.f32 0.5, %v5008_v13  ;;  %v3119_v32 = vadd.f32 %v6358_v23, %v2876_v41  ;;  %v6592_v13 = vld [vmem:[#allocation9_spill] sm:$0xff] }
 0x2b2   :  { %v5010_v29 = vpop.eup %5009  ;;  %v6468_v22 = vpop.f32.mrf.mxu1  ;;  %v3120_v23 = vadd.f32 %v6370_v38, %v2877_v47  ;;  %v3121_v41 = vadd.f32 %v6591_v45, %v2878_v40  ;;  %v3122_v47 = vadd.f32 %v6593_v4, %v2879_v16 }
 0x2b3   :  { %3993 = vst [vmem:[%s6550_s6] sm:$0xff] %v3977_v18  ;;  %v3980_v27 = vmul.f32 %v3964_v37, %v3900_v33  ;;  %v3962_v25 = vadd.f32 0.5, %v3946_v15  ;;  %v3951_v48 = vmul.f32 0.5, %v5010_v29  ;;  %v3585_v17 = vadd.f32 %v4786_v3, %v3119_v32  ;;  %v6588_v3 = vld [vmem:[#allocation5_spill] sm:$0xff] }
 0x2b4   :  { %v5012_v49 = vpop.eup %5011  ;;  %v3563_v55 = vpop.f32.mrf.mxu1  ;;  %v2880_v33 = vadd.f32 %v6399_v7, %v6368_v9  ;;  %v3583_v9 = vadd.f32 %v3544_v54, %v3117_v46  ;;  %v3586_v7 = vadd.f32 %v4787_v63, %v3120_v23  ;;  %v2881_v43 = vadd.f32 %v6411_v0, %v6588_v3 }
 0x2b5   :  { %3996 = vst [vmem:[%s6550_s6 + $0x18] sm:$0xff] %v3980_v27  ;;  %v3978_v2 = vmul.f32 %v3962_v25, %v3898_v8  ;;  %v3967_v20 = vadd.f32 0.5, %v3951_v48  ;;  %v3949_v24 = vmul.f32 0.5, %v5012_v49  ;;  %v3587_v10 = vadd.f32 %v6458_v58, %v3121_v41 }
 0x2b6   :  { %v5014_v44 = vpop.eup %5013  ;;  %v4818_v6 = vpop.f32.mrf.mxu1  ;;  %v3123_v54 = vadd.f32 %v6589_v5, %v2880_v33  ;;  %v3124_v18 = vadd.f32 %v6592_v13, %v2881_v43  ;;  %v3588_v32 = vadd.f32 %v3563_v55, %v3122_v47 }
 0x2b7   :  { %3994 = vst [vmem:[%s6550_s6 + $0x8] sm:$0xff] %v3978_v2  ;;  %v3983_v57 = vmul.f32 %v3967_v20, %v6440_v61  ;;  %v3965_v52 = vadd.f32 0.5, %v3949_v24  ;;  %v3952_v8 = vmul.f32 0.5, %v5014_v44  ;;  %v6487_v34 = vadd.f32 %v4818_v6, %v3585_v17 }
 0x2b8   :  { %v5016_v14 = vpop.eup %5015  ;;  %v3866_v38 = vpop.f32.mrf.mxu1  ;;  %v3589_v1 = vadd.f32 %v6453_v39, %v3123_v54  ;;  %v3590_v39 = vadd.f32 %v6468_v22, %v3124_v18 }
 0x2b9   :  { %3999 = vst [vmem:[%s6550_s6 + $0x30] sm:$0xff] %v3983_v57  ;;  %v3981_v53 = vmul.f32 %v3965_v52, %v6444_v51  ;;  %v3968_v61 = vadd.f32 0.5, %v3952_v8  ;;  %v3950_v11 = vmul.f32 0.5, %v5016_v14  ;;  %v3923_v42 = vmul.f32 0.5, %v6487_v34 }
 0x2ba   :  { %v3905_v21 = vadd.f32 %v3866_v38, %v3583_v9  ;;  %v4819_v63 = vpop.f32.mrf.mxu1 }
 0x2bb   :  { %3997 = vst [vmem:[%s6550_s6 + $0x20] sm:$0xff] %v3981_v53  ;;  %v3984_v31 = vmul.f32 %v3968_v61, %v6447_v35  ;;  %v3966_v36 = vadd.f32 0.5, %v3950_v11  ;;  %5017 = vtanh.f32 %v3923_v42  ;;  %v3908_v51 = vadd.f32 %v4819_v63, %v3586_v7 }
 0x2bc   :  { %v3921_v0 = vmul.f32 0.5, %v3905_v21  ;;  %v3869_v12 = vpop.f32.mrf.mxu1 }
 0x2bd   :  { %4000 = vst [vmem:[%s6550_s6 + $0x38] sm:$0xff] %v3984_v31  ;;  %v3982_v60 = vmul.f32 %v3966_v36, %v6450_v26  ;;  %v3924_v50 = vmul.f32 0.5, %v3908_v51  ;;  %v3906_v35 = vadd.f32 %v3869_v12, %v3584_v30 }
 0x2be   :  { %5019 = vtanh.f32 %v3921_v0  ;;  %v4822_v37 = vpop.f32.mrf.mxu1 }
 0x2bf   :  { %3998 = vst [vmem:[%s6550_s6 + $0x28] sm:$0xff] %v3982_v60  ;;  %5021 = vtanh.f32 %v3924_v50  ;;  %v3922_v15 = vmul.f32 0.5, %v3906_v35  ;;  %v3911_v29 = vadd.f32 %v4822_v37, %v3589_v1 }
 0x2c0   :  { %v3882_v26 = vpop.f32.mrf.mxu1 }
 0x2c1   :  { %5023 = vtanh.f32 %v3922_v15  ;;  %v3927_v27 = vmul.f32 0.5, %v3911_v29  ;;  %v3909_v25 = vadd.f32 %v3882_v26, %v3587_v10 }
 0x2c2   :  { %v4823_v48 = vpop.f32.mrf.mxu1 }
 0x2c3   :  { %5025 = vtanh.f32 %v3927_v27  ;;  %v3925_v49 = vmul.f32 0.5, %v3909_v25  ;;  %v3912_v28 = vadd.f32 %v4823_v48, %v3590_v39 }
 0x2c4   :  { %v3885_v2 = vpop.f32.mrf.mxu1 }
 0x2c5   :  { %5027 = vtanh.f32 %v3925_v49  ;;  %v3928_v20 = vmul.f32 0.5, %v3912_v28  ;;  %v3910_v58 = vadd.f32 %v3885_v2, %v3588_v32 }
 0x2c7   :  { %5029 = vtanh.f32 %v3928_v20  ;;  %v3926_v24 = vmul.f32 0.5, %v3910_v58 }
 0x2c8   :  { %v5018_v17 = vpop.eup %5017 }
 0x2c9   :  { %v3955_v44 = vmul.f32 0.5, %v5018_v17  ;;  %5031 = vtanh.f32 %v3926_v24 }
 0x2cb   :  { %v5020_v33 = vpop.eup %5019  ;;  %v3971_v46 = vadd.f32 0.5, %v3955_v44 }
 0x2cc   :  { %v5022_v22 = vpop.eup %5021  ;;  %v3953_v23 = vmul.f32 0.5, %v5020_v33 }
 0x2cd   :  { %v3987_v6 = vmul.f32 %v3971_v46, %v6487_v34  ;;  %v3956_v57 = vmul.f32 0.5, %v5022_v22 }
 0x2ce   :  { %v5024_v55 = vpop.eup %5023  ;;  %v3969_v52 = vadd.f32 0.5, %v3953_v23 }
 0x2cf   :  { %4003 = vst [vmem:[%s6550_s6 + $0x50] sm:$0xff] %v3987_v6  ;;  %v3972_v8 = vadd.f32 0.5, %v3956_v57  ;;  %v3954_v14 = vmul.f32 0.5, %v5024_v55 }
 0x2d0   :  { %v5026_v59 = vpop.eup %5025  ;;  %v3985_v40 = vmul.f32 %v3969_v52, %v3905_v21 }
 0x2d1   :  { %v3988_v9 = vmul.f32 %v3972_v8, %v3908_v51  ;;  %v3970_v7 = vadd.f32 0.5, %v3954_v14  ;;  %v3959_v56 = vmul.f32 0.5, %v5026_v59 }
 0x2d2   :  { %v5028_v62 = vpop.eup %5027  ;;  %4001 = vst [vmem:[%s6550_s6 + $0x40] sm:$0xff] %v3985_v40 }
 0x2d3   :  { %4004 = vst [vmem:[%s6550_s6 + $0x58] sm:$0xff] %v3988_v9  ;;  %v3986_v34 = vmul.f32 %v3970_v7, %v3906_v35  ;;  %v3975_v38 = vadd.f32 0.5, %v3959_v56  ;;  %v3957_v53 = vmul.f32 0.5, %v5028_v62 }
 0x2d4   :  { %v5030_v61 = vpop.eup %5029 }
 0x2d5   :  { %4002 = vst [vmem:[%s6550_s6 + $0x48] sm:$0xff] %v3986_v34  ;;  %v3991_v11 = vmul.f32 %v3975_v38, %v3911_v29  ;;  %v3973_v42 = vadd.f32 0.5, %v3957_v53  ;;  %v3960_v3 = vmul.f32 0.5, %v5030_v61 }
 0x2d6   :  { %v5032_v43 = vpop.eup %5031 }
 0x2d7   :  { %4007 = vst [vmem:[%s6550_s6 + $0x70] sm:$0xff] %v3991_v11  ;;  %v3989_v30 = vmul.f32 %v3973_v42, %v3909_v25  ;;  %v3976_v5 = vadd.f32 0.5, %v3960_v3  ;;  %v3958_v54 = vmul.f32 0.5, %v5032_v43 }
 0x2d9   :  { %4005 = vst [vmem:[%s6550_s6 + $0x60] sm:$0xff] %v3989_v30  ;;  %v3992_v21 = vmul.f32 %v3976_v5, %v3912_v28  ;;  %v3974_v63 = vadd.f32 0.5, %v3958_v54 }
 0x2db   :  { %4008 = vst [vmem:[%s6550_s6 + $0x78] sm:$0xff] %v3992_v21  ;;  %v3990_v31 = vmul.f32 %v3974_v63, %v3910_v58 }
 0x2dd   :  { %4006 = vst [vmem:[%s6550_s6 + $0x68] sm:$0xff] %v3990_v31 }

</bundles_post_ra>
